<compile_context>
chip_gen: v5e
topology: v5e:2x2
jax: 0.10.0
libtpu: 0.0.40
codegen_flags: <defaults>
</compile_context>

<pallas_src>
import functools

import numpy as np
import jax
import jax.numpy as jnp
from jax.experimental import pallas as pl
from jax.experimental.pallas import tpu as pltpu


# ----------------------------- fused Pallas kernel ------------------------------

def _autoencoder_kernel(x_ref, m1_ref, b1_ref, m2_ref, b2_ref, wr_ref, br_ref,
                        w3_ref, b3_ref, w4_ref, b4_ref, out_ref, code_ref, *, bt):
    f32 = jnp.float32
    bf16 = jnp.bfloat16

    def dot(a, w):
        # bf16 operands, f32 accumulation (weights are already bf16 from prep).
        return jnp.dot(a.astype(bf16), w, preferred_element_type=f32)

    def pool_h(z, n_out):
        # z: (2*n_out*bt, 128), rows ordered h*bt + b.  Max over height pairs via a
        # sublane-aligned block view (bt % 8 == 0) — pure VPU, no matmuls.
        z3 = z.reshape(n_out, 2 * bt, 128)
        return jnp.maximum(z3[:, :bt, :], z3[:, bt:, :]).reshape(n_out * bt, 128)

    x = x_ref[...]                                                  # (28*bt, 128) f32

    # ---- conv1 (1->6, k=5) + bias + ReLU: one stacked-K dot (K = 5*128) ----
    a1 = jnp.concatenate([x[kh * bt: kh * bt + 24 * bt, :] for kh in range(5)],
                         axis=1)                                    # (24*bt, 640)
    z1 = jnp.maximum(dot(a1, m1_ref[...]) + b1_ref[...], 0.0)       # (24*bt, 256)

    # ---- maxpool 2x2: width = max of the two 128-lane halves; height = block max ----
    zw1 = jnp.maximum(z1[:, :128], z1[:, 128:])                     # (24*bt, 128)
    p1 = pool_h(zw1, 12)                                            # (12*bt, 128)

    # ---- conv2 (6->14, k=5) + bias + ReLU: one stacked-K dot (K = 5*128) ----
    a2 = jnp.concatenate([p1[kh * bt: kh * bt + 8 * bt, :] for kh in range(5)],
                         axis=1)                                    # (8*bt, 640)
    z2 = jnp.maximum(dot(a2, m2_ref[...]) + b2_ref[...], 0.0)       # (8*bt, 256)

    zw2 = jnp.maximum(z2[:, :128], z2[:, 128:])                     # (8*bt, 128)
    p2 = pool_h(zw2, 4)                                             # (4*bt, 128)

    # ---- flatten (NCHW order folded into the weights) + reduced Linear(224 -> 10) ----
    ar = jnp.concatenate([p2[io * bt: (io + 1) * bt, :] for io in range(4)],
                         axis=1)                                    # (bt, 512)
    code = dot(ar, wr_ref[...]) + br_ref[...]                       # (bt, 128) (10 used)

    # ---- decode: fc1 + ReLU, fc2 + sigmoid (stable tanh form on the EUP) ----
    h = jnp.maximum(dot(code, w3_ref[...]) + b3_ref[...], 0.0)      # (bt, 128) (100 used)
    y = dot(h, w4_ref[...]) + b4_ref[...]                           # (bt, 896) (784 used)
    out_ref[...] = 0.5 * (jnp.tanh(0.5 * y) + 1.0)
    code_ref[...] = code


# --------------------- one-time parameter preparation (host/numpy) ---------------------

_PREP_KEYS = ("m1", "bias1", "m2", "bias2", "wr", "br", "w3", "b3", "w4", "b4")


def prepare_params(params):
    """Convert PyTorch-layout params into kernel-ready matrices (done once, host side)."""
    w1 = np.asarray(params["conv1_w"], np.float32)     # (6, 1, 5, 5)
    b1 = np.asarray(params["conv1_b"], np.float32)
    w2 = np.asarray(params["conv2_w"], np.float32)     # (14, 6, 5, 5)
    b2 = np.asarray(params["conv2_b"], np.float32)
    wr = np.asarray(params["reduced_w"], np.float32)   # (10, 224)
    br = np.asarray(params["reduced_b"], np.float32)
    wf1 = np.asarray(params["fc1_w"], np.float32)      # (100, 10)
    bf1 = np.asarray(params["fc1_b"], np.float32)
    wf2 = np.asarray(params["fc2_w"], np.float32)      # (784, 100)
    bf2 = np.asarray(params["fc2_b"], np.float32)

    # conv1 banded matrix.  K index = kh*128 + wi (input column, 28 used per band).
    # N index = dj*128 + jo*6 + co (output column j1 = 2*jo + dj; halves lane-aligned).
    m1 = np.zeros((5 * 128, 256), np.float32)
    bias1 = np.zeros((1, 256), np.float32)
    for dj in range(2):
        for jo in range(12):
            j1 = 2 * jo + dj
            col = dj * 128 + jo * 6
            bias1[0, col:col + 6] = b1
            for kh in range(5):
                for kw in range(5):
                    m1[kh * 128 + j1 + kw, col:col + 6] = w1[:, 0, kh, kw]

    # conv2 banded matrix.  K index = kh*128 + j*6 + c (p1 lane layout, 72 used/band).
    # N index = dj*128 + jo*14 + co.
    m2 = np.zeros((5 * 128, 256), np.float32)
    bias2 = np.zeros((1, 256), np.float32)
    for dj in range(2):
        for jo in range(4):
            j2 = 2 * jo + dj
            col = dj * 128 + jo * 14
            bias2[0, col:col + 14] = b2
            for kh in range(5):
                for kw in range(5):
                    for c in range(6):
                        m2[kh * 128 + (j2 + kw) * 6 + c, col:col + 14] = w2[:, c, kh, kw]

    # reduced Linear(224 -> 10): fold the PyTorch NCHW flatten (c*16 + h*4 + w) into a
    # stacked-K matrix over p2's (height-block, lane) layout; pad N 10 -> 128.
    wrs = np.zeros((4 * 128, 128), np.float32)
    for io in range(4):
        for jo in range(4):
            for co in range(14):
                wrs[io * 128 + jo * 14 + co, :10] = wr[:, co * 16 + io * 4 + jo]
    brs = np.zeros((1, 128), np.float32)
    brs[0, :10] = br

    w3 = np.zeros((128, 128), np.float32)               # pad 10 -> 128, 100 -> 128
    w3[:10, :100] = wf1.T
    b3 = np.zeros((1, 128), np.float32)
    b3[0, :100] = bf1
    w4 = np.zeros((128, 896), np.float32)               # pad 100 -> 128, 784 -> 896
    w4[:100, :784] = wf2.T
    b4 = np.zeros((1, 896), np.float32)
    b4[0, :784] = bf2

    prep = {"m1": m1, "bias1": bias1, "m2": m2, "bias2": bias2,
            "wr": wrs, "br": brs, "w3": w3, "b3": b3, "w4": w4, "b4": b4}
    bf16_keys = ("m1", "m2", "wr", "w3", "w4")          # matmul operands -> bf16
    return {k: jnp.asarray(v, jnp.bfloat16 if k in bf16_keys else jnp.float32)
            for k, v in prep.items()}


# ----------------------------------- forward ------------------------------------------

def autoencoder_forward(prep, x):
    """x: (B, 1, 28, 28) NCHW (same as the PyTorch module). Returns (out, code)."""
    B = x.shape[0]
    # Batch tile: multiple of 8 (sublane alignment of the shifted conv bands and of the
    # height-pool block max), capped at 32 so per-step VMEM stays small and batches
    # >= 64 get multiple "parallel" grid steps (megacore sharding on v7x).
    bt = min(32, ((B + 7) // 8) * 8)
    B_pad = ((B + bt - 1) // bt) * bt
    nb = B_pad // bt

    # Wrapper-side relayout (free / fused by XLA, replaces the in-kernel permutation
    # matmul of the previous version): rows ordered (tile, h, b-within-tile), width
    # zero-padded 28 -> 128 lanes so the in-kernel stacked-K concat is vreg-aligned.
    x2 = x.reshape(B, 28, 28).astype(jnp.float32)
    if B_pad != B:
        x2 = jnp.pad(x2, ((0, B_pad - B), (0, 0), (0, 0)))
    x2 = x2.reshape(nb, bt, 28, 28).transpose(0, 2, 1, 3).reshape(nb * 28 * bt, 28)
    x2 = jnp.pad(x2, ((0, 0), (0, 128 - 28)))

    def full_spec(arr):
        return pl.BlockSpec(arr.shape, lambda i: (0, 0))

    out_pad, code_pad = pl.pallas_call(
        functools.partial(_autoencoder_kernel, bt=bt),
        out_shape=(jax.ShapeDtypeStruct((B_pad, 896), jnp.float32),
                   jax.ShapeDtypeStruct((B_pad, 128), jnp.float32)),
        grid=(nb,),
        in_specs=[pl.BlockSpec((28 * bt, 128), lambda i: (i, 0))]
                 + [full_spec(prep[k]) for k in _PREP_KEYS],
        out_specs=(pl.BlockSpec((bt, 896), lambda i: (i, 0)),
                   pl.BlockSpec((bt, 128), lambda i: (i, 0))),
        compiler_params=pltpu.CompilerParams(dimension_semantics=("parallel",)),
    )(x2, *(prep[k] for k in _PREP_KEYS))

    out = out_pad[:B, :784].reshape(B, 1, 28, 28)
    code = code_pad[:B, :10]
    return out, code


# ------------------------------- init & reference -------------------------------------

def init_params(key):
    """Deterministic init mimicking PyTorch's default U(-1/sqrt(fan_in), 1/sqrt(fan_in))."""
    def u(k, fan_in, shape):
        bound = 1.0 / float(fan_in) ** 0.5
        return jax.random.uniform(k, shape, jnp.float32, -bound, bound)

    ks = jax.random.split(key, 10)
    return {
        "conv1_w": u(ks[0], 1 * 5 * 5, (6, 1, 5, 5)),
        "conv1_b": u(ks[1], 1 * 5 * 5, (6,)),
        "conv2_w": u(ks[2], 6 * 5 * 5, (14, 6, 5, 5)),
        "conv2_b": u(ks[3], 6 * 5 * 5, (14,)),
        "reduced_w": u(ks[4], 224, (10, 224)),
        "reduced_b": u(ks[5], 224, (10,)),
        "fc1_w": u(ks[6], 10, (100, 10)),
        "fc1_b": u(ks[7], 10, (100,)),
        "fc2_w": u(ks[8], 100, (784, 100)),
        "fc2_b": u(ks[9], 100, (784,)),
    }


def _reference_forward(params, x):
    """Plain JAX/XLA reference of the PyTorch module (for correctness checking)."""
    dn = ("NCHW", "OIHW", "NCHW")
    y = jax.lax.conv_general_dilated(x, params["conv1_w"], (1, 1), "VALID",
                                     dimension_numbers=dn)
    y = jax.nn.relu(y + params["conv1_b"][None, :, None, None])
    y = jax.lax.reduce_window(y, -jnp.inf, jax.lax.max, (1, 1, 2, 2), (1, 1, 2, 2), "VALID")
    y = jax.lax.conv_general_dilated(y, params["conv2_w"], (1, 1), "VALID",
                                     dimension_numbers=dn)
    y = jax.nn.relu(y + params["conv2_b"][None, :, None, None])
    y = jax.lax.reduce_window(y, -jnp.inf, jax.lax.max, (1, 1, 2, 2), (1, 1, 2, 2), "VALID")
    flat = y.reshape(y.shape[0], -1)
    code = flat @ params["reduced_w"].T + params["reduced_b"]
    h = jax.nn.relu(code @ params["fc1_w"].T + params["fc1_b"])
    out = jax.nn.sigmoid(h @ params["fc2_w"].T + params["fc2_b"])
    return out.reshape(x.shape[0], 1, 28, 28), code


# --------------------------------------- main ------------------------------------------

if __name__ == "__main__":
    key = jax.random.PRNGKey(0)
    pkey, xkey = jax.random.split(key)
    params = init_params(pkey)
    x = jax.random.uniform(xkey, (2, 1, 28, 28), jnp.float32)   # MNIST-like input

    prep = prepare_params(params)   # one-time weight re-layout (host side)

    fwd = jax.jit(autoencoder_forward)
    out, code = fwd(prep, x)
    jax.block_until_ready((out, code))

    assert out.shape == (2, 1, 28, 28) and out.dtype == jnp.float32
    assert code.shape == (2, 10) and code.dtype == jnp.float32

    # Correctness vs a plain-JAX reference of the PyTorch module (loose tol: matmul
    # operands are bf16 on the MXU, accumulation is f32).
    ref_out, ref_code = _reference_forward(params, x)
    np.testing.assert_allclose(np.asarray(code), np.asarray(ref_code), rtol=5e-2, atol=5e-2)
    np.testing.assert_allclose(np.asarray(out), np.asarray(ref_out), rtol=5e-2, atol=5e-2)

    print("KERNEL_OK")
</pallas_src>

<mosaic_0001>
module attributes {stable_mosaic.version = 11 : i64} {
  func.func @_autoencoder_kernel(%arg0: i32, %arg1: memref<224x128xf32, #tpu.memory_space<vmem>>, %arg2: memref<640x256xbf16, #tpu.memory_space<vmem>>, %arg3: memref<1x256xf32, #tpu.memory_space<vmem>>, %arg4: memref<640x256xbf16, #tpu.memory_space<vmem>>, %arg5: memref<1x256xf32, #tpu.memory_space<vmem>>, %arg6: memref<512x128xbf16, #tpu.memory_space<vmem>>, %arg7: memref<1x128xf32, #tpu.memory_space<vmem>>, %arg8: memref<128x128xbf16, #tpu.memory_space<vmem>>, %arg9: memref<1x128xf32, #tpu.memory_space<vmem>>, %arg10: memref<128x896xbf16, #tpu.memory_space<vmem>>, %arg11: memref<1x896xf32, #tpu.memory_space<vmem>>, %arg12: memref<8x896xf32, #tpu.memory_space<vmem>>, %arg13: memref<8x128xf32, #tpu.memory_space<vmem>>) attributes {dimension_semantics = [#tpu.dimension_semantics<parallel>], iteration_bounds = array<i64: 1>, scalar_prefetch = 0 : i64, scratch_operands = 0 : i64, tpu.core_type = #tpu.core_type<tc>, window_params = [{transform_indices = @transform_0, window_bounds = array<i64: 224, 128>}, {pipeline_mode = #tpu.pipeline_mode<synchronous>, transform_indices = @transform_1, window_bounds = array<i64: 640, 256>}, {pipeline_mode = #tpu.pipeline_mode<synchronous>, transform_indices = @transform_2, window_bounds = array<i64: 1, 256>}, {pipeline_mode = #tpu.pipeline_mode<synchronous>, transform_indices = @transform_3, window_bounds = array<i64: 640, 256>}, {pipeline_mode = #tpu.pipeline_mode<synchronous>, transform_indices = @transform_4, window_bounds = array<i64: 1, 256>}, {pipeline_mode = #tpu.pipeline_mode<synchronous>, transform_indices = @transform_5, window_bounds = array<i64: 512, 128>}, {pipeline_mode = #tpu.pipeline_mode<synchronous>, transform_indices = @transform_6, window_bounds = array<i64: 1, 128>}, {pipeline_mode = #tpu.pipeline_mode<synchronous>, transform_indices = @transform_7, window_bounds = array<i64: 128, 128>}, {pipeline_mode = #tpu.pipeline_mode<synchronous>, transform_indices = @transform_8, window_bounds = array<i64: 1, 128>}, {pipeline_mode = #tpu.pipeline_mode<synchronous>, transform_indices = @transform_9, window_bounds = array<i64: 128, 896>}, {pipeline_mode = #tpu.pipeline_mode<synchronous>, transform_indices = @transform_10, window_bounds = array<i64: 1, 896>}, {transform_indices = @transform_11, window_bounds = array<i64: 8, 896>}, {transform_indices = @transform_12, window_bounds = array<i64: 8, 128>}]} {
    %c0 = arith.constant 0 : index
    %c0_0 = arith.constant 0 : index
    %0 = vector.load %arg1[%c0, %c0_0] : memref<224x128xf32, #tpu.memory_space<vmem>>, vector<224x128xf32>
    %1 = vector.extract_strided_slice %0 {offsets = [0, 0], sizes = [192, 128], strides = [1, 1]} : vector<224x128xf32> to vector<192x128xf32>
    %2 = vector.extract_strided_slice %0 {offsets = [8, 0], sizes = [192, 128], strides = [1, 1]} : vector<224x128xf32> to vector<192x128xf32>
    %3 = vector.extract_strided_slice %0 {offsets = [16, 0], sizes = [192, 128], strides = [1, 1]} : vector<224x128xf32> to vector<192x128xf32>
    %4 = vector.extract_strided_slice %0 {offsets = [24, 0], sizes = [192, 128], strides = [1, 1]} : vector<224x128xf32> to vector<192x128xf32>
    %5 = vector.extract_strided_slice %0 {offsets = [32, 0], sizes = [192, 128], strides = [1, 1]} : vector<224x128xf32> to vector<192x128xf32>
    %6 = tpu.concatenate %1, %2, %3, %4, %5 in 1 : vector<192x128xf32>, vector<192x128xf32>, vector<192x128xf32>, vector<192x128xf32>, vector<192x128xf32> -> vector<192x640xf32>
    %c0_1 = arith.constant 0 : index
    %c0_2 = arith.constant 0 : index
    %7 = vector.load %arg2[%c0_1, %c0_2] : memref<640x256xbf16, #tpu.memory_space<vmem>>, vector<640x256xbf16>
    %8 = arith.truncf %6 : vector<192x640xf32> to vector<192x640xbf16>
    %cst = arith.constant dense<0.000000e+00> : vector<192x256xf32>
    %9 = tpu.matmul %8, %7, %cst {dimension_numbers = #tpu.dot_dimension_numbers<[1], [0], [0], [1], [0, 0, 1, 1], [], []>} : vector<192x640xbf16>, vector<640x256xbf16>, vector<192x256xf32> -> vector<192x256xf32>
    %c0_3 = arith.constant 0 : index
    %c0_4 = arith.constant 0 : index
    %10 = vector.load %arg3[%c0_3, %c0_4] : memref<1x256xf32, #tpu.memory_space<vmem>>, vector<1x256xf32>
    %11 = vector.broadcast %10 : vector<1x256xf32> to vector<192x256xf32>
    %12 = arith.addf %9, %11 : vector<192x256xf32>
    %cst_5 = arith.constant 0.000000e+00 : f32
    %13 = vector.broadcast %cst_5 : f32 to vector<192x256xf32>
    %14 = arith.maximumf %12, %13 : vector<192x256xf32>
    %15 = vector.extract_strided_slice %14 {offsets = [0, 0], sizes = [192, 128], strides = [1, 1]} : vector<192x256xf32> to vector<192x128xf32>
    %16 = vector.extract_strided_slice %14 {offsets = [0, 128], sizes = [192, 128], strides = [1, 1]} : vector<192x256xf32> to vector<192x128xf32>
    %17 = arith.maximumf %15, %16 : vector<192x128xf32>
    %18 = vector.shape_cast %17 : vector<192x128xf32> to vector<12x16x128xf32>
    %19 = vector.extract_strided_slice %18 {offsets = [0, 0, 0], sizes = [12, 8, 128], strides = [1, 1, 1]} : vector<12x16x128xf32> to vector<12x8x128xf32>
    %20 = vector.extract_strided_slice %18 {offsets = [0, 8, 0], sizes = [12, 8, 128], strides = [1, 1, 1]} : vector<12x16x128xf32> to vector<12x8x128xf32>
    %21 = arith.maximumf %19, %20 : vector<12x8x128xf32>
    %22 = vector.shape_cast %21 : vector<12x8x128xf32> to vector<96x128xf32>
    %23 = vector.extract_strided_slice %22 {offsets = [0, 0], sizes = [64, 128], strides = [1, 1]} : vector<96x128xf32> to vector<64x128xf32>
    %24 = vector.extract_strided_slice %22 {offsets = [8, 0], sizes = [64, 128], strides = [1, 1]} : vector<96x128xf32> to vector<64x128xf32>
    %25 = vector.extract_strided_slice %22 {offsets = [16, 0], sizes = [64, 128], strides = [1, 1]} : vector<96x128xf32> to vector<64x128xf32>
    %26 = vector.extract_strided_slice %22 {offsets = [24, 0], sizes = [64, 128], strides = [1, 1]} : vector<96x128xf32> to vector<64x128xf32>
    %27 = vector.extract_strided_slice %22 {offsets = [32, 0], sizes = [64, 128], strides = [1, 1]} : vector<96x128xf32> to vector<64x128xf32>
    %28 = tpu.concatenate %23, %24, %25, %26, %27 in 1 : vector<64x128xf32>, vector<64x128xf32>, vector<64x128xf32>, vector<64x128xf32>, vector<64x128xf32> -> vector<64x640xf32>
    %c0_6 = arith.constant 0 : index
    %c0_7 = arith.constant 0 : index
    %29 = vector.load %arg4[%c0_6, %c0_7] : memref<640x256xbf16, #tpu.memory_space<vmem>>, vector<640x256xbf16>
    %30 = arith.truncf %28 : vector<64x640xf32> to vector<64x640xbf16>
    %cst_8 = arith.constant dense<0.000000e+00> : vector<64x256xf32>
    %31 = tpu.matmul %30, %29, %cst_8 {dimension_numbers = #tpu.dot_dimension_numbers<[1], [0], [0], [1], [0, 0, 1, 1], [], []>} : vector<64x640xbf16>, vector<640x256xbf16>, vector<64x256xf32> -> vector<64x256xf32>
    %c0_9 = arith.constant 0 : index
    %c0_10 = arith.constant 0 : index
    %32 = vector.load %arg5[%c0_9, %c0_10] : memref<1x256xf32, #tpu.memory_space<vmem>>, vector<1x256xf32>
    %33 = vector.broadcast %32 : vector<1x256xf32> to vector<64x256xf32>
    %34 = arith.addf %31, %33 : vector<64x256xf32>
    %cst_11 = arith.constant 0.000000e+00 : f32
    %35 = vector.broadcast %cst_11 : f32 to vector<64x256xf32>
    %36 = arith.maximumf %34, %35 : vector<64x256xf32>
    %37 = vector.extract_strided_slice %36 {offsets = [0, 0], sizes = [64, 128], strides = [1, 1]} : vector<64x256xf32> to vector<64x128xf32>
    %38 = vector.extract_strided_slice %36 {offsets = [0, 128], sizes = [64, 128], strides = [1, 1]} : vector<64x256xf32> to vector<64x128xf32>
    %39 = arith.maximumf %37, %38 : vector<64x128xf32>
    %40 = vector.shape_cast %39 : vector<64x128xf32> to vector<4x16x128xf32>
    %41 = vector.extract_strided_slice %40 {offsets = [0, 0, 0], sizes = [4, 8, 128], strides = [1, 1, 1]} : vector<4x16x128xf32> to vector<4x8x128xf32>
    %42 = vector.extract_strided_slice %40 {offsets = [0, 8, 0], sizes = [4, 8, 128], strides = [1, 1, 1]} : vector<4x16x128xf32> to vector<4x8x128xf32>
    %43 = arith.maximumf %41, %42 : vector<4x8x128xf32>
    %44 = vector.shape_cast %43 : vector<4x8x128xf32> to vector<32x128xf32>
    %45 = vector.extract_strided_slice %44 {offsets = [0, 0], sizes = [8, 128], strides = [1, 1]} : vector<32x128xf32> to vector<8x128xf32>
    %46 = vector.extract_strided_slice %44 {offsets = [8, 0], sizes = [8, 128], strides = [1, 1]} : vector<32x128xf32> to vector<8x128xf32>
    %47 = vector.extract_strided_slice %44 {offsets = [16, 0], sizes = [8, 128], strides = [1, 1]} : vector<32x128xf32> to vector<8x128xf32>
    %48 = vector.extract_strided_slice %44 {offsets = [24, 0], sizes = [8, 128], strides = [1, 1]} : vector<32x128xf32> to vector<8x128xf32>
    %49 = tpu.concatenate %45, %46, %47, %48 in 1 : vector<8x128xf32>, vector<8x128xf32>, vector<8x128xf32>, vector<8x128xf32> -> vector<8x512xf32>
    %c0_12 = arith.constant 0 : index
    %c0_13 = arith.constant 0 : index
    %50 = vector.load %arg6[%c0_12, %c0_13] : memref<512x128xbf16, #tpu.memory_space<vmem>>, vector<512x128xbf16>
    %51 = arith.truncf %49 : vector<8x512xf32> to vector<8x512xbf16>
    %cst_14 = arith.constant dense<0.000000e+00> : vector<8x128xf32>
    %52 = tpu.matmul %51, %50, %cst_14 {dimension_numbers = #tpu.dot_dimension_numbers<[1], [0], [0], [1], [0, 0, 1, 1], [], []>} : vector<8x512xbf16>, vector<512x128xbf16>, vector<8x128xf32> -> vector<8x128xf32>
    %c0_15 = arith.constant 0 : index
    %c0_16 = arith.constant 0 : index
    %53 = vector.load %arg7[%c0_15, %c0_16] : memref<1x128xf32, #tpu.memory_space<vmem>>, vector<1x128xf32>
    %54 = vector.broadcast %53 : vector<1x128xf32> to vector<8x128xf32>
    %55 = arith.addf %52, %54 : vector<8x128xf32>
    %c0_17 = arith.constant 0 : index
    %c0_18 = arith.constant 0 : index
    %56 = vector.load %arg8[%c0_17, %c0_18] : memref<128x128xbf16, #tpu.memory_space<vmem>>, vector<128x128xbf16>
    %57 = arith.truncf %55 : vector<8x128xf32> to vector<8x128xbf16>
    %cst_19 = arith.constant dense<0.000000e+00> : vector<8x128xf32>
    %58 = tpu.matmul %57, %56, %cst_19 {dimension_numbers = #tpu.dot_dimension_numbers<[1], [0], [0], [1], [0, 0, 1, 1], [], []>} : vector<8x128xbf16>, vector<128x128xbf16>, vector<8x128xf32> -> vector<8x128xf32>
    %c0_20 = arith.constant 0 : index
    %c0_21 = arith.constant 0 : index
    %59 = vector.load %arg9[%c0_20, %c0_21] : memref<1x128xf32, #tpu.memory_space<vmem>>, vector<1x128xf32>
    %60 = vector.broadcast %59 : vector<1x128xf32> to vector<8x128xf32>
    %61 = arith.addf %58, %60 : vector<8x128xf32>
    %cst_22 = arith.constant 0.000000e+00 : f32
    %62 = vector.broadcast %cst_22 : f32 to vector<8x128xf32>
    %63 = arith.maximumf %61, %62 : vector<8x128xf32>
    %c0_23 = arith.constant 0 : index
    %c0_24 = arith.constant 0 : index
    %64 = vector.load %arg10[%c0_23, %c0_24] : memref<128x896xbf16, #tpu.memory_space<vmem>>, vector<128x896xbf16>
    %65 = arith.truncf %63 : vector<8x128xf32> to vector<8x128xbf16>
    %cst_25 = arith.constant dense<0.000000e+00> : vector<8x896xf32>
    %66 = tpu.matmul %65, %64, %cst_25 {dimension_numbers = #tpu.dot_dimension_numbers<[1], [0], [0], [1], [0, 0, 1, 1], [], []>} : vector<8x128xbf16>, vector<128x896xbf16>, vector<8x896xf32> -> vector<8x896xf32>
    %c0_26 = arith.constant 0 : index
    %c0_27 = arith.constant 0 : index
    %67 = vector.load %arg11[%c0_26, %c0_27] : memref<1x896xf32, #tpu.memory_space<vmem>>, vector<1x896xf32>
    %68 = vector.broadcast %67 : vector<1x896xf32> to vector<8x896xf32>
    %69 = arith.addf %66, %68 : vector<8x896xf32>
    %cst_28 = arith.constant 5.000000e-01 : f32
    %70 = vector.broadcast %cst_28 : f32 to vector<8x896xf32>
    %71 = arith.mulf %70, %69 : vector<8x896xf32>
    %72 = math.tanh %71 : vector<8x896xf32>
    %cst_29 = arith.constant 1.000000e+00 : f32
    %73 = vector.broadcast %cst_29 : f32 to vector<8x896xf32>
    %74 = arith.addf %72, %73 : vector<8x896xf32>
    %cst_30 = arith.constant 5.000000e-01 : f32
    %75 = vector.broadcast %cst_30 : f32 to vector<8x896xf32>
    %76 = arith.mulf %75, %74 : vector<8x896xf32>
    %c0_31 = arith.constant 0 : index
    %c0_32 = arith.constant 0 : index
    %77 = vector.load %arg12[%c0_31, %c0_32] : memref<8x896xf32, #tpu.memory_space<vmem>>, vector<8x896xf32>
    tpu.vector_store %arg12[%c0_31, %c0_32], %76 {strides = array<i32>} : memref<8x896xf32, #tpu.memory_space<vmem>>, vector<8x896xf32>,
    %c0_33 = arith.constant 0 : index
    %c0_34 = arith.constant 0 : index
    %78 = vector.load %arg13[%c0_33, %c0_34] : memref<8x128xf32, #tpu.memory_space<vmem>>, vector<8x128xf32>
    tpu.vector_store %arg13[%c0_33, %c0_34], %55 {strides = array<i32>} : memref<8x128xf32, #tpu.memory_space<vmem>>, vector<8x128xf32>,
    return
  }
  func.func @transform_0(%arg0: i32) -> (i32, i32) {
    %c0_i32 = arith.constant 0 : i32
    %c0_i32_0 = arith.constant 0 : i32
    return %arg0, %c0_i32 : i32, i32
  }
  func.func @transform_1(%arg0: i32) -> (i32, i32) {
    %c0_i32 = arith.constant 0 : i32
    %c0_i32_0 = arith.constant 0 : i32
    %c0_i32_1 = arith.constant 0 : i32
    return %c0_i32, %c0_i32_0 : i32, i32
  }
  func.func @transform_2(%arg0: i32) -> (i32, i32) {
    %c0_i32 = arith.constant 0 : i32
    %c0_i32_0 = arith.constant 0 : i32
    %c0_i32_1 = arith.constant 0 : i32
    return %c0_i32, %c0_i32_0 : i32, i32
  }
  func.func @transform_3(%arg0: i32) -> (i32, i32) {
    %c0_i32 = arith.constant 0 : i32
    %c0_i32_0 = arith.constant 0 : i32
    %c0_i32_1 = arith.constant 0 : i32
    return %c0_i32, %c0_i32_0 : i32, i32
  }
  func.func @transform_4(%arg0: i32) -> (i32, i32) {
    %c0_i32 = arith.constant 0 : i32
    %c0_i32_0 = arith.constant 0 : i32
    %c0_i32_1 = arith.constant 0 : i32
    return %c0_i32, %c0_i32_0 : i32, i32
  }
  func.func @transform_5(%arg0: i32) -> (i32, i32) {
    %c0_i32 = arith.constant 0 : i32
    %c0_i32_0 = arith.constant 0 : i32
    %c0_i32_1 = arith.constant 0 : i32
    return %c0_i32, %c0_i32_0 : i32, i32
  }
  func.func @transform_6(%arg0: i32) -> (i32, i32) {
    %c0_i32 = arith.constant 0 : i32
    %c0_i32_0 = arith.constant 0 : i32
    %c0_i32_1 = arith.constant 0 : i32
    return %c0_i32, %c0_i32_0 : i32, i32
  }
  func.func @transform_7(%arg0: i32) -> (i32, i32) {
    %c0_i32 = arith.constant 0 : i32
    %c0_i32_0 = arith.constant 0 : i32
    %c0_i32_1 = arith.constant 0 : i32
    return %c0_i32, %c0_i32_0 : i32, i32
  }
  func.func @transform_8(%arg0: i32) -> (i32, i32) {
    %c0_i32 = arith.constant 0 : i32
    %c0_i32_0 = arith.constant 0 : i32
    %c0_i32_1 = arith.constant 0 : i32
    return %c0_i32, %c0_i32_0 : i32, i32
  }
  func.func @transform_9(%arg0: i32) -> (i32, i32) {
    %c0_i32 = arith.constant 0 : i32
    %c0_i32_0 = arith.constant 0 : i32
    %c0_i32_1 = arith.constant 0 : i32
    return %c0_i32, %c0_i32_0 : i32, i32
  }
  func.func @transform_10(%arg0: i32) -> (i32, i32) {
    %c0_i32 = arith.constant 0 : i32
    %c0_i32_0 = arith.constant 0 : i32
    %c0_i32_1 = arith.constant 0 : i32
    return %c0_i32, %c0_i32_0 : i32, i32
  }
  func.func @transform_11(%arg0: i32) -> (i32, i32) {
    %c0_i32 = arith.constant 0 : i32
    %c0_i32_0 = arith.constant 0 : i32
    return %arg0, %c0_i32 : i32, i32
  }
  func.func @transform_12(%arg0: i32) -> (i32, i32) {
    %c0_i32 = arith.constant 0 : i32
    %c0_i32_0 = arith.constant 0 : i32
    return %arg0, %c0_i32 : i32, i32
  }
}

</mosaic_0001>

<bundles_post_ra>
// kernel: autoencoder_forward.1
= control target key start
LH: loop header
LB: loop body
LE: loop exit
PB: predicated region body
PF: predicated region fallthrough
CT: control target
= control target key end

     0   :  { %18 = vsyncpa [#allocation3], 0  ;;  %s5945_s0 = inlined_call_operand.vmem [shape: f32[224,128], index: 0, kind: input, shape index: {}]   ;;  %s5946_s1 = inlined_call_operand.vmem [shape: bf16[640,256], index: 1, kind: input, shape index: {}]   ;;  %s5947_s2 = inlined_call_operand.vmem [shape: f32[1,256], index: 2, kind: input, shape index: {}]   ;;  %s5948_s3 = inlined_call_operand.hbm [shape: bf16[640,256], index: 3, kind: input, shape index: {}]   ;;  %s5949_s4 = inlined_call_operand.vmem [shape: f32[1,256], index: 4, kind: input, shape index: {}]   ;;  %s5950_s5 = inlined_call_operand.hbm [shape: bf16[512,128], index: 5, kind: input, shape index: {}]   ;;  %s5951_s6 = inlined_call_operand.vmem [shape: f32[1,128], index: 6, kind: input, shape index: {}]   ;;  %s5952_s7 = inlined_call_operand.vmem [shape: bf16[128,128], index: 7, kind: input, shape index: {}]   ;;  %s5953_s8 = inlined_call_operand.vmem [shape: f32[1,128], index: 8, kind: input, shape index: {}]   ;;  %s5954_s9 = inlined_call_operand.hbm [shape: bf16[128,896], index: 9, kind: input, shape index: {}]   ;;  %s5955_s10 = inlined_call_operand.vmem [shape: f32[1,896], index: 10, kind: input, shape index: {}]   ;;  %s5956_s11 = inlined_call_operand.vmem [shape: f32[8,896], index: 11, kind: output, shape index: {0}]   ;;  %s5957_s12 = inlined_call_operand.vmem [shape: f32[8,128], index: 12, kind: output, shape index: {1}]  }
   0x1   :  { %19 = vsyncpa [#allocation5], 0  ;;  %s45_s23 = sshll.u32 %s5950_s5, 4  ;;  %s4504_s24 = smov [#allocation4]   ;;  %s46_s23 = int_to_ptr.hbm [resolvable:$true] %s45_s23 }
   0x2   :  { %s47_s25 = sshll.u32 %s4504_s24, 4  ;;  %s30_s28 = sshll.u32 %s5948_s3, 4  ;;  %s48_s25 = int_to_ptr.vmem [resolvable:$true] %s47_s25  ;;  %s31_s28 = int_to_ptr.hbm [resolvable:$true] %s30_s28 }
   0x3   :  { %s4505_s29 = smov 64   ;;  %s4506_s30 = smov 4  }
   0x4   :  { %53 = dma.hbm_to_vmem [thread:$0]  %s46_s23, 4096, %s48_s25, [#allocation5], %s4505_s29, %s4505_s29, %s4506_s30  }
   0x5   :  { %s4507_s13 = smov [#allocation2]   ;;  %s4508_s15 = smov 128  }
   0x6   :  { %s32_s14 = sshll.u32 %s4507_s13, 4  ;;  %s4509_s16 = smov 8   ;;  %s33_s14 = int_to_ptr.vmem [resolvable:$true] %s32_s14 }
   0x7   :  { %38 = dma.hbm_to_vmem [thread:$0]  %s31_s28, 10240, %s33_s14, [#allocation3], %s4508_s15, %s4508_s15, %s4509_s16  }
   0x8   :  { %s64_s18 = sshll.u32 %s5954_s9, 4  ;;  %s4510_s19 = smov [#allocation6]   ;;  %s65_s18 = int_to_ptr.hbm [resolvable:$true] %s64_s18 }
   0x9   :  { %s66_s20 = sshll.u32 %s4510_s19, 4  ;;  %s4511_s21 = smov 448   ;;  %s67_s20 = int_to_ptr.vmem [resolvable:$true] %s66_s20 }
   0xa   :  { %s4512_s3 = smov 28  }
   0xb   :  { %72 = dma.hbm_to_vmem [thread:$0]  %s65_s18, 7168, %s67_s20, [#allocation5], %s4511_s21, %s4511_s21, %s4512_s3  }
   0xc   :  { %4500 = dma.done.wait [#allocation3], 10240  }
   0xd   :  { %4501 = vsyncadd [#allocation3], 4294957056 }
   0xe   :  { %4502 = dma.done.wait [#allocation5], 11264  }
   0xf   :  { %4503 = vsyncadd [#allocation5], 4294956032  ;;  %v3180_v0 = vld [vmem:[%s5946_s1 + $0x70] sm:$0xf]  ;;  %v4161_v1 = vld [vmem:[%s5946_s1 + $0x74] sm:$0xf0] }
  0x10   :  { %v3244_v2 = vld [vmem:[%s5946_s1 + $0xf0] sm:$0xf]  ;;  %v3181_v3 = vor.u32 %v4161_v1, %v3180_v0  ;;  %v4177_v4 = vld [vmem:[%s5946_s1 + $0xf4] sm:$0xf0]  ;;  %v3172_v11 = vld [vmem:[%s5946_s1 + $0x60] sm:$0xf] }
  0x11   :  { %v3308_v5 = vld [vmem:[%s5946_s1 + $0x170] sm:$0xf]  ;;  %v4193_v6 = vld [vmem:[%s5946_s1 + $0x174] sm:$0xf0]  ;;  %v3245_v7 = vor.u32 %v4177_v4, %v3244_v2  ;;  %v4159_v13 = vld [vmem:[%s5946_s1 + $0x64] sm:$0xf0] }
  0x12   :  { %v3309_v8 = vor.u32 %v4193_v6, %v3308_v5  ;;  %v3372_v9 = vld [vmem:[%s5946_s1 + $0x1f0] sm:$0xf]  ;;  %v4209_v10 = vld [vmem:[%s5946_s1 + $0x1f4] sm:$0xf0]  ;;  %628 = vmatpush.bf16.msra.mxu0 %v3181_v3  ;;  %v3236_v14 = vld [vmem:[%s5946_s1 + $0xe0] sm:$0xf]  ;;  %v3173_v16 = vor.u32 %v4159_v13, %v3172_v11 }
  0x13   :  { %v3373_v12 = vor.u32 %v4209_v10, %v3372_v9  ;;  %v4175_v15 = vld [vmem:[%s5946_s1 + $0xe4] sm:$0xf0]  ;;  %697 = vmatpush.bf16.msra.mxu1 %v3245_v7  ;;  %v3300_v18 = vld [vmem:[%s5946_s1 + $0x160] sm:$0xf]  ;;  %v3164_v23 = vld [vmem:[%s5946_s1 + $0x50] sm:$0xf] }
  0x14   :  { %766 = vmatpush.bf16.msra.mxu2 %v3309_v8  ;;  %v3237_v17 = vor.u32 %v4175_v15, %v3236_v14  ;;  %v4191_v19 = vld [vmem:[%s5946_s1 + $0x164] sm:$0xf0]  ;;  %v3364_v20 = vld [vmem:[%s5946_s1 + $0x1e0] sm:$0xf]  ;;  %v4157_v24 = vld [vmem:[%s5946_s1 + $0x54] sm:$0xf0] }
  0x15   :  { %835 = vmatpush.bf16.msra.mxu3 %v3373_v12  ;;  %v3301_v21 = vor.u32 %v4191_v19, %v3300_v18  ;;  %v4207_v22 = vld [vmem:[%s5946_s1 + $0x1e4] sm:$0xf0]  ;;  %v3228_v26 = vld [vmem:[%s5946_s1 + $0xd0] sm:$0xf]  ;;  %v4173_v27 = vld [vmem:[%s5946_s1 + $0xd4] sm:$0xf0]  ;;  %v3165_v29 = vor.u32 %v4157_v24, %v3164_v23 }
  0x16   :  { %v3365_v25 = vor.u32 %v4207_v22, %v3364_v20  ;;  %v3292_v28 = vld [vmem:[%s5946_s1 + $0x150] sm:$0xf]  ;;  %629 = vmatpush.bf16.msra.mxu0 %v3173_v16  ;;  %v4189_v30 = vld [vmem:[%s5946_s1 + $0x154] sm:$0xf0]  ;;  %v3229_v33 = vor.u32 %v4173_v27, %v3228_v26  ;;  %v3156_v35 = vld [vmem:[%s5946_s1 + $0x40] sm:$0xf] }
  0x17   :  { %v3356_v31 = vld [vmem:[%s5946_s1 + $0x1d0] sm:$0xf]  ;;  %v4205_v32 = vld [vmem:[%s5946_s1 + $0x1d4] sm:$0xf0]  ;;  %698 = vmatpush.bf16.msra.mxu1 %v3237_v17  ;;  %v3293_v34 = vor.u32 %v4189_v30, %v3292_v28  ;;  %v4155_v36 = vld [vmem:[%s5946_s1 + $0x44] sm:$0xf0] }
  0x18   :  { %767 = vmatpush.bf16.msra.mxu2 %v3301_v21  ;;  %v3220_v37 = vld [vmem:[%s5946_s1 + $0xc0] sm:$0xf]  ;;  %v3357_v38 = vor.u32 %v4205_v32, %v3356_v31  ;;  %v4171_v39 = vld [vmem:[%s5946_s1 + $0xc4] sm:$0xf0]  ;;  %v3157_v44 = vor.u32 %v4155_v36, %v3156_v35  ;;  %v3148_v47 = vld [vmem:[%s5946_s1 + $0x30] sm:$0xf] }
  0x19   :  { %836 = vmatpush.bf16.msra.mxu3 %v3365_v25  ;;  %v3284_v40 = vld [vmem:[%s5946_s1 + $0x140] sm:$0xf]  ;;  %v4187_v41 = vld [vmem:[%s5946_s1 + $0x144] sm:$0xf0]  ;;  %v3221_v45 = vor.u32 %v4171_v39, %v3220_v37  ;;  %v4153_v48 = vld [vmem:[%s5946_s1 + $0x34] sm:$0xf0] }
  0x1a   :  { %v3348_v42 = vld [vmem:[%s5946_s1 + $0x1c0] sm:$0xf]  ;;  %v4203_v43 = vld [vmem:[%s5946_s1 + $0x1c4] sm:$0xf0]  ;;  %630 = vmatpush.bf16.msra.mxu0 %v3165_v29  ;;  %v3285_v46 = vor.u32 %v4187_v41, %v3284_v40  ;;  %v3212_v49 = vld [vmem:[%s5946_s1 + $0xb0] sm:$0xf]  ;;  %v3149_v56 = vor.u32 %v4153_v48, %v3148_v47 }
  0x1b   :  { %699 = vmatpush.bf16.msra.mxu1 %v3229_v33  ;;  %v3349_v50 = vor.u32 %v4203_v43, %v3348_v42  ;;  %v4169_v51 = vld [vmem:[%s5946_s1 + $0xb4] sm:$0xf0]  ;;  %v3276_v52 = vld [vmem:[%s5946_s1 + $0x130] sm:$0xf]  ;;  %v3140_v59 = vld [vmem:[%s5946_s1 + $0x20] sm:$0xf] }
  0x1c   :  { %768 = vmatpush.bf16.msra.mxu2 %v3293_v34  ;;  %v4185_v53 = vld [vmem:[%s5946_s1 + $0x134] sm:$0xf0]  ;;  %v3340_v54 = vld [vmem:[%s5946_s1 + $0x1b0] sm:$0xf]  ;;  %v3213_v57 = vor.u32 %v4169_v51, %v3212_v49  ;;  %v4151_v60 = vld [vmem:[%s5946_s1 + $0x24] sm:$0xf0] }
  0x1d   :  { %837 = vmatpush.bf16.msra.mxu3 %v3357_v38  ;;  %v4201_v55 = vld [vmem:[%s5946_s1 + $0x1b4] sm:$0xf0]  ;;  %v3277_v58 = vor.u32 %v4185_v53, %v3276_v52  ;;  %v3204_v61 = vld [vmem:[%s5946_s1 + $0xa0] sm:$0xf]  ;;  %v4167_v63 = vld [vmem:[%s5946_s1 + $0xa4] sm:$0xf0]  ;;  %v3141_v4 = vor.u32 %v4151_v60, %v3140_v59 }
  0x1e   :  { %631 = vmatpush.bf16.msra.mxu0 %v3157_v44  ;;  %v3341_v62 = vor.u32 %v4201_v55, %v3340_v54  ;;  %v3268_v0 = vld [vmem:[%s5946_s1 + $0x120] sm:$0xf]  ;;  %v4183_v1 = vld [vmem:[%s5946_s1 + $0x124] sm:$0xf0]  ;;  %v3205_v5 = vor.u32 %v4167_v63, %v3204_v61  ;;  %v3132_v7 = vld [vmem:[%s5946_s1 + $0x10] sm:$0xf] }
  0x1f   :  { %700 = vmatpush.bf16.msra.mxu1 %v3221_v45  ;;  %v3332_v2 = vld [vmem:[%s5946_s1 + $0x1a0] sm:$0xf]  ;;  %v4199_v3 = vld [vmem:[%s5946_s1 + $0x1a4] sm:$0xf0]  ;;  %v3269_v6 = vor.u32 %v4183_v1, %v3268_v0  ;;  %v4149_v8 = vld [vmem:[%s5946_s1 + $0x14] sm:$0xf0] }
  0x20   :  { %769 = vmatpush.bf16.msra.mxu2 %v3285_v46  ;;  %v3196_v9 = vld [vmem:[%s5946_s1 + $0x90] sm:$0xf]  ;;  %v3333_v10 = vor.u32 %v4199_v3, %v3332_v2  ;;  %v4165_v11 = vld [vmem:[%s5946_s1 + $0x94] sm:$0xf0]  ;;  %v3124_v16 = vld [vmem:[%s5946_s1] sm:$0xf]  ;;  %v3133_v17 = vor.u32 %v4149_v8, %v3132_v7 }
  0x21   :  { %838 = vmatpush.bf16.msra.mxu3 %v3349_v50  ;;  %v3260_v12 = vld [vmem:[%s5946_s1 + $0x110] sm:$0xf]  ;;  %v4181_v13 = vld [vmem:[%s5946_s1 + $0x114] sm:$0xf0]  ;;  %v4147_v18 = vld [vmem:[%s5946_s1 + $0x4] sm:$0xf0]  ;;  %v3197_v21 = vor.u32 %v4165_v11, %v3196_v9 }
  0x22   :  { %632 = vmatpush.bf16.msra.mxu0 %v3149_v56  ;;  %v3324_v14 = vld [vmem:[%s5946_s1 + $0x190] sm:$0xf]  ;;  %v4197_v15 = vld [vmem:[%s5946_s1 + $0x194] sm:$0xf0]  ;;  %v3188_v19 = vld [vmem:[%s5946_s1 + $0x80] sm:$0xf]  ;;  %v3261_v22 = vor.u32 %v4181_v13, %v3260_v12  ;;  %v3125_v32 = vor.u32 %v4147_v18, %v3124_v16 }
  0x23   :  { %701 = vmatpush.bf16.msra.mxu1 %v3213_v57  ;;  %v4163_v20 = vld [vmem:[%s5946_s1 + $0x84] sm:$0xf0]  ;;  %v3252_v23 = vld [vmem:[%s5946_s1 + $0x100] sm:$0xf]  ;;  %v3325_v26 = vor.u32 %v4197_v15, %v3324_v14  ;;  %v3436_v30 = vld [vmem:[%s5946_s1 + $0x270] sm:$0xf] }
  0x24   :  { %770 = vmatpush.bf16.msra.mxu2 %v3277_v58  ;;  %v4179_v24 = vld [vmem:[%s5946_s1 + $0x104] sm:$0xf0]  ;;  %v3316_v25 = vld [vmem:[%s5946_s1 + $0x180] sm:$0xf]  ;;  %v4225_v31 = vld [vmem:[%s5946_s1 + $0x274] sm:$0xf0]  ;;  %v3189_v35 = vor.u32 %v4163_v20, %v3188_v19 }
  0x25   :  { %839 = vmatpush.bf16.msra.mxu3 %v3341_v62  ;;  %v4195_v27 = vld [vmem:[%s5946_s1 + $0x184] sm:$0xf0]  ;;  %v87_v28 = vld [vmem:[%s5945_s0] sm:$0xff]  ;;  %v4160_v33 = vld [vmem:[%s5946_s1 + $0x74] sm:$0xf]  ;;  %v3253_v36 = vor.u32 %v4179_v24, %v3252_v23  ;;  %v3437_v41 = vor.u32 %v4225_v31, %v3436_v30 }
  0x26   :  { %633 = vmatpush.bf16.msra.mxu0 %v3141_v4  ;;  %v88_v29 = vld [vmem:[%s5945_s0 + $0x8] sm:$0xff]  ;;  %v3182_v34 = vld [vmem:[%s5946_s1 + $0x78] sm:$0xf0]  ;;  %v89_v37 = vld [vmem:[%s5945_s0 + $0x10] sm:$0xff]  ;;  %v3317_v39 = vor.u32 %v4195_v27, %v3316_v25 }
  0x27   :  { %702 = vmatpush.bf16.msra.mxu1 %v3205_v5  ;;  %v90_v38 = vld [vmem:[%s5945_s0 + $0x18] sm:$0xff]  ;;  %v91_v40 = vld [vmem:[%s5945_s0 + $0x20] sm:$0xff]  ;;  %v4806_v42 = vpack.c.bf16 %v88_v29, %v87_v28  ;;  %v3185_v43 = vor.u32 %v4160_v33, %v3182_v34  ;;  %v4223_v45 = vld [vmem:[%s5946_s1 + $0x264] sm:$0xf0]  ;;  %v4814_v46 = vpack.c.bf16 %v89_v37, %v88_v29 }
  0x28   :  { %771 = vmatpush.bf16.msra.mxu2 %v3269_v6  ;;  %v3428_v44 = vld [vmem:[%s5946_s1 + $0x260] sm:$0xf]  ;;  %v4816_v47 = vpack.c.bf16 %v90_v38, %v89_v37  ;;  %v4158_v48 = vld [vmem:[%s5946_s1 + $0x64] sm:$0xf]  ;;  %v3174_v49 = vld [vmem:[%s5946_s1 + $0x68] sm:$0xf0]  ;;  %v4824_v50 = vpack.c.bf16 %v91_v40, %v90_v38 }
  0x29   :  { %840 = vmatpush.bf16.msra.mxu3 %v3333_v10  ;;  %v3429_v51 = vor.u32 %v4223_v45, %v3428_v44  ;;  %v3177_v52 = vor.u32 %v4158_v48, %v3174_v49  ;;  %v92_v53 = vld [vmem:[%s5945_s0 + $0x28] sm:$0xff]  ;;  %v93_v54 = vld [vmem:[%s5945_s0 + $0x30] sm:$0xff]  ;;  %v4221_v58 = vld [vmem:[%s5946_s1 + $0x254] sm:$0xf0] }
  0x2a   :  { %634 = vmatpush.bf16.msra.mxu0 %v3133_v17  ;;  %v4836_v55 = vpack.c.bf16 %v92_v53, %v91_v40  ;;  %v4838_v56 = vpack.c.bf16 %v93_v54, %v92_v53  ;;  %v3420_v57 = vld [vmem:[%s5946_s1 + $0x250] sm:$0xf]  ;;  %v4156_v60 = vld [vmem:[%s5946_s1 + $0x54] sm:$0xf]  ;;  %v3166_v61 = vld [vmem:[%s5946_s1 + $0x58] sm:$0xf0] }
  0x2b   :  { %703 = vmatpush.bf16.msra.mxu1 %v3197_v21  ;;  %v3421_v59 = vor.u32 %v4221_v58, %v3420_v57  ;;  %v3169_v62 = vor.u32 %v4156_v60, %v3166_v61  ;;  %v94_v63 = vld [vmem:[%s5945_s0 + $0x38] sm:$0xff]  ;;  %v95_v0 = vld [vmem:[%s5945_s0 + $0x40] sm:$0xff]  ;;  %v4219_v4 = vld [vmem:[%s5946_s1 + $0x244] sm:$0xf0] }
  0x2c   :  { %772 = vmatpush.bf16.msra.mxu2 %v3261_v22  ;;  %v4862_v1 = vpack.c.bf16 %v94_v63, %v93_v54  ;;  %v4864_v2 = vpack.c.bf16 %v95_v0, %v94_v63  ;;  %v3412_v3 = vld [vmem:[%s5946_s1 + $0x240] sm:$0xf]  ;;  %v4154_v5 = vld [vmem:[%s5946_s1 + $0x44] sm:$0xf]  ;;  %v3158_v7 = vld [vmem:[%s5946_s1 + $0x48] sm:$0xf0] }
  0x2d   :  { %841 = vmatpush.bf16.msra.mxu3 %v3325_v26  ;;  %v3413_v6 = vor.u32 %v4219_v4, %v3412_v3  ;;  %v3161_v8 = vor.u32 %v4154_v5, %v3158_v7  ;;  %v96_v9 = vld [vmem:[%s5945_s0 + $0x48] sm:$0xff]  ;;  %v97_v10 = vld [vmem:[%s5945_s0 + $0x50] sm:$0xff]  ;;  %v98_v13 = vld [vmem:[%s5945_s0 + $0x58] sm:$0xff] }
  0x2e   :  { %635 = vmatpush.bf16.msra.mxu0 %v3125_v32  ;;  %v4888_v11 = vpack.c.bf16 %v96_v9, %v95_v0  ;;  %v4890_v12 = vpack.c.bf16 %v97_v10, %v96_v9  ;;  %v99_v14 = vld [vmem:[%s5945_s0 + $0x60] sm:$0xff]  ;;  %v4902_v15 = vpack.c.bf16 %v98_v13, %v97_v10  ;;  %v3404_v17 = vld [vmem:[%s5946_s1 + $0x230] sm:$0xf]  ;;  %v4217_v18 = vld [vmem:[%s5946_s1 + $0x234] sm:$0xf0] }
  0x2f   :  { %704 = vmatpush.bf16.msra.mxu1 %v3189_v35  ;;  %v4904_v16 = vpack.c.bf16 %v99_v14, %v98_v13  ;;  %v3405_v19 = vor.u32 %v4217_v18, %v3404_v17  ;;  %v4152_v20 = vld [vmem:[%s5946_s1 + $0x34] sm:$0xf]  ;;  %v3150_v21 = vld [vmem:[%s5946_s1 + $0x38] sm:$0xf0]  ;;  %v100_v23 = vld [vmem:[%s5945_s0 + $0x68] sm:$0xff] }
  0x30   :  { %773 = vmatpush.bf16.msra.mxu2 %v3253_v36  ;;  %v3153_v22 = vor.u32 %v4152_v20, %v3150_v21  ;;  %v101_v24 = vld [vmem:[%s5945_s0 + $0x70] sm:$0xff]  ;;  %v4928_v25 = vpack.c.bf16 %v100_v23, %v99_v14  ;;  %v3396_v27 = vld [vmem:[%s5946_s1 + $0x220] sm:$0xf]  ;;  %v4215_v28 = vld [vmem:[%s5946_s1 + $0x224] sm:$0xf0] }
  0x31   :  { %842 = vmatpush.bf16.msra.mxu3 %v3317_v39  ;;  %636 = vmatmul.bf16.vlgmr.msra.gmra.mxu0 %v4806_v42  ;;  %v4930_v26 = vpack.c.bf16 %v101_v24, %v100_v23  ;;  %v4150_v29 = vld [vmem:[%s5946_s1 + $0x24] sm:$0xf]  ;;  %v3397_v30 = vor.u32 %v4215_v28, %v3396_v27  ;;  %v3142_v31 = vld [vmem:[%s5946_s1 + $0x28] sm:$0xf0]  ;;  %v102_v33 = vld [vmem:[%s5945_s0 + $0x78] sm:$0xff] }
  0x32   :  { %904 = vmatpush.bf16.msrb.mxu0 %v3437_v41  ;;  %705 = vmatmul.bf16.vlgmr.msra.gmra.mxu1 %v4814_v46  ;;  %v3145_v32 = vor.u32 %v4150_v29, %v3142_v31  ;;  %v103_v34 = vld [vmem:[%s5945_s0 + $0x80] sm:$0xff]  ;;  %v4954_v35 = vpack.c.bf16 %v102_v33, %v101_v24  ;;  %v104_v37 = vld [vmem:[%s5945_s0 + $0x88] sm:$0xff]  ;;  %v105_v38 = vld [vmem:[%s5945_s0 + $0x90] sm:$0xff] }
  0x33   :  { %973 = vmatpush.bf16.msrb.mxu1 %v3185_v43  ;;  %774 = vmatmul.bf16.vlgmr.msra.gmra.mxu2 %v4816_v47  ;;  %v4956_v36 = vpack.c.bf16 %v103_v34, %v102_v33  ;;  %v4968_v39 = vpack.c.bf16 %v104_v37, %v103_v34  ;;  %v4970_v40 = vpack.c.bf16 %v105_v38, %v104_v37  ;;  %v3388_v41 = vld [vmem:[%s5946_s1 + $0x210] sm:$0xf]  ;;  %v4213_v43 = vld [vmem:[%s5946_s1 + $0x214] sm:$0xf0]  ;;  %v4148_v45 = vld [vmem:[%s5946_s1 + $0x14] sm:$0xf] }
  0x34   :  { %843 = vmatmul.bf16.vlgmr.msra.gmra.mxu3 %v4824_v50  ;;  %v3389_v44 = vor.u32 %v4213_v43, %v3388_v41  ;;  %v3134_v48 = vld [vmem:[%s5946_s1 + $0x18] sm:$0xf0]  ;;  %v107_v54 = vld [vmem:[%s5945_s0 + $0xa0] sm:$0xff]  ;;  %v4192_v4 = vld [vmem:[%s5946_s1 + $0x174] sm:$0xf] }
  0x35   :  { %v3137_v49 = vor.u32 %v4148_v45, %v3134_v48  ;;  %v3246_v63 = vld [vmem:[%s5946_s1 + $0xf8] sm:$0xf0]  ;;  %v4174_v7 = vld [vmem:[%s5946_s1 + $0xe4] sm:$0xf]  ;;  %v4172_v24 = vld [vmem:[%s5946_s1 + $0xd4] sm:$0xf] }
  0x36   :  { %905 = vmatpush.bf16.msrb.mxu0 %v3429_v51  ;;  %v222_v51 = vld [vmem:[%s5947_s2] sm:$0x3]  ;;  %v3310_v5 = vld [vmem:[%s5946_s1 + $0x178] sm:$0xf0]  ;;  %v4190_v18 = vld [vmem:[%s5946_s1 + $0x164] sm:$0xf] }
  0x37   :  { %974 = vmatpush.bf16.msrb.mxu1 %v3177_v52  ;;  %v106_v52 = vld [vmem:[%s5945_s0 + $0x98] sm:$0xff]  ;;  %v4994_v53 = vperm.slane %v222_v51, 0  ;;  %v3380_v29 = vld [vmem:[%s5946_s1 + $0x200] sm:$0xf]  ;;  %v3126_v34 = vld [vmem:[%s5946_s1 + $0x8] sm:$0xf0] }
  0x38   :  { %v4999_v57 = vpack.c.bf16 %v106_v52, %v105_v38  ;;  %v5002_v61 = vpack.c.bf16 %v107_v54, %v106_v52  ;;  %v3230_v27 = vld [vmem:[%s5946_s1 + $0xd8] sm:$0xf0]  ;;  %v4188_v37 = vld [vmem:[%s5946_s1 + $0x154] sm:$0xf]  ;;  %v108_v41 = vld [vmem:[%s5945_s0 + $0xa8] sm:$0xff] }
  0x39   :  { %v3233_v31 = vor.u32 %v4172_v24, %v3230_v27  ;;  %v3294_v38 = vld [vmem:[%s5946_s1 + $0x158] sm:$0xf0]  ;;  %v5065_v45 = vld [vmem:[%s5945_s0 + $0xb0] sm:$0xff]  ;;  %v4170_v48 = vld [vmem:[%s5946_s1 + $0xc4] sm:$0xf] }
  0x3a   :  { %906 = vmatpush.bf16.msrb.mxu0 %v3421_v59 }
  0x3b   :  { %975 = vmatpush.bf16.msrb.mxu1 %v3169_v62  ;;  %v4176_v62 = vld [vmem:[%s5946_s1 + $0xf4] sm:$0xf] }
  0x3c   :  { %v3249_v3 = vor.u32 %v4176_v62, %v3246_v63  ;;  %v4186_v63 = vld [vmem:[%s5946_s1 + $0x144] sm:$0xf] }
  0x3e   :  { %907 = vmatpush.bf16.msrb.mxu0 %v3413_v6  ;;  %1042 = vmatpush.bf16.msrb.mxu2 %v3249_v3  ;;  %v3313_v6 = vor.u32 %v4192_v4, %v3310_v5  ;;  %v5083_v5 = vpack.c.bf16 %v5065_v45, %v108_v41 }
  0x3f   :  { %976 = vmatpush.bf16.msrb.mxu1 %v3161_v8  ;;  %v3238_v8 = vld [vmem:[%s5946_s1 + $0xe8] sm:$0xf0] }
  0x40   :  { %1111 = vmatpush.bf16.msrb.mxu3 %v3313_v6  ;;  %v3241_v10 = vor.u32 %v4174_v7, %v3238_v8  ;;  %v4168_v7 = vld [vmem:[%s5946_s1 + $0xb4] sm:$0xf]  ;;  %v3214_v8 = vld [vmem:[%s5946_s1 + $0xb8] sm:$0xf0] }
  0x41   :  { %641 = vmatmul.bf16.gmra.mxu0 %v4816_v47 }
  0x42   :  { %710 = vmatmul.bf16.gmra.mxu1 %v4824_v50  ;;  %908 = vmatpush.bf16.msrb.mxu0 %v3405_v19  ;;  %v3302_v19 = vld [vmem:[%s5946_s1 + $0x168] sm:$0xf0] }
  0x43   :  { %779 = vmatmul.bf16.gmra.mxu2 %v4836_v55  ;;  %977 = vmatpush.bf16.msrb.mxu1 %v3153_v22  ;;  %v3305_v22 = vor.u32 %v4190_v18, %v3302_v19  ;;  %v4166_v18 = vld [vmem:[%s5946_s1 + $0xa4] sm:$0xf]  ;;  %v3206_v19 = vld [vmem:[%s5946_s1 + $0xa8] sm:$0xf0] }
  0x44   :  { %848 = vmatmul.bf16.gmra.mxu3 %v4838_v56  ;;  %1043 = vmatpush.bf16.msrb.mxu2 %v3241_v10  ;;  %v3217_v10 = vor.u32 %v4168_v7, %v3214_v8  ;;  %v3254_v7 = vld [vmem:[%s5946_s1 + $0x108] sm:$0xf0] }
  0x45   :  { %1112 = vmatpush.bf16.msrb.mxu3 %v3305_v22 }
  0x46   :  { %909 = vmatpush.bf16.msrb.mxu0 %v3397_v30  ;;  %v4211_v30 = vld [vmem:[%s5946_s1 + $0x204] sm:$0xf0] }
  0x47   :  { %978 = vmatpush.bf16.msrb.mxu1 %v3145_v32  ;;  %v4146_v32 = vld [vmem:[%s5946_s1 + $0x4] sm:$0xf]  ;;  %v3381_v33 = vor.u32 %v4211_v30, %v3380_v29  ;;  %v3270_v29 = vld [vmem:[%s5946_s1 + $0x128] sm:$0xf0] }
  0x48   :  { %1044 = vmatpush.bf16.msrb.mxu2 %v3233_v31  ;;  %v3129_v43 = vor.u32 %v4146_v32, %v3126_v34  ;;  %v4164_v34 = vld [vmem:[%s5946_s1 + $0x94] sm:$0xf] }
  0x4a   :  { %910 = vmatpush.bf16.msrb.mxu0 %v3389_v44  ;;  %v3297_v44 = vor.u32 %v4188_v37, %v3294_v38  ;;  %v3198_v37 = vld [vmem:[%s5946_s1 + $0x98] sm:$0xf0] }
  0x4b   :  { %979 = vmatpush.bf16.msrb.mxu1 %v3137_v49  ;;  %v3222_v49 = vld [vmem:[%s5946_s1 + $0xc8] sm:$0xf0] }
  0x4c   :  { %1113 = vmatpush.bf16.msrb.mxu3 %v3297_v44  ;;  %v3225_v52 = vor.u32 %v4170_v48, %v3222_v49  ;;  %v3262_v44 = vld [vmem:[%s5946_s1 + $0x118] sm:$0xf0] }
  0x4d   :  { %v110_v48 = vld [vmem:[%s5945_s0 + $0xb8] sm:$0xff] }
  0x4e   :  { %911 = vmatpush.bf16.msrb.mxu0 %v3381_v33  ;;  %1045 = vmatpush.bf16.msrb.mxu2 %v3225_v52  ;;  %v4162_v52 = vld [vmem:[%s5946_s1 + $0x84] sm:$0xf] }
  0x4f   :  { %980 = vmatpush.bf16.msrb.mxu1 %v3129_v43  ;;  %v4180_v43 = vld [vmem:[%s5946_s1 + $0x114] sm:$0xf] }
  0x50   :  { %v3265_v49 = vor.u32 %v4180_v43, %v3262_v44 }
  0x51   :  { %646 = vmatmul.bf16.gmra.mxu0 %v4836_v55 }
  0x52   :  { %715 = vmatmul.bf16.gmra.mxu1 %v4838_v56  ;;  %1046 = vmatpush.bf16.msrb.mxu2 %v3217_v10 }
  0x53   :  { %784 = vmatmul.bf16.gmra.mxu2 %v4862_v1 }
  0x54   :  { %853 = vmatmul.bf16.gmra.mxu3 %v4864_v2 }
  0x61   :  { %651 = vmatmul.bf16.gmra.mxu0 %v4862_v1 }
  0x62   :  { %720 = vmatmul.bf16.gmra.mxu1 %v4864_v2 }
  0x63   :  { %789 = vmatmul.bf16.gmra.mxu2 %v4888_v11 }
  0x64   :  { %858 = vmatmul.bf16.gmra.mxu3 %v4890_v12 }
  0x71   :  { %656 = vmatmul.bf16.gmra.mxu0 %v4888_v11 }
  0x72   :  { %725 = vmatmul.bf16.gmra.mxu1 %v4890_v12 }
  0x73   :  { %794 = vmatmul.bf16.gmra.mxu2 %v4902_v15 }
  0x74   :  { %863 = vmatmul.bf16.gmra.mxu3 %v4904_v16 }
  0x81   :  { %661 = vmatmul.bf16.gmra.mxu0 %v4902_v15 }
  0x82   :  { %730 = vmatmul.bf16.gmra.mxu1 %v4904_v16 }
  0x83   :  { %799 = vmatmul.bf16.gmra.mxu2 %v4928_v25 }
  0x84   :  { %868 = vmatmul.bf16.gmra.mxu3 %v4930_v26 }
  0x91   :  { %666 = vmatmul.bf16.gmra.mxu0 %v4928_v25 }
  0x92   :  { %735 = vmatmul.bf16.gmra.mxu1 %v4930_v26 }
  0x93   :  { %804 = vmatmul.bf16.gmra.mxu2 %v4954_v35 }
  0x94   :  { %873 = vmatmul.bf16.gmra.mxu3 %v4956_v36 }
  0xa1   :  { %671 = vmatmul.bf16.gmra.mxu0 %v4954_v35 }
  0xa2   :  { %740 = vmatmul.bf16.gmra.mxu1 %v4956_v36 }
  0xa3   :  { %809 = vmatmul.bf16.gmra.mxu2 %v4968_v39 }
  0xa4   :  { %878 = vmatmul.bf16.gmra.mxu3 %v4970_v40 }
  0xae   :  { %v637_v58 = vpop.f32.mrf.mxu0 }
  0xaf   :  { %v638_v59 = vadd.f32 %v637_v58, %v4994_v53  ;;  %v706_v60 = vpop.f32.mrf.mxu1  ;;  %v5073_v58 = vpack.c.bf16 %v108_v41, %v107_v54  ;;  %v3201_v41 = vor.u32 %v4164_v34, %v3198_v37  ;;  %v112_v37 = vld [vmem:[%s5945_s0 + $0xc8] sm:$0xff] }
  0xb1   :  { %v707_v0 = vadd.f32 %v706_v60, %v638_v59  ;;  %676 = vmatmul.bf16.gmra.mxu0 %v4968_v39 }
  0xb2   :  { %745 = vmatmul.bf16.gmra.mxu1 %v4970_v40 }
  0xb3   :  { %814 = vmatmul.bf16.gmra.mxu2 %v4999_v57 }
  0xb4   :  { %883 = vmatmul.bf16.gmra.mxu3 %v5002_v61 }
  0xb6   :  { %v775_v9 = vpop.f32.mrf.mxu2  ;;  %v639_v14 = vpop.f32.mrf.mxu0 }
  0xb7   :  { %v776_v13 = vadd.f32 %v775_v9, %v707_v0  ;;  %v844_v17 = vpop.f32.mrf.mxu3  ;;  %v640_v20 = vadd.f32 %v639_v14, %v4994_v53  ;;  %v708_v21 = vpop.f32.mrf.mxu1  ;;  %v3286_v0 = vld [vmem:[%s5946_s1 + $0x148] sm:$0xf0]  ;;  %v3278_v14 = vld [vmem:[%s5946_s1 + $0x138] sm:$0xf0] }
  0xb8   :  { %v3289_v54 = vor.u32 %v4186_v63, %v3286_v0  ;;  %v5143_v63 = vpack.c.bf16 %v110_v48, %v5065_v45 }
  0xb9   :  { %v5033_v23 = vadd.f32 %v844_v17, %v776_v13  ;;  %v709_v28 = vadd.f32 %v708_v21, %v640_v20  ;;  %v4184_v13 = vld [vmem:[%s5946_s1 + $0x134] sm:$0xf]  ;;  %v3209_v21 = vor.u32 %v4166_v18, %v3206_v19  ;;  %v3374_v18 = vld [vmem:[%s5946_s1 + $0x1f8] sm:$0xf0] }
  0xba   :  { %1114 = vmatpush.bf16.msrb.mxu3 %v3289_v54  ;;  %v3281_v17 = vor.u32 %v4184_v13, %v3278_v14  ;;  %v4178_v54 = vld [vmem:[%s5946_s1 + $0x104] sm:$0xf] }
  0xbb   :  { %1047 = vmatpush.bf16.msrb.mxu2 %v3209_v21  ;;  %v3257_v13 = vor.u32 %v4178_v54, %v3254_v7  ;;  %v3438_v21 = vld [vmem:[%s5946_s1 + $0x278] sm:$0xf0] }
  0xbe   :  { %v777_v51 = vpop.f32.mrf.mxu2  ;;  %v642_v60 = vpop.f32.mrf.mxu0  ;;  %1115 = vmatpush.bf16.msrb.mxu3 %v3281_v17  ;;  %v4208_v17 = vld [vmem:[%s5946_s1 + $0x1f4] sm:$0xf] }
  0xbf   :  { %v778_v59 = vadd.f32 %v777_v51, %v709_v28  ;;  %v846_v62 = vpop.f32.mrf.mxu3  ;;  %v643_v3 = vadd.f32 %v642_v60, %v4994_v53  ;;  %v711_v4 = vpop.f32.mrf.mxu1  ;;  %v4182_v28 = vld [vmem:[%s5946_s1 + $0x124] sm:$0xf]  ;;  %1048 = vmatpush.bf16.msrb.mxu2 %v3201_v41  ;;  %v3377_v19 = vor.u32 %v4208_v17, %v3374_v18  ;;  %v3366_v17 = vld [vmem:[%s5946_s1 + $0x1e8] sm:$0xf0] }
  0xc0   :  { %v3273_v32 = vor.u32 %v4182_v28, %v3270_v29  ;;  %v111_v51 = vld [vmem:[%s5945_s0 + $0xc0] sm:$0xff] }
  0xc1   :  { %v5085_v6 = vadd.f32 %v846_v62, %v778_v59  ;;  %v712_v9 = vadd.f32 %v711_v4, %v643_v3  ;;  %681 = vmatmul.bf16.gmra.mxu0 %v4999_v57  ;;  %v3190_v59 = vld [vmem:[%s5946_s1 + $0x88] sm:$0xf0]  ;;  %v5152_v10 = vpack.c.bf16 %v111_v51, %v110_v48  ;;  %v4222_v18 = vld [vmem:[%s5946_s1 + $0x264] sm:$0xf] }
  0xc2   :  { %750 = vmatmul.bf16.gmra.mxu1 %v5002_v61  ;;  %1116 = vmatpush.bf16.msrb.mxu3 %v3273_v32  ;;  %v3193_v62 = vor.u32 %v4162_v52, %v3190_v59 }
  0xc3   :  { %819 = vmatmul.bf16.gmra.mxu2 %v5073_v58  ;;  %1180 = vmatpush.bf16.msra.mxu0 %v3377_v19 }
  0xc4   :  { %888 = vmatmul.bf16.gmra.mxu3 %v5083_v5  ;;  %1049 = vmatpush.bf16.msrb.mxu2 %v3193_v62 }
  0xc6   :  { %v780_v20 = vpop.f32.mrf.mxu2  ;;  %v644_v24 = vpop.f32.mrf.mxu0  ;;  %1117 = vmatpush.bf16.msrb.mxu3 %v3265_v49  ;;  %v5183_v49 = vpack.c.bf16 %v112_v37, %v111_v51 }
  0xc7   :  { %v781_v22 = vadd.f32 %v780_v20, %v712_v9  ;;  %v849_v27 = vpop.f32.mrf.mxu3  ;;  %v645_v30 = vadd.f32 %v644_v24, %v4994_v53  ;;  %v713_v31 = vpop.f32.mrf.mxu1  ;;  %v4224_v20 = vld [vmem:[%s5946_s1 + $0x274] sm:$0xf] }
  0xc9   :  { %v5116_v33 = vadd.f32 %v849_v27, %v781_v22  ;;  %v714_v38 = vadd.f32 %v713_v31, %v645_v30  ;;  %v3441_v22 = vor.u32 %v4224_v20, %v3438_v21  ;;  %v3430_v20 = vld [vmem:[%s5946_s1 + $0x268] sm:$0xf0] }
  0xca   :  { %1118 = vmatpush.bf16.msrb.mxu3 %v3257_v13  ;;  %v3433_v21 = vor.u32 %v4222_v18, %v3430_v20  ;;  %v4220_v18 = vld [vmem:[%s5946_s1 + $0x254] sm:$0xf] }
  0xcb   :  { %1249 = vmatpush.bf16.msra.mxu1 %v3441_v22 }
  0xce   :  { %v782_v60 = vpop.f32.mrf.mxu2  ;;  %v647_v3 = vpop.f32.mrf.mxu0 }
  0xcf   :  { %v783_v0 = vadd.f32 %v782_v60, %v714_v38  ;;  %v851_v4 = vpop.f32.mrf.mxu3  ;;  %v648_v8 = vadd.f32 %v647_v3, %v4994_v53  ;;  %v716_v9 = vpop.f32.mrf.mxu1  ;;  %v5181_v38 = vld [vmem:[%s5945_s0 + $0xd0] sm:$0xff]  ;;  %1250 = vmatpush.bf16.msra.mxu1 %v3433_v21 }
  0xd0   :  { %v5187_v60 = vpack.c.bf16 %v5181_v38, %v112_v37 }
  0xd1   :  { %v5154_v45 = vadd.f32 %v851_v4, %v783_v0  ;;  %v717_v14 = vadd.f32 %v716_v9, %v648_v8  ;;  %686 = vmatmul.bf16.gmra.mxu0 %v5073_v58 }
  0xd2   :  { %755 = vmatmul.bf16.gmra.mxu1 %v5083_v5  ;;  %5960 = vst [vmem:[#allocation9_spill] sm:$0xff] %v5187_v60 }
  0xd3   :  { %824 = vmatmul.bf16.gmra.mxu2 %v5143_v63 }
  0xd4   :  { %893 = vmatmul.bf16.gmra.mxu3 %v5152_v10 }
  0xd6   :  { %v785_v24 = vpop.f32.mrf.mxu2  ;;  %v649_v28 = vpop.f32.mrf.mxu0 }
  0xd7   :  { %v786_v27 = vadd.f32 %v785_v24, %v717_v14  ;;  %v854_v29 = vpop.f32.mrf.mxu3  ;;  %v650_v30 = vadd.f32 %v649_v28, %v4994_v53  ;;  %v718_v31 = vpop.f32.mrf.mxu1  ;;  %v4206_v14 = vld [vmem:[%s5946_s1 + $0x1e4] sm:$0xf] }
  0xd8   :  { %v3369_v19 = vor.u32 %v4206_v14, %v3366_v17  ;;  %v3358_v14 = vld [vmem:[%s5946_s1 + $0x1d8] sm:$0xf0] }
  0xd9   :  { %v5173_v32 = vadd.f32 %v854_v29, %v786_v27  ;;  %v719_v34 = vadd.f32 %v718_v31, %v650_v30 }
  0xda   :  { %1181 = vmatpush.bf16.msra.mxu0 %v3369_v19 }
  0xde   :  { %v787_v41 = vpop.f32.mrf.mxu2  ;;  %v652_v44 = vpop.f32.mrf.mxu0 }
  0xdf   :  { %v788_v43 = vadd.f32 %v787_v41, %v719_v34  ;;  %v856_v48 = vpop.f32.mrf.mxu3  ;;  %v653_v52 = vadd.f32 %v652_v44, %v4994_v53  ;;  %v721_v59 = vpop.f32.mrf.mxu1 }
  0xe1   :  { %v5189_v62 = vadd.f32 %v856_v48, %v788_v43  ;;  %v722_v0 = vadd.f32 %v721_v59, %v653_v52  ;;  %691 = vmatmul.bf16.gmra.mxu0 %v5143_v63 }
  0xe2   :  { %760 = vmatmul.bf16.gmra.mxu1 %v5152_v10 }
  0xe3   :  { %829 = vmatmul.bf16.gmra.mxu2 %v5183_v49 }
  0xe4   :  { %898 = vmatmul.bf16.gmra.mxu3 %v5187_v60 }
  0xe6   :  { %v790_v3 = vpop.f32.mrf.mxu2  ;;  %v654_v4 = vpop.f32.mrf.mxu0 }
  0xe7   :  { %v791_v51 = vadd.f32 %v790_v3, %v722_v0  ;;  %v859_v54 = vpop.f32.mrf.mxu3  ;;  %v655_v7 = vadd.f32 %v654_v4, %v4994_v53  ;;  %v723_v8 = vpop.f32.mrf.mxu1 }
  0xe9   :  { %v5196_v9 = vadd.f32 %v859_v54, %v791_v51  ;;  %v724_v13 = vadd.f32 %v723_v8, %v655_v7 }
  0xee   :  { %v792_v22 = vpop.f32.mrf.mxu2  ;;  %v657_v27 = vpop.f32.mrf.mxu0 }
  0xef   :  { %v793_v24 = vadd.f32 %v792_v22, %v724_v13  ;;  %v861_v28 = vpop.f32.mrf.mxu3  ;;  %v658_v29 = vadd.f32 %v657_v27, %v4994_v53  ;;  %v726_v30 = vpop.f32.mrf.mxu1  ;;  %v4204_v13 = vld [vmem:[%s5946_s1 + $0x1d4] sm:$0xf] }
  0xf0   :  { %v3361_v17 = vor.u32 %v4204_v13, %v3358_v14  ;;  %v4202_v14 = vld [vmem:[%s5946_s1 + $0x1c4] sm:$0xf] }
  0xf1   :  { %v5211_v31 = vadd.f32 %v861_v28, %v793_v24  ;;  %v727_v34 = vadd.f32 %v726_v30, %v658_v29  ;;  %912 = vmatmul.bf16.vlgmr.msrb.gmra.mxu0 %v4836_v55 }
  0xf2   :  { %981 = vmatmul.bf16.vlgmr.msrb.gmra.mxu1 %v4806_v42  ;;  %1182 = vmatpush.bf16.msra.mxu0 %v3361_v17  ;;  %v3350_v17 = vld [vmem:[%s5946_s1 + $0x1c8] sm:$0xf0] }
  0xf3   :  { %1050 = vmatmul.bf16.vlgmr.msrb.gmra.mxu2 %v4814_v46 }
  0xf4   :  { %1119 = vmatmul.bf16.vlgmr.msrb.gmra.mxu3 %v4816_v47 }
  0xf6   :  { %v795_v37 = vpop.f32.mrf.mxu2  ;;  %v659_v43 = vpop.f32.mrf.mxu0 }
  0xf7   :  { %v796_v41 = vadd.f32 %v795_v37, %v727_v34  ;;  %v864_v44 = vpop.f32.mrf.mxu3  ;;  %v660_v48 = vadd.f32 %v659_v43, %v4994_v53  ;;  %v728_v52 = vpop.f32.mrf.mxu1 }
  0xf9   :  { %v5218_v59 = vadd.f32 %v864_v44, %v796_v41  ;;  %v729_v0 = vadd.f32 %v728_v52, %v660_v48 }
  0xfe   :  { %v797_v3 = vpop.f32.mrf.mxu2  ;;  %v662_v4 = vpop.f32.mrf.mxu0 }
  0xff   :  { %v798_v51 = vadd.f32 %v797_v3, %v729_v0  ;;  %v866_v54 = vpop.f32.mrf.mxu3  ;;  %v663_v42 = vadd.f32 %v662_v4, %v4994_v53  ;;  %v731_v7 = vpop.f32.mrf.mxu1 }
 0x101   :  { %v5221_v46 = vadd.f32 %v866_v54, %v798_v51  ;;  %v732_v8 = vadd.f32 %v731_v7, %v663_v42  ;;  %917 = vmatmul.bf16.gmra.mxu0 %v4862_v1 }
 0x102   :  { %986 = vmatmul.bf16.gmra.mxu1 %v4816_v47  ;;  %v3422_v47 = vld [vmem:[%s5946_s1 + $0x258] sm:$0xf0] }
 0x103   :  { %1055 = vmatmul.bf16.gmra.mxu2 %v4824_v50  ;;  %v3425_v19 = vor.u32 %v4220_v18, %v3422_v47  ;;  %v4218_v18 = vld [vmem:[%s5946_s1 + $0x244] sm:$0xf]  ;;  %v3353_v47 = vor.u32 %v4202_v14, %v3350_v17 }
 0x104   :  { %1124 = vmatmul.bf16.gmra.mxu3 %v4836_v55 }
 0x105   :  { %1251 = vmatpush.bf16.msra.mxu1 %v3425_v19  ;;  %v3414_v19 = vld [vmem:[%s5946_s1 + $0x248] sm:$0xf0]  ;;  %1183 = vmatpush.bf16.msra.mxu0 %v3353_v47 }
 0x106   :  { %v800_v20 = vpop.f32.mrf.mxu2  ;;  %v664_v22 = vpop.f32.mrf.mxu0 }
 0x107   :  { %v801_v21 = vadd.f32 %v800_v20, %v732_v8  ;;  %v869_v24 = vpop.f32.mrf.mxu3  ;;  %v665_v27 = vadd.f32 %v664_v22, %v4994_v53  ;;  %v733_v28 = vpop.f32.mrf.mxu1  ;;  %v3417_v20 = vor.u32 %v4218_v18, %v3414_v19  ;;  %v4200_v19 = vld [vmem:[%s5946_s1 + $0x1b4] sm:$0xf] }
 0x109   :  { %v5240_v29 = vadd.f32 %v869_v24, %v801_v21  ;;  %v734_v30 = vadd.f32 %v733_v28, %v665_v27  ;;  %1252 = vmatpush.bf16.msra.mxu1 %v3417_v20  ;;  %v3342_v20 = vld [vmem:[%s5946_s1 + $0x1b8] sm:$0xf0] }
 0x10e   :  { %v802_v34 = vpop.f32.mrf.mxu2  ;;  %v667_v41 = vpop.f32.mrf.mxu0 }
 0x10f   :  { %v803_v37 = vadd.f32 %v802_v34, %v734_v30  ;;  %v871_v43 = vpop.f32.mrf.mxu3  ;;  %v668_v44 = vadd.f32 %v667_v41, %v4994_v53  ;;  %v736_v48 = vpop.f32.mrf.mxu1 }
 0x111   :  { %v5243_v52 = vadd.f32 %v871_v43, %v803_v37  ;;  %v737_v0 = vadd.f32 %v736_v48, %v668_v44  ;;  %922 = vmatmul.bf16.gmra.mxu0 %v4888_v11 }
 0x112   :  { %991 = vmatmul.bf16.gmra.mxu1 %v4836_v55 }
 0x113   :  { %1060 = vmatmul.bf16.gmra.mxu2 %v4838_v56 }
 0x114   :  { %1129 = vmatmul.bf16.gmra.mxu3 %v4862_v1 }
 0x116   :  { %v805_v3 = vpop.f32.mrf.mxu2  ;;  %v669_v4 = vpop.f32.mrf.mxu0 }
 0x117   :  { %v806_v51 = vadd.f32 %v805_v3, %v737_v0  ;;  %v874_v54 = vpop.f32.mrf.mxu3  ;;  %v670_v42 = vadd.f32 %v669_v4, %v4994_v53  ;;  %v738_v7 = vpop.f32.mrf.mxu1 }
 0x119   :  { %v5250_v8 = vadd.f32 %v874_v54, %v806_v51  ;;  %v739_v13 = vadd.f32 %v738_v7, %v670_v42 }
 0x11e   :  { %v807_v21 = vpop.f32.mrf.mxu2  ;;  %v672_v24 = vpop.f32.mrf.mxu0 }
 0x11f   :  { %v808_v22 = vadd.f32 %v807_v21, %v739_v13  ;;  %v876_v27 = vpop.f32.mrf.mxu3  ;;  %v673_v28 = vadd.f32 %v672_v24, %v4994_v53  ;;  %v741_v30 = vpop.f32.mrf.mxu1  ;;  %v3345_v21 = vor.u32 %v4200_v19, %v3342_v20  ;;  %v3406_v24 = vld [vmem:[%s5946_s1 + $0x238] sm:$0xf0] }
 0x121   :  { %v5265_v34 = vadd.f32 %v876_v27, %v808_v22  ;;  %v742_v37 = vadd.f32 %v741_v30, %v673_v28  ;;  %927 = vmatmul.bf16.gmra.mxu0 %v4902_v15  ;;  %v4216_v22 = vld [vmem:[%s5946_s1 + $0x234] sm:$0xf] }
 0x122   :  { %996 = vmatmul.bf16.gmra.mxu1 %v4862_v1  ;;  %v3409_v27 = vor.u32 %v4216_v22, %v3406_v24  ;;  %1184 = vmatpush.bf16.msra.mxu0 %v3345_v21 }
 0x123   :  { %1065 = vmatmul.bf16.gmra.mxu2 %v4864_v2 }
 0x124   :  { %1134 = vmatmul.bf16.gmra.mxu3 %v4888_v11  ;;  %1253 = vmatpush.bf16.msra.mxu1 %v3409_v27 }
 0x126   :  { %v810_v41 = vpop.f32.mrf.mxu2  ;;  %v674_v44 = vpop.f32.mrf.mxu0 }
 0x127   :  { %v811_v43 = vadd.f32 %v810_v41, %v742_v37  ;;  %v879_v48 = vpop.f32.mrf.mxu3  ;;  %v675_v0 = vadd.f32 %v674_v44, %v4994_v53  ;;  %v743_v3 = vpop.f32.mrf.mxu1 }
 0x129   :  { %v5272_v51 = vadd.f32 %v879_v48, %v811_v43  ;;  %v744_v4 = vadd.f32 %v743_v3, %v675_v0 }
 0x12e   :  { %v812_v54 = vpop.f32.mrf.mxu2  ;;  %v677_v7 = vpop.f32.mrf.mxu0 }
 0x12f   :  { %v813_v42 = vadd.f32 %v812_v54, %v744_v4  ;;  %v881_v13 = vpop.f32.mrf.mxu3  ;;  %v678_v14 = vadd.f32 %v677_v7, %v4994_v53  ;;  %v746_v17 = vpop.f32.mrf.mxu1 }
 0x131   :  { %v5275_v18 = vadd.f32 %v881_v13, %v813_v42  ;;  %v747_v47 = vadd.f32 %v746_v17, %v678_v14  ;;  %932 = vmatmul.bf16.gmra.mxu0 %v4928_v25 }
 0x132   :  { %1001 = vmatmul.bf16.gmra.mxu1 %v4888_v11 }
 0x133   :  { %1070 = vmatmul.bf16.gmra.mxu2 %v4890_v12 }
 0x134   :  { %1139 = vmatmul.bf16.gmra.mxu3 %v4902_v15 }
 0x136   :  { %v815_v28 = vpop.f32.mrf.mxu2  ;;  %v679_v37 = vpop.f32.mrf.mxu0 }
 0x137   :  { %v816_v30 = vadd.f32 %v815_v28, %v747_v47  ;;  %v884_v41 = vpop.f32.mrf.mxu3  ;;  %v680_v43 = vadd.f32 %v679_v37, %v4994_v53  ;;  %v748_v44 = vpop.f32.mrf.mxu1  ;;  %v3334_v37 = vld [vmem:[%s5946_s1 + $0x1a8] sm:$0xf0] }
 0x139   :  { %v5294_v48 = vadd.f32 %v884_v41, %v816_v30  ;;  %v749_v0 = vadd.f32 %v748_v44, %v680_v43  ;;  %v4198_v30 = vld [vmem:[%s5946_s1 + $0x1a4] sm:$0xf]  ;;  %v3398_v44 = vld [vmem:[%s5946_s1 + $0x228] sm:$0xf0] }
 0x13a   :  { %v4214_v41 = vld [vmem:[%s5946_s1 + $0x224] sm:$0xf]  ;;  %v3337_v43 = vor.u32 %v4198_v30, %v3334_v37 }
 0x13c   :  { %1185 = vmatpush.bf16.msra.mxu0 %v3337_v43 }
 0x13e   :  { %v817_v3 = vpop.f32.mrf.mxu2  ;;  %v682_v54 = vpop.f32.mrf.mxu0 }
 0x13f   :  { %v818_v4 = vadd.f32 %v817_v3, %v749_v0  ;;  %v886_v42 = vpop.f32.mrf.mxu3  ;;  %v683_v7 = vadd.f32 %v682_v54, %v4994_v53  ;;  %v751_v13 = vpop.f32.mrf.mxu1  ;;  %v3401_v0 = vor.u32 %v4214_v41, %v3398_v44 }
 0x141   :  { %v5297_v14 = vadd.f32 %v886_v42, %v818_v4  ;;  %v752_v17 = vadd.f32 %v751_v13, %v683_v7  ;;  %937 = vmatmul.bf16.gmra.mxu0 %v4954_v35  ;;  %1254 = vmatpush.bf16.msra.mxu1 %v3401_v0 }
 0x142   :  { %1006 = vmatmul.bf16.gmra.mxu1 %v4902_v15 }
 0x143   :  { %1075 = vmatmul.bf16.gmra.mxu2 %v4904_v16 }
 0x144   :  { %1144 = vmatmul.bf16.gmra.mxu3 %v4928_v25 }
 0x146   :  { %v820_v47 = vpop.f32.mrf.mxu2  ;;  %v684_v20 = vpop.f32.mrf.mxu0 }
 0x147   :  { %v821_v19 = vadd.f32 %v820_v47, %v752_v17  ;;  %v889_v21 = vpop.f32.mrf.mxu3  ;;  %v685_v22 = vadd.f32 %v684_v20, %v4994_v53  ;;  %v753_v24 = vpop.f32.mrf.mxu1 }
 0x149   :  { %v5304_v27 = vadd.f32 %v889_v21, %v821_v19  ;;  %v754_v28 = vadd.f32 %v753_v24, %v685_v22 }
 0x14e   :  { %v822_v3 = vpop.f32.mrf.mxu2  ;;  %v687_v54 = vpop.f32.mrf.mxu0 }
 0x14f   :  { %v823_v4 = vadd.f32 %v822_v3, %v754_v28  ;;  %v891_v42 = vpop.f32.mrf.mxu3  ;;  %v688_v7 = vadd.f32 %v687_v54, %v4994_v53  ;;  %v756_v13 = vpop.f32.mrf.mxu1 }
 0x151   :  { %v5319_v17 = vadd.f32 %v891_v42, %v823_v4  ;;  %v757_v47 = vadd.f32 %v756_v13, %v688_v7  ;;  %942 = vmatmul.bf16.gmra.mxu0 %v4968_v39  ;;  %v4196_v7 = vld [vmem:[%s5946_s1 + $0x194] sm:$0xf]  ;;  %v3326_v13 = vld [vmem:[%s5946_s1 + $0x198] sm:$0xf0] }
 0x152   :  { %1011 = vmatmul.bf16.gmra.mxu1 %v4928_v25 }
 0x153   :  { %1080 = vmatmul.bf16.gmra.mxu2 %v4930_v26 }
 0x154   :  { %1149 = vmatmul.bf16.gmra.mxu3 %v4954_v35 }
 0x156   :  { %v825_v19 = vpop.f32.mrf.mxu2  ;;  %v689_v21 = vpop.f32.mrf.mxu0 }
 0x157   :  { %v826_v20 = vadd.f32 %v825_v19, %v757_v47  ;;  %v894_v22 = vpop.f32.mrf.mxu3  ;;  %v690_v24 = vadd.f32 %v689_v21, %v4994_v53  ;;  %v758_v28 = vpop.f32.mrf.mxu1  ;;  %v3329_v47 = vor.u32 %v4196_v7, %v3326_v13  ;;  %v4212_v19 = vld [vmem:[%s5946_s1 + $0x214] sm:$0xf] }
 0x159   :  { %v5326_v30 = vadd.f32 %v894_v22, %v826_v20  ;;  %v759_v37 = vadd.f32 %v758_v28, %v690_v24  ;;  %v3390_v20 = vld [vmem:[%s5946_s1 + $0x218] sm:$0xf0]  ;;  %1186 = vmatpush.bf16.msra.mxu0 %v3329_v47 }
 0x15a   :  { %v3393_v21 = vor.u32 %v4212_v19, %v3390_v20 }
 0x15c   :  { %1255 = vmatpush.bf16.msra.mxu1 %v3393_v21  ;;  %v3318_v21 = vld [vmem:[%s5946_s1 + $0x188] sm:$0xf0] }
 0x15e   :  { %v827_v41 = vpop.f32.mrf.mxu2  ;;  %v692_v44 = vpop.f32.mrf.mxu0 }
 0x15f   :  { %v828_v43 = vadd.f32 %v827_v41, %v759_v37  ;;  %v896_v0 = vpop.f32.mrf.mxu3  ;;  %v693_v3 = vadd.f32 %v692_v44, %v4994_v53  ;;  %v761_v4 = vpop.f32.mrf.mxu1 }
 0x161   :  { %v5329_v54 = vadd.f32 %v896_v0, %v828_v43  ;;  %v762_v42 = vadd.f32 %v761_v4, %v693_v3  ;;  %947 = vmatmul.bf16.gmra.mxu0 %v4999_v57 }
 0x162   :  { %1016 = vmatmul.bf16.gmra.mxu1 %v4954_v35 }
 0x163   :  { %1085 = vmatmul.bf16.gmra.mxu2 %v4956_v36 }
 0x164   :  { %1154 = vmatmul.bf16.gmra.mxu3 %v4968_v39 }
 0x166   :  { %v830_v22 = vpop.f32.mrf.mxu2  ;;  %v694_v28 = vpop.f32.mrf.mxu0 }
 0x167   :  { %v831_v24 = vadd.f32 %v830_v22, %v762_v42  ;;  %v899_v37 = vpop.f32.mrf.mxu3  ;;  %v695_v41 = vadd.f32 %v694_v28, %v4994_v53  ;;  %v763_v43 = vpop.f32.mrf.mxu1 }
 0x169   :  { %v5348_v44 = vadd.f32 %v899_v37, %v831_v24  ;;  %v764_v0 = vadd.f32 %v763_v43, %v695_v41  ;;  %v4210_v24 = vld [vmem:[%s5946_s1 + $0x204] sm:$0xf] }
 0x16e   :  { %v832_v3 = vpop.f32.mrf.mxu2  ;;  %v913_v13 = vpop.f32.mrf.mxu0 }
 0x16f   :  { %v833_v4 = vadd.f32 %v832_v3, %v764_v0  ;;  %v901_v7 = vpop.f32.mrf.mxu3  ;;  %v5351_v60 = vadd.f32 %v913_v13, %v5033_v23  ;;  %v5353_v19 = vpop.f32.mrf.mxu1  ;;  %v4194_v23 = vld [vmem:[%s5946_s1 + $0x184] sm:$0xf] }
 0x170   :  { %v3321_v22 = vor.u32 %v4194_v23, %v3318_v21 }
 0x171   :  { %v5355_v47 = vadd.f32 %v901_v7, %v833_v4  ;;  %952 = vmatmul.bf16.gmra.mxu0 %v5073_v58 }
 0x172   :  { %1021 = vmatmul.bf16.gmra.mxu1 %v4968_v39  ;;  %1187 = vmatpush.bf16.msra.mxu0 %v3321_v22 }
 0x173   :  { %1090 = vmatmul.bf16.gmra.mxu2 %v4970_v40 }
 0x174   :  { %1159 = vmatmul.bf16.gmra.mxu3 %v4999_v57 }
 0x176   :  { %v915_v53 = vpop.f32.mrf.mxu0 }
 0x177   :  { %v5362_v42 = vadd.f32 %v915_v53, %v5085_v6  ;;  %v5364_v20 = vpop.f32.mrf.mxu1  ;;  %v3382_v6 = vld [vmem:[%s5946_s1 + $0x208] sm:$0xf0] }
 0x178   :  { %v3385_v28 = vor.u32 %v4210_v24, %v3382_v6 }
 0x17a   :  { %1256 = vmatpush.bf16.msra.mxu1 %v3385_v28 }
 0x17e   :  { %v918_v37 = vpop.f32.mrf.mxu0 }
 0x17f   :  { %v5379_v41 = vadd.f32 %v918_v37, %v5116_v33  ;;  %v5381_v43 = vpop.f32.mrf.mxu1 }
 0x181   :  { %957 = vmatmul.bf16.gmra.mxu0 %v5143_v63 }
 0x182   :  { %1026 = vmatmul.bf16.gmra.mxu1 %v4999_v57 }
 0x183   :  { %1095 = vmatmul.bf16.gmra.mxu2 %v5002_v61 }
 0x184   :  { %1164 = vmatmul.bf16.gmra.mxu3 %v5073_v58 }
 0x186   :  { %v920_v0 = vpop.f32.mrf.mxu0 }
 0x187   :  { %v5388_v3 = vadd.f32 %v920_v0, %v5154_v45  ;;  %v5390_v4 = vpop.f32.mrf.mxu1 }
 0x18e   :  { %v923_v7 = vpop.f32.mrf.mxu0 }
 0x18f   :  { %v5393_v33 = vadd.f32 %v923_v7, %v5173_v32  ;;  %v5395_v13 = vpop.f32.mrf.mxu1  ;;  %v114_v32 = vld [vmem:[%s5945_s0 + $0xd8] sm:$0xff]  ;;  %v3500_v7 = vld [vmem:[#allocation2 + $0x70] sm:$0xf] }
 0x190   :  { %v5410_v21 = vpack.c.bf16 %v114_v32, %v5181_v38  ;;  %v3564_v32 = vld [vmem:[#allocation2 + $0xf0] sm:$0xf] }
 0x191   :  { %962 = vmatmul.bf16.gmra.mxu0 %v5183_v49 }
 0x192   :  { %1031 = vmatmul.bf16.gmra.mxu1 %v5073_v58  ;;  %5961 = vst [vmem:[#allocation10_spill] sm:$0xff] %v5410_v21 }
 0x193   :  { %1100 = vmatmul.bf16.gmra.mxu2 %v5083_v5 }
 0x194   :  { %1169 = vmatmul.bf16.gmra.mxu3 %v5143_v63 }
 0x196   :  { %v925_v53 = vpop.f32.mrf.mxu0 }
 0x197   :  { %v5402_v45 = vadd.f32 %v925_v53, %v5189_v62  ;;  %v5404_v23 = vpop.f32.mrf.mxu1  ;;  %v4241_v53 = vld [vmem:[#allocation2 + $0x74] sm:$0xf0] }
 0x19e   :  { %v928_v22 = vpop.f32.mrf.mxu0 }
 0x19f   :  { %v5413_v24 = vadd.f32 %v928_v22, %v5196_v9  ;;  %v5415_v6 = vpop.f32.mrf.mxu1  ;;  %v3501_v22 = vor.u32 %v4241_v53, %v3500_v7  ;;  %v4239_v7 = vld [vmem:[#allocation2 + $0x64] sm:$0xf0] }
 0x1a1   :  { %5962 = vst [vmem:[#allocation11_spill] sm:$0xff] %v5413_v24  ;;  %967 = vmatmul.bf16.gmra.mxu0 %v5410_v21  ;;  %v4257_v24 = vld [vmem:[#allocation2 + $0xf4] sm:$0xf0]  ;;  %1899 = vmatpush.bf16.msra.mxu2 %v3501_v22  ;;  %v4255_v22 = vld [vmem:[#allocation2 + $0xe4] sm:$0xf0] }
 0x1a2   :  { %1036 = vmatmul.bf16.gmra.mxu1 %v5143_v63  ;;  %v3565_v21 = vor.u32 %v4257_v24, %v3564_v32  ;;  %v3556_v32 = vld [vmem:[#allocation2 + $0xe0] sm:$0xf] }
 0x1a3   :  { %1105 = vmatmul.bf16.gmra.mxu2 %v5152_v10 }
 0x1a4   :  { %1174 = vmatmul.bf16.gmra.mxu3 %v5183_v49 }
 0x1a5   :  { %1928 = vmatpush.bf16.msra.mxu3 %v3565_v21 }
 0x1a6   :  { %v930_v62 = vpop.f32.mrf.mxu0 }
 0x1a7   :  { %v5422_v28 = vadd.f32 %v930_v62, %v5211_v31  ;;  %v5424_v38 = vpop.f32.mrf.mxu1 }
 0x1ae   :  { %v933_v37 = vpop.f32.mrf.mxu0 }
 0x1af   :  { %v5427_v9 = vadd.f32 %v933_v37, %v5218_v59  ;;  %v5429_v0 = vpop.f32.mrf.mxu1 }
 0x1b1   :  { %5963 = vst [vmem:[#allocation12_spill] sm:$0xff] %v5427_v9  ;;  %1188 = vmatmul.bf16.vlgmr.msra.gmra.mxu0 %v4824_v50 }
 0x1b2   :  { %1257 = vmatmul.bf16.vlgmr.msra.gmra.mxu1 %v4836_v55 }
 0x1b6   :  { %v935_v31 = vpop.f32.mrf.mxu0 }
 0x1b7   :  { %v5434_v62 = vadd.f32 %v935_v31, %v5221_v46  ;;  %v5436_v59 = vpop.f32.mrf.mxu1  ;;  %v3492_v46 = vld [vmem:[#allocation2 + $0x60] sm:$0xf]  ;;  %v3557_v31 = vor.u32 %v4255_v22, %v3556_v32  ;;  %v3548_v32 = vld [vmem:[#allocation2 + $0xd0] sm:$0xf]  ;;  %v4253_v22 = vld [vmem:[#allocation2 + $0xd4] sm:$0xf0] }
 0x1b8   :  { %v3493_v53 = vor.u32 %v4239_v7, %v3492_v46 }
 0x1b9   :  { %1929 = vmatpush.bf16.msra.mxu3 %v3557_v31  ;;  %v3549_v31 = vor.u32 %v4253_v22, %v3548_v32  ;;  %v4235_v22 = vld [vmem:[#allocation2 + $0x44] sm:$0xf0] }
 0x1ba   :  { %1900 = vmatpush.bf16.msra.mxu2 %v3493_v53 }
 0x1bd   :  { %1930 = vmatpush.bf16.msra.mxu3 %v3549_v31 }
 0x1be   :  { %v938_v37 = vpop.f32.mrf.mxu0 }
 0x1bf   :  { %v5439_v9 = vadd.f32 %v938_v37, %v5240_v29  ;;  %v5441_v50 = vpop.f32.mrf.mxu1 }
 0x1c1   :  { %1193 = vmatmul.bf16.gmra.mxu0 %v4838_v56 }
 0x1c2   :  { %1262 = vmatmul.bf16.gmra.mxu1 %v4862_v1 }
 0x1c6   :  { %v940_v55 = vpop.f32.mrf.mxu0 }
 0x1c7   :  { %v5446_v24 = vadd.f32 %v940_v55, %v5243_v52  ;;  %v5448_v21 = vpop.f32.mrf.mxu1 }
 0x1ce   :  { %v943_v29 = vpop.f32.mrf.mxu0 }
 0x1cf   :  { %v5451_v37 = vadd.f32 %v943_v29, %v5250_v8  ;;  %v5453_v56 = vpop.f32.mrf.mxu1  ;;  %v3484_v8 = vld [vmem:[#allocation2 + $0x50] sm:$0xf] }
 0x1d1   :  { %1198 = vmatmul.bf16.gmra.mxu0 %v4864_v2  ;;  %v4237_v2 = vld [vmem:[#allocation2 + $0x54] sm:$0xf0] }
 0x1d2   :  { %1267 = vmatmul.bf16.gmra.mxu1 %v4888_v11  ;;  %v3485_v11 = vor.u32 %v4237_v2, %v3484_v8 }
 0x1d4   :  { %1901 = vmatpush.bf16.msra.mxu2 %v3485_v11  ;;  %v3476_v11 = vld [vmem:[#allocation2 + $0x40] sm:$0xf] }
 0x1d5   :  { %v3477_v31 = vor.u32 %v4235_v22, %v3476_v11 }
 0x1d6   :  { %v945_v1 = vpop.f32.mrf.mxu0 }
 0x1d7   :  { %v5458_v52 = vadd.f32 %v945_v1, %v5265_v34  ;;  %v5460_v55 = vpop.f32.mrf.mxu1 }
 0x1d8   :  { %1902 = vmatpush.bf16.msra.mxu2 %v3477_v31 }
 0x1de   :  { %v948_v46 = vpop.f32.mrf.mxu0 }
 0x1df   :  { %v5463_v7 = vadd.f32 %v948_v46, %v5272_v51  ;;  %v5465_v53 = vpop.f32.mrf.mxu1 }
 0x1e1   :  { %1203 = vmatmul.bf16.gmra.mxu0 %v4890_v12 }
 0x1e2   :  { %1272 = vmatmul.bf16.gmra.mxu1 %v4902_v15  ;;  %v1051_v15 = vpop.f32.mrf.mxu2 }
 0x1e6   :  { %v950_v34 = vpop.f32.mrf.mxu0 }
 0x1e7   :  { %v5470_v29 = vadd.f32 %v950_v34, %v5275_v18  ;;  %v5472_v51 = vpop.f32.mrf.mxu1  ;;  %v1120_v18 = vpop.f32.mrf.mxu3  ;;  %v3540_v34 = vld [vmem:[#allocation2 + $0xc0] sm:$0xf] }
 0x1e9   :  { %5964 = vst [vmem:[#allocation13_spill] sm:$0xff] %v5470_v29 }
 0x1ee   :  { %v953_v1 = vpop.f32.mrf.mxu0 }
 0x1ef   :  { %v5475_v46 = vadd.f32 %v953_v1, %v5294_v48  ;;  %v5477_v12 = vpop.f32.mrf.mxu1  ;;  %v4251_v48 = vld [vmem:[#allocation2 + $0xc4] sm:$0xf0] }
 0x1f0   :  { %5966 = vst [vmem:[#allocation15_spill] sm:$0xff] %v5477_v12  ;;  %v3541_v1 = vor.u32 %v4251_v48, %v3540_v34  ;;  %v4227_v12 = vld [vmem:[#allocation2 + $0x4] sm:$0xf0] }
 0x1f1   :  { %5965 = vst [vmem:[#allocation14_spill] sm:$0xff] %v5475_v46  ;;  %1208 = vmatmul.bf16.gmra.mxu0 %v4904_v16  ;;  %v5486_v46 = vpop.f32.mrf.mxu2 }
 0x1f2   :  { %1277 = vmatmul.bf16.gmra.mxu1 %v4928_v25  ;;  %1931 = vmatpush.bf16.msra.mxu3 %v3541_v1 }
 0x1f6   :  { %v955_v8 = vpop.f32.mrf.mxu0 }
 0x1f7   :  { %v5482_v2 = vadd.f32 %v955_v8, %v5297_v14  ;;  %v5484_v32 = vpop.f32.mrf.mxu1  ;;  %v5494_v14 = vpop.f32.mrf.mxu3 }
 0x1f8   :  { %5968 = vst [vmem:[#allocation17_spill] sm:$0xff] %v5484_v32  ;;  %v3444_v32 = vld [vmem:[#allocation2] sm:$0xf] }
 0x1f9   :  { %5967 = vst [vmem:[#allocation16_spill] sm:$0xff] %v5482_v2  ;;  %v5502_v31 = vpop.f32.mrf.mxu2 }
 0x1fe   :  { %v958_v16 = vpop.f32.mrf.mxu0 }
 0x1ff   :  { %v5489_v25 = vadd.f32 %v958_v16, %v5304_v27  ;;  %v5491_v29 = vpop.f32.mrf.mxu1  ;;  %v5504_v34 = vpop.f32.mrf.mxu3  ;;  %v3532_v16 = vld [vmem:[#allocation2 + $0xb0] sm:$0xf] }
 0x200   :  { %5970 = vst [vmem:[#allocation19_spill] sm:$0xff] %v5491_v29 }
 0x201   :  { %5969 = vst [vmem:[#allocation18_spill] sm:$0xff] %v5489_v25  ;;  %1213 = vmatmul.bf16.gmra.mxu0 %v4930_v26  ;;  %v5512_v26 = vpop.f32.mrf.mxu2 }
 0x202   :  { %1282 = vmatmul.bf16.gmra.mxu1 %v4954_v35  ;;  %v3468_v35 = vld [vmem:[#allocation2 + $0x30] sm:$0xf] }
 0x206   :  { %v960_v8 = vpop.f32.mrf.mxu0 }
 0x207   :  { %v5498_v11 = vadd.f32 %v960_v8, %v5319_v17  ;;  %v5500_v22 = vpop.f32.mrf.mxu1  ;;  %v4233_v17 = vld [vmem:[#allocation2 + $0x34] sm:$0xf0]  ;;  %v5515_v8 = vpop.f32.mrf.mxu3 }
 0x208   :  { %5972 = vst [vmem:[#allocation21_spill] sm:$0xff] %v5500_v22  ;;  %v3469_v25 = vor.u32 %v4233_v17, %v3468_v35  ;;  %v4249_v22 = vld [vmem:[#allocation2 + $0xb4] sm:$0xf0]  ;;  %v3460_v35 = vld [vmem:[#allocation2 + $0x20] sm:$0xf] }
 0x209   :  { %5971 = vst [vmem:[#allocation20_spill] sm:$0xff] %v5498_v11 }
 0x20a   :  { %1903 = vmatpush.bf16.msra.mxu2 %v3469_v25 }
 0x20e   :  { %v963_v27 = vpop.f32.mrf.mxu0 }
 0x20f   :  { %v5507_v48 = vadd.f32 %v963_v27, %v5326_v30  ;;  %v5509_v1 = vpop.f32.mrf.mxu1  ;;  %v3533_v27 = vor.u32 %v4249_v22, %v3532_v16  ;;  %v5529_v29 = vpop.f32.mrf.mxu3 }
 0x210   :  { %5974 = vst [vmem:[#allocation23_spill] sm:$0xff] %v5509_v1 }
 0x211   :  { %5973 = vst [vmem:[#allocation22_spill] sm:$0xff] %v5507_v48  ;;  %1218 = vmatmul.bf16.gmra.mxu0 %v4956_v36  ;;  %1932 = vmatpush.bf16.msra.mxu3 %v3533_v27  ;;  %v5522_v36 = vpop.f32.mrf.mxu2 }
 0x212   :  { %1287 = vmatmul.bf16.gmra.mxu1 %v4968_v39 }
 0x216   :  { %v965_v11 = vpop.f32.mrf.mxu0 }
 0x217   :  { %v5518_v2 = vadd.f32 %v965_v11, %v5329_v54  ;;  %v5520_v30 = vpop.f32.mrf.mxu1  ;;  %v4427_v54 = vld [vmem:[%s5947_s2] sm:$0x3]  ;;  %v5547_v27 = vpop.f32.mrf.mxu3 }
 0x218   :  { %5976 = vst [vmem:[#allocation25_spill] sm:$0xff] %v5520_v30  ;;  %v5536_v25 = vperm.slane %v4427_v54, 1  ;;  %v3452_v54 = vld [vmem:[#allocation2 + $0x10] sm:$0xf] }
 0x219   :  { %5975 = vst [vmem:[#allocation24_spill] sm:$0xff] %v5518_v2  ;;  %v5538_v11 = vpop.f32.mrf.mxu2 }
 0x21e   :  { %v968_v48 = vpop.f32.mrf.mxu0 }
 0x21f   :  { %v5525_v39 = vadd.f32 %v968_v48, %v5348_v44  ;;  %v5527_v1 = vpop.f32.mrf.mxu1  ;;  %v4231_v44 = vld [vmem:[#allocation2 + $0x24] sm:$0xf0]  ;;  %v983_v48 = vadd.f32 %v5353_v19, %v5536_v25  ;;  %v985_v19 = vadd.f32 %v5364_v20, %v5536_v25  ;;  %v4272_v20 = vld [vmem:[#allocation2 + $0x174] sm:$0xf] }
 0x220   :  { %5978 = vst [vmem:[#allocation27_spill] sm:$0xff] %v5527_v1 }
 0x221   :  { %5977 = vst [vmem:[#allocation26_spill] sm:$0xff] %v5525_v39  ;;  %1223 = vmatmul.bf16.gmra.mxu0 %v4970_v40  ;;  %v1052_v16 = vadd.f32 %v1051_v15, %v983_v48  ;;  %v4229_v39 = vld [vmem:[#allocation2 + $0x14] sm:$0xf0]  ;;  %v4256_v15 = vld [vmem:[#allocation2 + $0xf4] sm:$0xf] }
 0x222   :  { %1292 = vmatmul.bf16.gmra.mxu1 %v4999_v57  ;;  %v3461_v57 = vor.u32 %v4231_v44, %v3460_v35  ;;  %v3453_v2 = vor.u32 %v4229_v39, %v3452_v54  ;;  %v3566_v35 = vld [vmem:[#allocation2 + $0xf8] sm:$0xf0]  ;;  %v1054_v44 = vadd.f32 %v5486_v46, %v985_v19  ;;  %v4254_v46 = vld [vmem:[#allocation2 + $0xe4] sm:$0xf]  ;;  %v3558_v54 = vld [vmem:[#allocation2 + $0xe8] sm:$0xf0] }
 0x223   :  { %v1121_v1 = vadd.f32 %v1120_v18, %v1052_v16  ;;  %v3524_v18 = vld [vmem:[#allocation2 + $0xa0] sm:$0xf]  ;;  %v3569_v39 = vor.u32 %v4256_v15, %v3566_v35  ;;  %v5557_v16 = vpop.f32.mrf.mxu3 }
 0x224   :  { %1904 = vmatpush.bf16.msra.mxu2 %v3461_v57 }
 0x225   :  { %2073 = vmatpush.bf16.msrb.mxu0 %v3569_v39 }
 0x226   :  { %v970_v22 = vpop.f32.mrf.mxu0 }
 0x227   :  { %v5543_v17 = vadd.f32 %v970_v22, %v5355_v47  ;;  %v5545_v40 = vpop.f32.mrf.mxu1 }
 0x228   :  { %5980 = vst [vmem:[#allocation29_spill] sm:$0xff] %v5545_v40  ;;  %1905 = vmatpush.bf16.msra.mxu2 %v3453_v2  ;;  %v5551_v40 = vpop.f32.mrf.mxu2  ;;  %v4247_v2 = vld [vmem:[#allocation2 + $0xa4] sm:$0xf0] }
 0x229   :  { %5979 = vst [vmem:[#allocation28_spill] sm:$0xff] %v5543_v17  ;;  %v3445_v17 = vor.u32 %v4227_v12, %v3444_v32  ;;  %v3525_v57 = vor.u32 %v4247_v2, %v3524_v18  ;;  %v1318_v12 = vmax.f32 %v5351_v60, 0.0  ;;  %v988_v60 = vadd.f32 %v5381_v43, %v5536_v25  ;;  %v4252_v18 = vld [vmem:[#allocation2 + $0xd4] sm:$0xf]  ;;  %v3550_v2 = vld [vmem:[#allocation2 + $0xd8] sm:$0xf0] }
 0x22b   :  { %1933 = vmatpush.bf16.msra.mxu3 %v3525_v57  ;;  %v1057_v39 = vadd.f32 %v5502_v31, %v988_v60 }
 0x22c   :  { %1906 = vmatpush.bf16.msra.mxu2 %v3445_v17  ;;  %v3561_v17 = vor.u32 %v4254_v46, %v3558_v54  ;;  %v3614_v46 = vld [vmem:[#allocation2 + $0x158] sm:$0xf0] }
 0x22e   :  { %v1189_v30 = vpop.f32.mrf.mxu0  ;;  %2074 = vmatpush.bf16.msrb.mxu0 %v3561_v17  ;;  %v3542_v17 = vld [vmem:[#allocation2 + $0xc8] sm:$0xf0] }
 0x22f   :  { %v1190_v47 = vadd.f32 %v1189_v30, %v1121_v1  ;;  %v1258_v22 = vpop.f32.mrf.mxu1  ;;  %v3630_v1 = vld [vmem:[#allocation2 + $0x178] sm:$0xf0] }
 0x230   :  { %v3633_v30 = vor.u32 %v4272_v20, %v3630_v1  ;;  %v3516_v20 = vld [vmem:[#allocation2 + $0x90] sm:$0xf]  ;;  %v4245_v1 = vld [vmem:[#allocation2 + $0x94] sm:$0xf0] }
 0x231   :  { %v1259_v48 = vadd.f32 %v1258_v22, %v1190_v47  ;;  %1228 = vmatmul.bf16.gmra.mxu0 %v5002_v61  ;;  %v1123_v61 = vadd.f32 %v5494_v14, %v1054_v44  ;;  %v4270_v47 = vld [vmem:[#allocation2 + $0x164] sm:$0xf]  ;;  %v3622_v22 = vld [vmem:[#allocation2 + $0x168] sm:$0xf0]  ;;  %v3553_v14 = vor.u32 %v4252_v18, %v3550_v2  ;;  %v5565_v44 = vpop.f32.mrf.mxu2  ;;  %v3517_v43 = vor.u32 %v4245_v1, %v3516_v20  ;;  %v4248_v20 = vld [vmem:[#allocation2 + $0xb4] sm:$0xf] }
 0x232   :  { %1297 = vmatmul.bf16.gmra.mxu1 %v5073_v58  ;;  %v3534_v1 = vld [vmem:[#allocation2 + $0xb8] sm:$0xf0] }
 0x233   :  { %v1319_v32 = vmax.f32 %v1259_v48, 0.0  ;;  %2102 = vmatpush.bf16.msrb.mxu1 %v3633_v30  ;;  %v3625_v48 = vor.u32 %v4270_v47, %v3622_v22  ;;  %2075 = vmatpush.bf16.msrb.mxu0 %v3553_v14  ;;  %v5571_v22 = vpop.f32.mrf.mxu3 }
 0x234   :  { %1934 = vmatpush.bf16.msra.mxu3 %v3517_v43  ;;  %v3598_v43 = vld [vmem:[#allocation2 + $0x138] sm:$0xf0] }
 0x235   :  { %v5560_v19 = vmax.f32 %v1318_v12, %v1319_v32  ;;  %v4268_v12 = vld [vmem:[#allocation2 + $0x154] sm:$0xf]  ;;  %v1320_v32 = vmax.f32 %v5362_v42, 0.0  ;;  %v4266_v42 = vld [vmem:[#allocation2 + $0x144] sm:$0xf] }
 0x236   :  { %v1191_v58 = vpop.f32.mrf.mxu0  ;;  %v3617_v54 = vor.u32 %v4268_v12, %v3614_v46  ;;  %v1322_v46 = vmax.f32 %v5379_v41, 0.0 }
 0x237   :  { %v1192_v15 = vadd.f32 %v1191_v58, %v1123_v61  ;;  %v1260_v35 = vpop.f32.mrf.mxu1  ;;  %2103 = vmatpush.bf16.msrb.mxu1 %v3625_v48  ;;  %v4250_v61 = vld [vmem:[#allocation2 + $0xc4] sm:$0xf]  ;;  %v1126_v58 = vadd.f32 %v5504_v34, %v1057_v39  ;;  %v990_v48 = vadd.f32 %v5390_v4, %v5536_v25  ;;  %v3606_v39 = vld [vmem:[#allocation2 + $0x148] sm:$0xf0]  ;;  %v4264_v4 = vld [vmem:[#allocation2 + $0x134] sm:$0xf] }
 0x238   :  { %v3545_v47 = vor.u32 %v4250_v61, %v3542_v17  ;;  %v3609_v14 = vor.u32 %v4266_v42, %v3606_v39  ;;  %v3601_v61 = vor.u32 %v4264_v4, %v3598_v43  ;;  %v3590_v42 = vld [vmem:[#allocation2 + $0x128] sm:$0xf0]  ;;  %v3518_v39 = vld [vmem:[#allocation2 + $0x98] sm:$0xf0]  ;;  %v4242_v4 = vld [vmem:[#allocation2 + $0x84] sm:$0xf] }
 0x239   :  { %v1261_v57 = vadd.f32 %v1260_v35, %v1192_v15  ;;  %v3508_v15 = vld [vmem:[#allocation2 + $0x80] sm:$0xf]  ;;  %v4243_v35 = vld [vmem:[#allocation2 + $0x84] sm:$0xf0]  ;;  %v1059_v12 = vadd.f32 %v5512_v26, %v990_v48  ;;  %v5581_v17 = vpop.f32.mrf.mxu2  ;;  %v3510_v43 = vld [vmem:[#allocation2 + $0x88] sm:$0xf0] }
 0x23a   :  { %2076 = vmatpush.bf16.msrb.mxu0 %v3545_v47  ;;  %v3509_v34 = vor.u32 %v4243_v35, %v3508_v15  ;;  %v3526_v47 = vld [vmem:[#allocation2 + $0xa8] sm:$0xf0]  ;;  %v4262_v35 = vld [vmem:[#allocation2 + $0x124] sm:$0xf] }
 0x23b   :  { %v1321_v30 = vmax.f32 %v1261_v57, 0.0  ;;  %2104 = vmatpush.bf16.msrb.mxu1 %v3617_v54  ;;  %v1128_v26 = vadd.f32 %v5515_v8, %v1059_v12  ;;  %v3582_v12 = vld [vmem:[#allocation2 + $0x118] sm:$0xf0] }
 0x23c   :  { %1935 = vmatpush.bf16.msra.mxu3 %v3509_v34  ;;  %v4244_v34 = vld [vmem:[#allocation2 + $0x94] sm:$0xf] }
 0x23d   :  { %v5569_v31 = vmax.f32 %v1320_v32, %v1321_v30  ;;  %v3537_v30 = vor.u32 %v4248_v20, %v3534_v1  ;;  %v3521_v20 = vor.u32 %v4244_v34, %v3518_v39  ;;  %v4260_v1 = vld [vmem:[#allocation2 + $0x114] sm:$0xf] }
 0x23e   :  { %v1194_v60 = vpop.f32.mrf.mxu0 }
 0x23f   :  { %v1390_v18 = vmax.f32 %v5560_v19, %v5569_v31  ;;  %v1195_v2 = vadd.f32 %v1194_v60, %v1126_v58  ;;  %v1263_v57 = vpop.f32.mrf.mxu1  ;;  %2105 = vmatpush.bf16.msrb.mxu1 %v3609_v14  ;;  %2077 = vmatpush.bf16.msrb.mxu0 %v3537_v30  ;;  %v4246_v58 = vld [vmem:[#allocation2 + $0xa4] sm:$0xf]  ;;  %v998_v19 = vadd.f32 %v5415_v6, %v5536_v25 }
 0x241   :  { %v1264_v32 = vadd.f32 %v1263_v57, %v1195_v2  ;;  %1233 = vmatmul.bf16.gmra.mxu0 %v5083_v5  ;;  %v3529_v5 = vor.u32 %v4246_v58, %v3526_v47  ;;  %v3593_v2 = vor.u32 %v4262_v35, %v3590_v42  ;;  %v5586_v57 = vpop.f32.mrf.mxu3  ;;  %v995_v58 = vadd.f32 %v5404_v23, %v5536_v25 }
 0x242   :  { %1302 = vmatmul.bf16.gmra.mxu1 %v5143_v63  ;;  %v993_v63 = vadd.f32 %v5395_v13, %v5536_v25  ;;  %v3585_v13 = vor.u32 %v4260_v1, %v3582_v12  ;;  %v1000_v12 = vadd.f32 %v5424_v38, %v5536_v25 }
 0x243   :  { %v1323_v54 = vmax.f32 %v1264_v32, 0.0  ;;  %2106 = vmatpush.bf16.msrb.mxu1 %v3601_v61  ;;  %2078 = vmatpush.bf16.msrb.mxu0 %v3529_v5  ;;  %v1324_v32 = vmax.f32 %v5388_v3, 0.0  ;;  %v3513_v61 = vor.u32 %v4242_v4, %v3510_v43  ;;  %v3574_v5 = vld [vmem:[#allocation2 + $0x108] sm:$0xf0]  ;;  %v5981_v43 = vld [vmem:[#allocation9_spill] sm:$0xff] }
 0x244   :  { %v1062_v14 = vadd.f32 %v5522_v36, %v993_v63  ;;  %v5593_v36 = vpop.f32.mrf.mxu2  ;;  %v1064_v63 = vadd.f32 %v5538_v11, %v995_v58 }
 0x245   :  { %v1368_v60 = vmax.f32 %v1322_v46, %v1323_v54 }
 0x246   :  { %v1196_v15 = vpop.f32.mrf.mxu0  ;;  %v1131_v46 = vadd.f32 %v5529_v29, %v1062_v14 }
 0x247   :  { %v1197_v48 = vadd.f32 %v1196_v15, %v1128_v26  ;;  %v1265_v41 = vpop.f32.mrf.mxu1  ;;  %2107 = vmatpush.bf16.msrb.mxu1 %v3593_v2  ;;  %2079 = vmatpush.bf16.msrb.mxu0 %v3521_v20  ;;  %v4258_v26 = vld [vmem:[#allocation2 + $0x104] sm:$0xf]  ;;  %v1133_v2 = vadd.f32 %v5547_v27, %v1064_v63 }
 0x248   :  { %v3577_v42 = vor.u32 %v4258_v26, %v3574_v5 }
 0x249   :  { %v1266_v8 = vadd.f32 %v1265_v41, %v1197_v48  ;;  %v1142_v23 = vpop.f32.mrf.mxu3 }
 0x24b   :  { %v1325_v30 = vmax.f32 %v1266_v8, 0.0  ;;  %2108 = vmatpush.bf16.msrb.mxu1 %v3585_v13  ;;  %2080 = vmatpush.bf16.msrb.mxu0 %v3513_v61  ;;  %v1069_v13 = vadd.f32 %v5565_v44, %v1000_v12  ;;  %v1003_v44 = vadd.f32 %v5429_v0, %v5536_v25  ;;  %v4289_v12 = vld [vmem:[#allocation2 + $0x1f4] sm:$0xf0] }
 0x24c   :  { %v5608_v39 = vpop.f32.mrf.mxu2 }
 0x24d   :  { %v1369_v54 = vmax.f32 %v1324_v32, %v1325_v30  ;;  %v1138_v58 = vadd.f32 %v5571_v22, %v1069_v13 }
 0x24e   :  { %v1199_v47 = vpop.f32.mrf.mxu0 }
 0x24f   :  { %v1391_v15 = vmax.f32 %v1368_v60, %v1369_v54  ;;  %v1200_v3 = vadd.f32 %v1199_v47, %v1131_v46  ;;  %v1268_v35 = vpop.f32.mrf.mxu1  ;;  %v1326_v60 = vmax.f32 %v5393_v33, 0.0  ;;  %2109 = vmatpush.bf16.msrb.mxu1 %v3577_v42  ;;  %v1328_v33 = vmax.f32 %v5402_v45, 0.0  ;;  %v5982_v46 = vld [vmem:[#allocation10_spill] sm:$0xff]  ;;  %v5983_v54 = vld [vmem:[#allocation11_spill] sm:$0xff] }
 0x250   :  { %v1332_v42 = vmax.f32 %v5422_v28, 0.0 }
 0x251   :  { %v5599_v29 = vpack.c.bf16 %v1391_v15, %v1390_v18  ;;  %v1269_v48 = vadd.f32 %v1268_v35, %v1200_v3  ;;  %1238 = vmatmul.bf16.gmra.mxu0 %v5152_v10  ;;  %v1067_v10 = vadd.f32 %v5551_v40, %v998_v19  ;;  %v5612_v8 = vpop.f32.mrf.mxu3  ;;  %v1072_v3 = vadd.f32 %v5581_v17, %v1003_v44  ;;  %v3620_v44 = vld [vmem:[#allocation2 + $0x160] sm:$0xf] }
 0x252   :  { %1307 = vmatmul.bf16.gmra.mxu1 %v5183_v49 }
 0x253   :  { %v1327_v41 = vmax.f32 %v1269_v48, 0.0  ;;  %1907 = vmatmul.bf16.vlgmr.msra.gmra.mxu2 %v5599_v29  ;;  %v1136_v20 = vadd.f32 %v5557_v16, %v1067_v10  ;;  %v1330_v16 = vmax.f32 %v5983_v54, 0.0 }
 0x254   :  { %v5619_v45 = vpop.f32.mrf.mxu2 }
 0x255   :  { %v1370_v11 = vmax.f32 %v1326_v60, %v1327_v41  ;;  %v1141_v60 = vadd.f32 %v5586_v57, %v1072_v3 }
 0x256   :  { %v1201_v34 = vpop.f32.mrf.mxu0 }
 0x257   :  { %v1202_v31 = vadd.f32 %v1201_v34, %v1133_v2  ;;  %v1270_v18 = vpop.f32.mrf.mxu1  ;;  %v1005_v2 = vadd.f32 %v5436_v59, %v5536_v25 }
 0x259   :  { %v1271_v49 = vadd.f32 %v1270_v18, %v1202_v31  ;;  %v5624_v47 = vpop.f32.mrf.mxu3  ;;  %v1074_v17 = vadd.f32 %v5593_v36, %v1005_v2  ;;  %v5984_v18 = vld [vmem:[#allocation12_spill] sm:$0xff] }
 0x25a   :  { %v1334_v10 = vmax.f32 %v5984_v18, 0.0 }
 0x25b   :  { %v1329_v14 = vmax.f32 %v1271_v49, 0.0  ;;  %v1143_v57 = vadd.f32 %v1142_v23, %v1074_v17 }
 0x25c   :  { %v5630_v48 = vpop.f32.mrf.mxu2 }
 0x25d   :  { %v1371_v27 = vmax.f32 %v1328_v33, %v1329_v14  ;;  %v3628_v33 = vld [vmem:[#allocation2 + $0x170] sm:$0xf]  ;;  %v4273_v14 = vld [vmem:[#allocation2 + $0x174] sm:$0xf0] }
 0x25e   :  { %v1204_v1 = vpop.f32.mrf.mxu0  ;;  %v3629_v36 = vor.u32 %v4273_v14, %v3628_v33 }
 0x25f   :  { %v1392_v6 = vmax.f32 %v1370_v11, %v1371_v27  ;;  %v1205_v32 = vadd.f32 %v1204_v1, %v1136_v20  ;;  %v1273_v30 = vpop.f32.mrf.mxu1  ;;  %v3692_v20 = vld [vmem:[#allocation2 + $0x1f0] sm:$0xf] }
 0x260   :  { %v3693_v13 = vor.u32 %v4289_v12, %v3692_v20  ;;  %1957 = vmatpush.bf16.msrb.mxu2 %v3629_v36 }
 0x261   :  { %v1483_v4 = vpack.c.bf16 %v1392_v6, %v1391_v15  ;;  %v1274_v40 = vadd.f32 %v1273_v30, %v1205_v32  ;;  %1243 = vmatmul.bf16.gmra.mxu0 %v5981_v43  ;;  %v5635_v19 = vpop.f32.mrf.mxu3  ;;  %v1336_v43 = vmax.f32 %v5434_v62, 0.0 }
 0x262   :  { %1312 = vmatmul.bf16.gmra.mxu1 %v5982_v46  ;;  %1986 = vmatpush.bf16.msrb.mxu3 %v3693_v13 }
 0x263   :  { %v1331_v61 = vmax.f32 %v1274_v40, 0.0  ;;  %1936 = vmatmul.bf16.vlgmr.msra.gmra.mxu3 %v1483_v4 }
 0x264   :  { %v5643_v27 = vpop.f32.mrf.mxu2 }
 0x265   :  { %v1372_v38 = vmax.f32 %v1330_v16, %v1331_v61 }
 0x266   :  { %v1206_v26 = vpop.f32.mrf.mxu0 }
 0x267   :  { %v1207_v5 = vadd.f32 %v1206_v26, %v1138_v58  ;;  %v1275_v15 = vpop.f32.mrf.mxu1 }
 0x269   :  { %v1276_v35 = vadd.f32 %v1275_v15, %v1207_v5  ;;  %v5648_v23 = vpop.f32.mrf.mxu3  ;;  %v4271_v5 = vld [vmem:[#allocation2 + $0x164] sm:$0xf0] }
 0x26a   :  { %v3621_v3 = vor.u32 %v4271_v5, %v3620_v44  ;;  %v3660_v44 = vld [vmem:[#allocation2 + $0x1b0] sm:$0xf]  ;;  %v4281_v5 = vld [vmem:[#allocation2 + $0x1b4] sm:$0xf0] }
 0x26b   :  { %v1333_v63 = vmax.f32 %v1276_v35, 0.0  ;;  %v4287_v35 = vld [vmem:[#allocation2 + $0x1e4] sm:$0xf0] }
 0x26c   :  { %v5654_v15 = vpop.f32.mrf.mxu2  ;;  %1958 = vmatpush.bf16.msrb.mxu2 %v3621_v3  ;;  %v3661_v3 = vor.u32 %v4281_v5, %v3660_v44  ;;  %v3636_v44 = vld [vmem:[#allocation2 + $0x180] sm:$0xf]  ;;  %v4275_v5 = vld [vmem:[#allocation2 + $0x184] sm:$0xf0] }
 0x26d   :  { %v1373_v22 = vmax.f32 %v1332_v42, %v1333_v63 }
 0x26e   :  { %v1209_v41 = vpop.f32.mrf.mxu0 }
 0x26f   :  { %v1393_v11 = vmax.f32 %v1372_v38, %v1373_v22  ;;  %v1210_v34 = vadd.f32 %v1209_v41, %v1141_v60  ;;  %v1278_v0 = vpop.f32.mrf.mxu1  ;;  %v1338_v60 = vmax.f32 %v5439_v9, 0.0  ;;  %v1013_v9 = vadd.f32 %v5453_v56, %v5536_v25  ;;  %v3604_v56 = vld [vmem:[#allocation2 + $0x140] sm:$0xf] }
 0x271   :  { %v1279_v31 = vadd.f32 %v1278_v0, %v1210_v34  ;;  %2081 = vmatmul.bf16.vlgmr.msrb.gmra.mxu0 %v1483_v4  ;;  %v5638_v28 = vpack.c.bf16 %v1393_v11, %v1392_v6  ;;  %v1008_v6 = vadd.f32 %v5441_v50, %v5536_v25  ;;  %v1010_v50 = vadd.f32 %v5448_v21, %v5536_v25  ;;  %v5662_v22 = vpop.f32.mrf.mxu3  ;;  %v3612_v34 = vld [vmem:[#allocation2 + $0x150] sm:$0xf] }
 0x272   :  { %v3676_v0 = vld [vmem:[#allocation2 + $0x1d0] sm:$0xf] }
 0x273   :  { %v1335_v49 = vmax.f32 %v1279_v31, 0.0  ;;  %1912 = vmatmul.bf16.gmra.mxu2 %v5638_v28  ;;  %2110 = vmatmul.bf16.vlgmr.msrb.gmra.mxu1 %v5638_v28  ;;  %v1077_v4 = vadd.f32 %v5608_v39, %v1008_v6  ;;  %v3684_v39 = vld [vmem:[#allocation2 + $0x1e0] sm:$0xf]  ;;  %v1079_v62 = vadd.f32 %v5619_v45, %v1010_v50  ;;  %v4269_v45 = vld [vmem:[#allocation2 + $0x154] sm:$0xf0]  ;;  %v1342_v50 = vmax.f32 %v5451_v37, 0.0 }
 0x274   :  { %v3613_v17 = vor.u32 %v4269_v45, %v3612_v34  ;;  %v4285_v31 = vld [vmem:[#allocation2 + $0x1d4] sm:$0xf0]  ;;  %v5668_v33 = vpop.f32.mrf.mxu2  ;;  %v4267_v6 = vld [vmem:[#allocation2 + $0x144] sm:$0xf0]  ;;  %v1018_v37 = vadd.f32 %v5465_v53, %v5536_v25  ;;  %v1344_v45 = vmax.f32 %v5458_v52, 0.0 }
 0x275   :  { %v1374_v59 = vmax.f32 %v1334_v10, %v1335_v49  ;;  %v1146_v54 = vadd.f32 %v5612_v8, %v1077_v4  ;;  %v3685_v8 = vor.u32 %v4287_v35, %v3684_v39  ;;  %v1148_v41 = vadd.f32 %v5624_v47, %v1079_v62  ;;  %v3588_v35 = vld [vmem:[#allocation2 + $0x120] sm:$0xf]  ;;  %v4263_v62 = vld [vmem:[#allocation2 + $0x124] sm:$0xf0]  ;;  %v4261_v34 = vld [vmem:[#allocation2 + $0x114] sm:$0xf0] }
 0x276   :  { %v1211_v1 = vpop.f32.mrf.mxu0  ;;  %v3677_v49 = vor.u32 %v4285_v31, %v3676_v0  ;;  %1959 = vmatpush.bf16.msrb.mxu2 %v3613_v17  ;;  %v1340_v47 = vmax.f32 %v5446_v24, 0.0  ;;  %v3605_v4 = vor.u32 %v4267_v6, %v3604_v56  ;;  %v1346_v6 = vmax.f32 %v5463_v7, 0.0 }
 0x277   :  { %v1212_v32 = vadd.f32 %v1211_v1, %v1143_v57  ;;  %v1280_v30 = vpop.f32.mrf.mxu1  ;;  %1987 = vmatpush.bf16.msrb.mxu3 %v3685_v8  ;;  %v1082_v57 = vadd.f32 %v5630_v48, %v1013_v9 }
 0x279   :  { %v1281_v40 = vadd.f32 %v1280_v30, %v1212_v32  ;;  %v1151_v20 = vadd.f32 %v5635_v19, %v1082_v57  ;;  %v5672_v36 = vpop.f32.mrf.mxu3  ;;  %v1015_v32 = vadd.f32 %v5460_v55, %v5536_v25  ;;  %v3668_v19 = vld [vmem:[#allocation2 + $0x1c0] sm:$0xf] }
 0x27a   :  { %1960 = vmatpush.bf16.msrb.mxu2 %v3605_v4 }
 0x27b   :  { %v1337_v46 = vmax.f32 %v1281_v40, 0.0  ;;  %1988 = vmatpush.bf16.msrb.mxu3 %v3677_v49  ;;  %v1084_v40 = vadd.f32 %v5643_v27, %v1015_v32  ;;  %v1020_v49 = vadd.f32 %v5472_v51, %v5536_v25 }
 0x27d   :  { %v1375_v16 = vmax.f32 %v1336_v43, %v1337_v46  ;;  %v4283_v46 = vld [vmem:[#allocation2 + $0x1c4] sm:$0xf0]  ;;  %v1153_v27 = vadd.f32 %v5648_v23, %v1084_v40  ;;  %v3580_v23 = vld [vmem:[#allocation2 + $0x110] sm:$0xf] }
 0x27e   :  { %v1214_v61 = vpop.f32.mrf.mxu0  ;;  %v5985_v40 = vld [vmem:[#allocation15_spill] sm:$0xff] }
 0x27f   :  { %v1394_v58 = vmax.f32 %v1374_v59, %v1375_v16  ;;  %v1215_v38 = vadd.f32 %v1214_v61, %v1146_v54  ;;  %v1283_v26 = vpop.f32.mrf.mxu1  ;;  %v3669_v54 = vor.u32 %v4283_v46, %v3668_v19  ;;  %v3596_v16 = vld [vmem:[#allocation2 + $0x130] sm:$0xf]  ;;  %v4265_v61 = vld [vmem:[#allocation2 + $0x134] sm:$0xf0] }
 0x280   :  { %v3597_v55 = vor.u32 %v4265_v61, %v3596_v16  ;;  %v5986_v61 = vld [vmem:[#allocation13_spill] sm:$0xff] }
 0x281   :  { %v1284_v42 = vadd.f32 %v1283_v26, %v1215_v38  ;;  %v5657_v63 = vpack.c.bf16 %v1394_v58, %v1393_v11  ;;  %v1091_v26 = vpop.f32.mrf.mxu2  ;;  %1989 = vmatpush.bf16.msrb.mxu3 %v3669_v54 }
 0x282   :  { %1961 = vmatpush.bf16.msrb.mxu2 %v3597_v55 }
 0x283   :  { %v1339_v21 = vmax.f32 %v1284_v42, 0.0  ;;  %1941 = vmatmul.bf16.gmra.mxu3 %v5657_v63  ;;  %2086 = vmatmul.bf16.gmra.mxu0 %v5657_v63 }
 0x285   :  { %v1376_v2 = vmax.f32 %v1338_v60, %v1339_v21  ;;  %v3589_v60 = vor.u32 %v4263_v62, %v3588_v35  ;;  %v1160_v21 = vpop.f32.mrf.mxu3  ;;  %1990 = vmatpush.bf16.msrb.mxu3 %v3661_v3 }
 0x286   :  { %v1216_v11 = vpop.f32.mrf.mxu0 }
 0x287   :  { %v1217_v18 = vadd.f32 %v1216_v11, %v1148_v41  ;;  %v1285_v10 = vpop.f32.mrf.mxu1  ;;  %v1087_v41 = vadd.f32 %v5654_v15, %v1018_v37  ;;  %1962 = vmatpush.bf16.msrb.mxu2 %v3589_v60  ;;  %v3581_v11 = vor.u32 %v4261_v34, %v3580_v23 }
 0x289   :  { %v1286_v59 = vadd.f32 %v1285_v10, %v1217_v18  ;;  %v1156_v17 = vadd.f32 %v5662_v22, %v1087_v41  ;;  %v1093_v53 = vpop.f32.mrf.mxu2  ;;  %v3572_v18 = vld [vmem:[#allocation2 + $0x100] sm:$0xf]  ;;  %v4259_v10 = vld [vmem:[#allocation2 + $0x104] sm:$0xf0] }
 0x28a   :  { %v4279_v22 = vld [vmem:[#allocation2 + $0x1a4] sm:$0xf0] }
 0x28b   :  { %v1341_v14 = vmax.f32 %v1286_v59, 0.0  ;;  %1963 = vmatpush.bf16.msrb.mxu2 %v3581_v11  ;;  %v4305_v11 = vld [vmem:[#allocation2 + $0x274] sm:$0xf0] }
 0x28d   :  { %v1377_v1 = vmax.f32 %v1340_v47, %v1341_v14  ;;  %v3573_v47 = vor.u32 %v4259_v10, %v3572_v18  ;;  %v1089_v14 = vadd.f32 %v5668_v33, %v1020_v49  ;;  %v3644_v33 = vld [vmem:[#allocation2 + $0x190] sm:$0xf]  ;;  %v3502_v18 = vld [vmem:[#allocation2 + $0x78] sm:$0xf0] }
 0x28e   :  { %v1219_v12 = vpop.f32.mrf.mxu0  ;;  %v5989_v10 = vld [vmem:[#allocation19_spill] sm:$0xff] }
 0x28f   :  { %v1395_v30 = vmax.f32 %v1376_v2, %v1377_v1  ;;  %v1220_v48 = vadd.f32 %v1219_v12, %v1151_v20  ;;  %v1288_v13 = vpop.f32.mrf.mxu1  ;;  %v3652_v1 = vld [vmem:[#allocation2 + $0x1a0] sm:$0xf]  ;;  %1964 = vmatpush.bf16.msrb.mxu2 %v3573_v47  ;;  %v1162_v12 = vpop.f32.mrf.mxu3  ;;  %v1158_v51 = vadd.f32 %v5672_v36, %v1089_v14  ;;  %v1028_v49 = vadd.f32 %v5989_v10, %v5536_v25 }
 0x290   :  { %v3653_v56 = vor.u32 %v4279_v22, %v3652_v1  ;;  %v5995_v10 = vld [vmem:[#allocation25_spill] sm:$0xff] }
 0x291   :  { %v5677_v43 = vpack.c.bf16 %v1395_v30, %v1394_v58  ;;  %v1289_v24 = vadd.f32 %v1288_v13, %v1220_v48  ;;  %v4277_v13 = vld [vmem:[#allocation2 + $0x194] sm:$0xf0]  ;;  %v1096_v54 = vpop.f32.mrf.mxu2 }
 0x292   :  { %1991 = vmatpush.bf16.msrb.mxu3 %v3653_v56  ;;  %v3645_v4 = vor.u32 %v4277_v13, %v3644_v33  ;;  %v1097_v47 = vadd.f32 %v1096_v54, %v1028_v49  ;;  %v3494_v54 = vld [vmem:[#allocation2 + $0x68] sm:$0xf0]  ;;  %v1035_v49 = vadd.f32 %v5995_v10, %v5536_v25 }
 0x293   :  { %v1343_v38 = vmax.f32 %v1289_v24, 0.0  ;;  %1917 = vmatmul.bf16.gmra.mxu2 %v5677_v43  ;;  %2115 = vmatmul.bf16.gmra.mxu1 %v5677_v43  ;;  %v1023_v24 = vadd.f32 %v5985_v40, %v5536_v25  ;;  %v4303_v40 = vld [vmem:[#allocation2 + $0x264] sm:$0xf0] }
 0x295   :  { %v1378_v58 = vmax.f32 %v1342_v50, %v1343_v38  ;;  %v1092_v7 = vadd.f32 %v1091_v26, %v1023_v24  ;;  %v1348_v50 = vmax.f32 %v5986_v61, 0.0  ;;  %v4238_v24 = vld [vmem:[#allocation2 + $0x64] sm:$0xf] }
 0x296   :  { %v1221_v39 = vpop.f32.mrf.mxu0  ;;  %1992 = vmatpush.bf16.msrb.mxu3 %v3645_v4  ;;  %v3748_v4 = vld [vmem:[#allocation2 + $0x260] sm:$0xf] }
 0x297   :  { %v1222_v42 = vadd.f32 %v1221_v39, %v1153_v27  ;;  %v1290_v8 = vpop.f32.mrf.mxu1  ;;  %v1165_v55 = vpop.f32.mrf.mxu3  ;;  %v1161_v27 = vadd.f32 %v1160_v21, %v1092_v7  ;;  %v5987_v39 = vld [vmem:[#allocation17_spill] sm:$0xff] }
 0x298   :  { %v1025_v3 = vadd.f32 %v5987_v39, %v5536_v25  ;;  %v1166_v56 = vadd.f32 %v1165_v55, %v1097_v47  ;;  %v4236_v39 = vld [vmem:[#allocation2 + $0x54] sm:$0xf] }
 0x299   :  { %v1291_v2 = vadd.f32 %v1290_v8, %v1222_v42  ;;  %v3637_v42 = vor.u32 %v4275_v5, %v3636_v44  ;;  %v1098_v41 = vpop.f32.mrf.mxu2  ;;  %v3740_v44 = vld [vmem:[#allocation2 + $0x250] sm:$0xf]  ;;  %v4301_v5 = vld [vmem:[#allocation2 + $0x254] sm:$0xf0] }
 0x29a   :  { %v1094_v8 = vadd.f32 %v1093_v53, %v1025_v3 }
 0x29b   :  { %v1345_v0 = vmax.f32 %v1291_v2, 0.0  ;;  %1993 = vmatpush.bf16.msrb.mxu3 %v3637_v42  ;;  %v5988_v2 = vld [vmem:[#allocation14_spill] sm:$0xff]  ;;  %v5993_v42 = vld [vmem:[#allocation23_spill] sm:$0xff] }
 0x29c   :  { %v1350_v23 = vmax.f32 %v5988_v2, 0.0  ;;  %v1163_v34 = vadd.f32 %v1162_v12, %v1094_v8  ;;  %v1033_v8 = vadd.f32 %v5993_v42, %v5536_v25 }
 0x29d   :  { %v1379_v31 = vmax.f32 %v1344_v45, %v1345_v0  ;;  %v3756_v0 = vld [vmem:[#allocation2 + $0x270] sm:$0xf] }
 0x29e   :  { %v1224_v9 = vpop.f32.mrf.mxu0  ;;  %v3757_v53 = vor.u32 %v4305_v11, %v3756_v0 }
 0x29f   :  { %v1396_v15 = vmax.f32 %v1378_v58, %v1379_v31  ;;  %v1225_v57 = vadd.f32 %v1224_v9, %v1156_v17  ;;  %v1293_v59 = vpop.f32.mrf.mxu1  ;;  %v4240_v17 = vld [vmem:[#allocation2 + $0x74] sm:$0xf]  ;;  %v1167_v31 = vpop.f32.mrf.mxu3 }
 0x2a0   :  { %2015 = vmatpush.bf16.msra.mxu2 %v3757_v53  ;;  %v3732_v53 = vld [vmem:[#allocation2 + $0x240] sm:$0xf] }
 0x2a1   :  { %v1294_v52 = vadd.f32 %v1293_v59, %v1225_v57  ;;  %v5691_v20 = vpack.c.bf16 %v1396_v15, %v1395_v30  ;;  %v3505_v59 = vor.u32 %v4240_v17, %v3502_v18  ;;  %v1101_v12 = vpop.f32.mrf.mxu2  ;;  %v4299_v18 = vld [vmem:[#allocation2 + $0x244] sm:$0xf0] }
 0x2a2   :  { %v3733_v47 = vor.u32 %v4299_v18, %v3732_v53 }
 0x2a3   :  { %v1347_v32 = vmax.f32 %v1294_v52, 0.0  ;;  %1946 = vmatmul.bf16.gmra.mxu3 %v5691_v20  ;;  %2091 = vmatmul.bf16.gmra.mxu0 %v5691_v20  ;;  %v5990_v52 = vld [vmem:[#allocation16_spill] sm:$0xff] }
 0x2a4   :  { %2044 = vmatpush.bf16.msra.mxu3 %v3505_v59  ;;  %v1352_v1 = vmax.f32 %v5990_v52, 0.0  ;;  %v3478_v52 = vld [vmem:[#allocation2 + $0x48] sm:$0xf0] }
 0x2a5   :  { %v1380_v48 = vmax.f32 %v1346_v6, %v1347_v32 }
 0x2a6   :  { %v1226_v30 = vpop.f32.mrf.mxu0 }
 0x2a7   :  { %v1227_v19 = vadd.f32 %v1226_v30, %v1158_v51  ;;  %v1295_v46 = vpop.f32.mrf.mxu1  ;;  %v5991_v51 = vld [vmem:[#allocation21_spill] sm:$0xff] }
 0x2a9   :  { %v1296_v16 = vadd.f32 %v1295_v46, %v1227_v19  ;;  %v1170_v19 = vpop.f32.mrf.mxu3  ;;  %v3749_v46 = vor.u32 %v4303_v40, %v3748_v4  ;;  %v1103_v3 = vpop.f32.mrf.mxu2  ;;  %v4232_v40 = vld [vmem:[#allocation2 + $0x34] sm:$0xf] }
 0x2ab   :  { %v1349_v38 = vmax.f32 %v1296_v16, 0.0  ;;  %2016 = vmatpush.bf16.msra.mxu2 %v3749_v46 }
 0x2ad   :  { %v1381_v36 = vmax.f32 %v1348_v50, %v1349_v38  ;;  %v3497_v50 = vor.u32 %v4238_v24, %v3494_v54  ;;  %v5992_v38 = vld [vmem:[#allocation18_spill] sm:$0xff]  ;;  %v3470_v24 = vld [vmem:[#allocation2 + $0x38] sm:$0xf0] }
 0x2ae   :  { %v1229_v58 = vpop.f32.mrf.mxu0  ;;  %v1354_v55 = vmax.f32 %v5992_v38, 0.0  ;;  %v3473_v46 = vor.u32 %v4232_v40, %v3470_v24  ;;  %v5997_v38 = vld [vmem:[#allocation27_spill] sm:$0xff] }
 0x2af   :  { %v1397_v35 = vmax.f32 %v1380_v48, %v1381_v36  ;;  %v1230_v62 = vadd.f32 %v1229_v58, %v1161_v27  ;;  %v1298_v37 = vpop.f32.mrf.mxu1  ;;  %v1030_v48 = vadd.f32 %v5991_v51, %v5536_v25  ;;  %2045 = vmatpush.bf16.msra.mxu3 %v3497_v50  ;;  %v4295_v50 = vld [vmem:[#allocation2 + $0x224] sm:$0xf0] }
 0x2b1   :  { %v5702_v60 = vpack.c.bf16 %v1397_v35, %v1396_v15  ;;  %v1299_v26 = vadd.f32 %v1298_v37, %v1230_v62  ;;  %v1099_v7 = vadd.f32 %v1098_v41, %v1030_v48  ;;  %v3741_v62 = vor.u32 %v4301_v5, %v3740_v44  ;;  %v3486_v37 = vld [vmem:[#allocation2 + $0x58] sm:$0xf0]  ;;  %v4230_v44 = vld [vmem:[#allocation2 + $0x24] sm:$0xf]  ;;  %v3462_v5 = vld [vmem:[#allocation2 + $0x28] sm:$0xf0] }
 0x2b2   :  { %v3489_v2 = vor.u32 %v4236_v39, %v3486_v37  ;;  %v3708_v39 = vld [vmem:[#allocation2 + $0x210] sm:$0xf]  ;;  %v4293_v37 = vld [vmem:[#allocation2 + $0x214] sm:$0xf0] }
 0x2b3   :  { %v1351_v21 = vmax.f32 %v1299_v26, 0.0  ;;  %1922 = vmatmul.bf16.gmra.mxu2 %v5702_v60  ;;  %2120 = vmatmul.bf16.gmra.mxu1 %v5702_v60  ;;  %v1168_v36 = vadd.f32 %v1167_v31, %v1099_v7 }
 0x2b4   :  { %2017 = vmatpush.bf16.msra.mxu2 %v3741_v62  ;;  %2046 = vmatpush.bf16.msra.mxu3 %v3489_v2  ;;  %v3465_v62 = vor.u32 %v4230_v44, %v3462_v5  ;;  %v4304_v5 = vld [vmem:[#allocation2 + $0x274] sm:$0xf] }
 0x2b5   :  { %v1382_v45 = vmax.f32 %v1350_v23, %v1351_v21  ;;  %v1102_v23 = vadd.f32 %v1101_v12, %v1033_v8  ;;  %v3724_v12 = vld [vmem:[#allocation2 + $0x230] sm:$0xf]  ;;  %v3709_v8 = vor.u32 %v4293_v37, %v3708_v39  ;;  %v3758_v39 = vld [vmem:[#allocation2 + $0x278] sm:$0xf0]  ;;  %v4302_v37 = vld [vmem:[#allocation2 + $0x264] sm:$0xf] }
 0x2b6   :  { %v1231_v9 = vpop.f32.mrf.mxu0 }
 0x2b7   :  { %v1232_v15 = vadd.f32 %v1231_v9, %v1163_v34  ;;  %v1300_v57 = vpop.f32.mrf.mxu1  ;;  %v1172_v34 = vpop.f32.mrf.mxu3  ;;  %v1171_v17 = vadd.f32 %v1170_v19, %v1102_v23 }
 0x2b8   :  { %2018 = vmatpush.bf16.msra.mxu2 %v3733_v47 }
 0x2b9   :  { %v1301_v14 = vadd.f32 %v1300_v57, %v1232_v15 }
 0x2bb   :  { %v1353_v22 = vmax.f32 %v1301_v14, 0.0  ;;  %v4234_v14 = vld [vmem:[#allocation2 + $0x44] sm:$0xf] }
 0x2bd   :  { %v1383_v6 = vmax.f32 %v1352_v1, %v1353_v22  ;;  %v1106_v1 = vpop.f32.mrf.mxu2  ;;  %v3481_v22 = vor.u32 %v4234_v14, %v3478_v52 }
 0x2be   :  { %v1234_v32 = vpop.f32.mrf.mxu0 }
 0x2bf   :  { %v1398_v33 = vmax.f32 %v1382_v45, %v1383_v6  ;;  %v1235_v13 = vadd.f32 %v1234_v32, %v1166_v56  ;;  %v1303_v30 = vpop.f32.mrf.mxu1  ;;  %v5994_v45 = vld [vmem:[#allocation20_spill] sm:$0xff]  ;;  %v1104_v6 = vadd.f32 %v1103_v3, %v1035_v49  ;;  %2047 = vmatpush.bf16.msra.mxu3 %v3481_v22  ;;  %v1175_v19 = vpop.f32.mrf.mxu3 }
 0x2c0   :  { %v1356_v0 = vmax.f32 %v5994_v45, 0.0  ;;  %v4297_v56 = vld [vmem:[#allocation2 + $0x234] sm:$0xf0]  ;;  %v5738_v45 = vld [vmem:[%s5949_s4] sm:$0x3] }
 0x2c1   :  { %v5712_v16 = vpack.c.bf16 %v1398_v33, %v1397_v35  ;;  %v1304_v61 = vadd.f32 %v1303_v30, %v1235_v13  ;;  %v3725_v48 = vor.u32 %v4297_v56, %v3724_v12  ;;  %v5996_v13 = vld [vmem:[#allocation22_spill] sm:$0xff]  ;;  %v1173_v54 = vadd.f32 %v1172_v34, %v1104_v6  ;;  %v3454_v56 = vld [vmem:[#allocation2 + $0x18] sm:$0xf0] }
 0x2c2   :  { %v1358_v30 = vmax.f32 %v5996_v13, 0.0 }
 0x2c3   :  { %v1355_v27 = vmax.f32 %v1304_v61, 0.0  ;;  %1951 = vmatmul.bf16.gmra.mxu3 %v5712_v16  ;;  %1965 = vmatmul.bf16.vlgmr.msrb.gmra.mxu2 %v5638_v28  ;;  %v3716_v61 = vld [vmem:[#allocation2 + $0x220] sm:$0xf] }
 0x2c4   :  { %2096 = vmatmul.bf16.gmra.mxu0 %v5712_v16  ;;  %2019 = vmatpush.bf16.msra.mxu2 %v3725_v48 }
 0x2c5   :  { %v1384_v58 = vmax.f32 %v1354_v55, %v1355_v27  ;;  %2048 = vmatpush.bf16.msra.mxu3 %v3473_v46  ;;  %v1038_v55 = vadd.f32 %v5997_v38, %v5536_v25  ;;  %v1108_v42 = vpop.f32.mrf.mxu2  ;;  %v3446_v46 = vld [vmem:[#allocation2 + $0x8] sm:$0xf0] }
 0x2c6   :  { %v1236_v35 = vpop.f32.mrf.mxu0 }
 0x2c7   :  { %v1237_v26 = vadd.f32 %v1236_v35, %v1168_v36  ;;  %v1305_v41 = vpop.f32.mrf.mxu1  ;;  %v1107_v3 = vadd.f32 %v1106_v1, %v1038_v55  ;;  %v1177_v34 = vpop.f32.mrf.mxu3  ;;  %v6000_v1 = vld [vmem:[#allocation26_spill] sm:$0xff] }
 0x2c8   :  { %v1362_v22 = vmax.f32 %v6000_v1, 0.0 }
 0x2c9   :  { %v1306_v21 = vadd.f32 %v1305_v41, %v1237_v26  ;;  %v5998_v26 = vld [vmem:[#allocation24_spill] sm:$0xff]  ;;  %2049 = vmatpush.bf16.msra.mxu3 %v3465_v62  ;;  %v1176_v23 = vadd.f32 %v1175_v19, %v1107_v3  ;;  %v4226_v19 = vld [vmem:[#allocation2 + $0x4] sm:$0xf]  ;;  %v3761_v3 = vor.u32 %v4304_v5, %v3758_v39  ;;  %v3686_v62 = vld [vmem:[#allocation2 + $0x1e8] sm:$0xf0] }
 0x2ca   :  { %v1360_v41 = vmax.f32 %v5998_v26, 0.0 }
 0x2cb   :  { %v1357_v11 = vmax.f32 %v1306_v21, 0.0 }
 0x2cd   :  { %v1385_v31 = vmax.f32 %v1356_v0, %v1357_v11  ;;  %v3700_v11 = vld [vmem:[#allocation2 + $0x200] sm:$0xf] }
 0x2ce   :  { %v1239_v9 = vpop.f32.mrf.mxu0 }
 0x2cf   :  { %v5723_v15 = vmax.f32 %v1384_v58, %v1385_v31  ;;  %v1240_v57 = vadd.f32 %v1239_v9, %v1171_v17  ;;  %v1308_v59 = vpop.f32.mrf.mxu1  ;;  %v3717_v58 = vor.u32 %v4295_v50, %v3716_v61  ;;  %v4291_v17 = vld [vmem:[#allocation2 + $0x204] sm:$0xf0]  ;;  %v5999_v31 = vld [vmem:[#allocation29_spill] sm:$0xff] }
 0x2d0   :  { %v1040_v9 = vadd.f32 %v5999_v31, %v5536_v25  ;;  %v3701_v49 = vor.u32 %v4291_v17, %v3700_v11  ;;  %v4228_v25 = vld [vmem:[#allocation2 + $0x14] sm:$0xf]  ;;  %v3742_v17 = vld [vmem:[#allocation2 + $0x258] sm:$0xf0] }
 0x2d1   :  { %v5726_v32 = vpack.c.bf16 %v5723_v15, %v1398_v33  ;;  %v1309_v51 = vadd.f32 %v1308_v59, %v1240_v57  ;;  %2020 = vmatpush.bf16.msra.mxu2 %v3717_v58  ;;  %v5743_v59 = vperm.slane %v5738_v45, 0  ;;  %v3457_v6 = vor.u32 %v4228_v25, %v3454_v56  ;;  %v4300_v11 = vld [vmem:[#allocation2 + $0x254] sm:$0xf] }
 0x2d2   :  { %v1109_v57 = vadd.f32 %v1108_v42, %v1040_v9  ;;  %v3745_v31 = vor.u32 %v4300_v11, %v3742_v17  ;;  %v4296_v56 = vld [vmem:[#allocation2 + $0x234] sm:$0xf] }
 0x2d3   :  { %v1359_v4 = vmax.f32 %v1309_v51, 0.0  ;;  %1970 = vmatmul.bf16.gmra.mxu2 %v5677_v43  ;;  %1994 = vmatmul.bf16.vlgmr.msrb.gmra.mxu3 %v5657_v63 }
 0x2d4   :  { %2125 = vmatmul.bf16.gmra.mxu1 %v5726_v32  ;;  %v1178_v51 = vadd.f32 %v1177_v34, %v1109_v57  ;;  %2050 = vmatpush.bf16.msra.mxu3 %v3457_v6  ;;  %v4298_v57 = vld [vmem:[#allocation2 + $0x244] sm:$0xf]  ;;  %v3726_v6 = vld [vmem:[#allocation2 + $0x238] sm:$0xf0] }
 0x2d5   :  { %v1386_v33 = vmax.f32 %v1358_v30, %v1359_v4  ;;  %2021 = vmatpush.bf16.msra.mxu2 %v3709_v8  ;;  %v3750_v8 = vld [vmem:[#allocation2 + $0x268] sm:$0xf0] }
 0x2d6   :  { %v1241_v7 = vpop.f32.mrf.mxu0  ;;  %v1908_v52 = vpop.f32.mrf.mxu2 }
 0x2d7   :  { %v1242_v27 = vadd.f32 %v1241_v7, %v1173_v54  ;;  %v1310_v36 = vpop.f32.mrf.mxu1  ;;  %v1909_v48 = vadd.f32 %v1908_v52, %v5743_v59  ;;  %v6001_v7 = vld [vmem:[#allocation28_spill] sm:$0xff]  ;;  %v3734_v52 = vld [vmem:[#allocation2 + $0x248] sm:$0xf0] }
 0x2d8   :  { %v1364_v61 = vmax.f32 %v6001_v7, 0.0  ;;  %v3737_v1 = vor.u32 %v4298_v57, %v3734_v52  ;;  %v4274_v7 = vld [vmem:[#allocation2 + $0x184] sm:$0xf] }
 0x2d9   :  { %v1311_v35 = vadd.f32 %v1310_v36, %v1242_v27  ;;  %2022 = vmatpush.bf16.msra.mxu2 %v3701_v49  ;;  %v4288_v27 = vld [vmem:[#allocation2 + $0x1f4] sm:$0xf]  ;;  %v3694_v36 = vld [vmem:[#allocation2 + $0x1f8] sm:$0xf0]  ;;  %v3670_v49 = vld [vmem:[#allocation2 + $0x1c8] sm:$0xf0] }
 0x2da   :  { %v3697_v58 = vor.u32 %v4288_v27, %v3694_v36  ;;  %v3710_v27 = vld [vmem:[#allocation2 + $0x218] sm:$0xf0] }
 0x2db   :  { %v1361_v2 = vmax.f32 %v1311_v35, 0.0  ;;  %v4286_v35 = vld [vmem:[#allocation2 + $0x1e4] sm:$0xf] }
 0x2dc   :  { %v3689_v42 = vor.u32 %v4286_v35, %v3686_v62  ;;  %v3702_v35 = vld [vmem:[#allocation2 + $0x208] sm:$0xf0] }
 0x2dd   :  { %v1387_v21 = vmax.f32 %v1360_v41, %v1361_v2  ;;  %2131 = vmatpush.bf16.msrb.mxu2 %v3697_v58  ;;  %v3753_v41 = vor.u32 %v4302_v37, %v3750_v8 }
 0x2de   :  { %v1244_v0 = vpop.f32.mrf.mxu0  ;;  %v5759_v26 = vpop.f32.mrf.mxu2 }
 0x2df   :  { %v1400_v53 = vmax.f32 %v1386_v33, %v1387_v21  ;;  %v1245_v18 = vadd.f32 %v1244_v0, %v1176_v23  ;;  %v1313_v10 = vpop.f32.mrf.mxu1  ;;  %v3449_v33 = vor.u32 %v4226_v19, %v3446_v46  ;;  %v4284_v23 = vld [vmem:[#allocation2 + $0x1d4] sm:$0xf]  ;;  %v3678_v21 = vld [vmem:[#allocation2 + $0x1d8] sm:$0xf0] }
 0x2e0   :  { %v3681_v34 = vor.u32 %v4284_v23, %v3678_v21  ;;  %v3646_v46 = vld [vmem:[#allocation2 + $0x198] sm:$0xf0] }
 0x2e1   :  { %v1314_v47 = vadd.f32 %v1313_v10, %v1245_v18  ;;  %v5746_v14 = vpack.c.bf16 %v1400_v53, %v5723_v15  ;;  %2051 = vmatpush.bf16.msra.mxu3 %v3449_v33  ;;  %2132 = vmatpush.bf16.msrb.mxu2 %v3689_v42  ;;  %v4282_v10 = vld [vmem:[#allocation2 + $0x1c4] sm:$0xf] }
 0x2e3   :  { %v1363_v12 = vmax.f32 %v1314_v47, 0.0  ;;  %1975 = vmatmul.bf16.gmra.mxu2 %v5702_v60  ;;  %1999 = vmatmul.bf16.gmra.mxu3 %v5691_v20  ;;  %v3673_v47 = vor.u32 %v4282_v10, %v3670_v49 }
 0x2e5   :  { %v1388_v13 = vmax.f32 %v1362_v22, %v1363_v12  ;;  %2160 = vmatpush.bf16.msrb.mxu3 %v3761_v3  ;;  %2133 = vmatpush.bf16.msrb.mxu2 %v3681_v34  ;;  %v4280_v22 = vld [vmem:[#allocation2 + $0x1b4] sm:$0xf]  ;;  %v3662_v12 = vld [vmem:[#allocation2 + $0x1b8] sm:$0xf0]  ;;  %v4290_v3 = vld [vmem:[#allocation2 + $0x204] sm:$0xf] }
 0x2e6   :  { %v1246_v30 = vpop.f32.mrf.mxu0  ;;  %v1937_v4 = vpop.f32.mrf.mxu3  ;;  %v3665_v25 = vor.u32 %v4280_v22, %v3662_v12  ;;  %v3705_v62 = vor.u32 %v4290_v3, %v3702_v35  ;;  %v4309_v35 = vld [vmem:[#allocation4 + $0x18] sm:$0xff] }
 0x2e7   :  { %v1247_v15 = vadd.f32 %v1246_v30, %v1178_v51  ;;  %v5752_v40 = vadd.f32 %v1937_v4, %v1909_v48  ;;  %v1315_v24 = vpop.f32.mrf.mxu1  ;;  %v3729_v51 = vor.u32 %v4296_v56, %v3726_v6  ;;  %v4278_v48 = vld [vmem:[#allocation2 + $0x1a4] sm:$0xf] }
 0x2e8   :  { %v4294_v4 = vld [vmem:[#allocation2 + $0x224] sm:$0xf] }
 0x2e9   :  { %v1316_v54 = vadd.f32 %v1315_v24, %v1247_v15  ;;  %2161 = vmatpush.bf16.msrb.mxu3 %v3753_v41  ;;  %2134 = vmatpush.bf16.msrb.mxu2 %v3673_v47  ;;  %v3718_v15 = vld [vmem:[#allocation2 + $0x228] sm:$0xf0]  ;;  %v4276_v24 = vld [vmem:[#allocation2 + $0x194] sm:$0xf] }
 0x2ea   :  { %v3721_v19 = vor.u32 %v4294_v4, %v3718_v15  ;;  %v3649_v33 = vor.u32 %v4276_v24, %v3646_v46 }
 0x2eb   :  { %v1365_v50 = vmax.f32 %v1316_v54, 0.0 }
 0x2ed   :  { %v1389_v38 = vmax.f32 %v1364_v61, %v1365_v50  ;;  %2162 = vmatpush.bf16.msrb.mxu3 %v3745_v31  ;;  %2135 = vmatpush.bf16.msrb.mxu2 %v3665_v25  ;;  %v3638_v61 = vld [vmem:[#allocation2 + $0x188] sm:$0xf0] }
 0x2ee   :  { %v5761_v2 = vpop.f32.mrf.mxu3  ;;  %v3641_v50 = vor.u32 %v4274_v7, %v3638_v61 }
 0x2ef   :  { %v1401_v55 = vmax.f32 %v1388_v13, %v1389_v38  ;;  %v3654_v13 = vld [vmem:[#allocation2 + $0x1a8] sm:$0xf0] }
 0x2f0   :  { %v3657_v30 = vor.u32 %v4278_v48, %v3654_v13 }
 0x2f1   :  { %v5755_v44 = vpack.c.bf16 %v1401_v55, %v1400_v53  ;;  %2163 = vmatpush.bf16.msrb.mxu3 %v3737_v1  ;;  %v4292_v55 = vld [vmem:[#allocation2 + $0x214] sm:$0xf] }
 0x2f2   :  { %2136 = vmatpush.bf16.msrb.mxu2 %v3657_v30  ;;  %v3713_v36 = vor.u32 %v4292_v55, %v3710_v27 }
 0x2f3   :  { %1980 = vmatmul.bf16.gmra.mxu2 %v5726_v32  ;;  %2004 = vmatmul.bf16.gmra.mxu3 %v5712_v16 }
 0x2f5   :  { %2164 = vmatpush.bf16.msrb.mxu3 %v3729_v51 }
 0x2f6   :  { %v1913_v0 = vpop.f32.mrf.mxu2  ;;  %2137 = vmatpush.bf16.msrb.mxu2 %v3649_v33 }
 0x2f7   :  { %v1914_v9 = vadd.f32 %v1913_v0, %v5743_v59 }
 0x2f9   :  { %2165 = vmatpush.bf16.msrb.mxu3 %v3721_v19 }
 0x2fa   :  { %2138 = vmatpush.bf16.msrb.mxu2 %v3641_v50  ;;  %v4313_v50 = vld [vmem:[#allocation4 + $0x38] sm:$0xff] }
 0x2fb   :  { %2481 = vmatpush.bf16.msra.mxu0 %v4313_v50  ;;  %v4326_v50 = vld [vmem:[#allocation4 + $0xa0] sm:$0xff] }
 0x2fd   :  { %2166 = vmatpush.bf16.msrb.mxu3 %v3713_v36  ;;  %v4311_v36 = vld [vmem:[#allocation4 + $0x28] sm:$0xff] }
 0x2fe   :  { %v5770_v54 = vpop.f32.mrf.mxu2 }
 0x301   :  { %2167 = vmatpush.bf16.msrb.mxu3 %v3705_v62  ;;  %v4321_v62 = vld [vmem:[#allocation4 + $0x78] sm:$0xff] }
 0x302   :  { %2494 = vmatpush.bf16.msra.mxu1 %v4321_v62  ;;  %v4334_v62 = vld [vmem:[#allocation4 + $0xe0] sm:$0xff] }
 0x303   :  { %2009 = vmatmul.bf16.gmra.mxu3 %v5746_v14  ;;  %2023 = vmatmul.bf16.vlgmr.msra.gmra.mxu2 %v5677_v43 }
 0x306   :  { %v1942_v53 = vpop.f32.mrf.mxu3 }
 0x307   :  { %v5766_v18 = vadd.f32 %v1942_v53, %v1914_v9 }
 0x313   :  { %2028 = vmatmul.bf16.gmra.mxu2 %v5702_v60  ;;  %2052 = vmatmul.bf16.vlgmr.msra.gmra.mxu3 %v5599_v29  ;;  %v5772_v29 = vpop.f32.mrf.mxu3 }
 0x316   :  { %v1918_v38 = vpop.f32.mrf.mxu2 }
 0x317   :  { %v1919_v58 = vadd.f32 %v1918_v38, %v5743_v59  ;;  %v4312_v38 = vld [vmem:[#allocation4 + $0x30] sm:$0xff] }
 0x318   :  { %2482 = vmatpush.bf16.msra.mxu0 %v4312_v38  ;;  %v4314_v38 = vld [vmem:[#allocation4 + $0x40] sm:$0xff] }
 0x31c   :  { %2483 = vmatpush.bf16.msra.mxu0 %v4311_v36 }
 0x31e   :  { %v5777_v37 = vpop.f32.mrf.mxu2 }
 0x323   :  { %2033 = vmatmul.bf16.gmra.mxu2 %v5726_v32  ;;  %2057 = vmatmul.bf16.gmra.mxu3 %v5638_v28 }
 0x326   :  { %v1947_v5 = vpop.f32.mrf.mxu3 }
 0x327   :  { %v1948_v39 = vadd.f32 %v1947_v5, %v1919_v58  ;;  %v4310_v58 = vld [vmem:[#allocation4 + $0x20] sm:$0xff] }
 0x328   :  { %2484 = vmatpush.bf16.msra.mxu0 %v4310_v58 }
 0x32c   :  { %2485 = vmatpush.bf16.msra.mxu0 %v4309_v35 }
 0x32e   :  { %v5781_v28 = vpop.f32.mrf.mxu3 }
 0x333   :  { %2038 = vmatmul.bf16.gmra.mxu2 %v5755_v44  ;;  %2062 = vmatmul.bf16.gmra.mxu3 %v5677_v43 }
 0x336   :  { %v1923_v42 = vpop.f32.mrf.mxu2 }
 0x337   :  { %v1924_v41 = vadd.f32 %v1923_v42, %v5743_v59  ;;  %v4329_v42 = vld [vmem:[#allocation4 + $0xb8] sm:$0xff] }
 0x338   :  { %2507 = vmatpush.bf16.msra.mxu2 %v4329_v42 }
 0x33e   :  { %v1925_v8 = vpop.f32.mrf.mxu2 }
 0x33f   :  { %v1926_v11 = vadd.f32 %v1925_v8, %v5743_v59  ;;  %v4337_v8 = vld [vmem:[#allocation4 + $0xf8] sm:$0xff] }
 0x340   :  { %2520 = vmatpush.bf16.msra.mxu3 %v4337_v8 }
 0x343   :  { %2067 = vmatmul.bf16.gmra.mxu3 %v5702_v60  ;;  %2139 = vmatmul.bf16.vlgmr.msrb.gmra.mxu2 %v5657_v63 }
 0x346   :  { %v1952_v23 = vpop.f32.mrf.mxu3  ;;  %v1966_v21 = vpop.f32.mrf.mxu2 }
 0x347   :  { %v1953_v34 = vadd.f32 %v1952_v23, %v1924_v41  ;;  %v1967_v0 = vadd.f32 %v1966_v21, %v5752_v40  ;;  %v4308_v41 = vld [vmem:[#allocation4 + $0x10] sm:$0xff] }
 0x348   :  { %v4320_v23 = vld [vmem:[#allocation4 + $0x70] sm:$0xff]  ;;  %2486 = vmatpush.bf16.msra.mxu0 %v4308_v41 }
 0x349   :  { %2495 = vmatpush.bf16.msra.mxu1 %v4320_v23 }
 0x34e   :  { %v1954_v17 = vpop.f32.mrf.mxu3  ;;  %v5788_v31 = vpop.f32.mrf.mxu2 }
 0x34f   :  { %v1955_v9 = vadd.f32 %v1954_v17, %v1926_v11  ;;  %v4307_v11 = vld [vmem:[#allocation4 + $0x8] sm:$0xff] }
 0x350   :  { %v4319_v17 = vld [vmem:[#allocation4 + $0x68] sm:$0xff]  ;;  %2487 = vmatpush.bf16.msra.mxu0 %v4307_v11 }
 0x351   :  { %2496 = vmatpush.bf16.msra.mxu1 %v4319_v17 }
 0x353   :  { %2144 = vmatmul.bf16.gmra.mxu2 %v5691_v20  ;;  %2168 = vmatmul.bf16.vlgmr.msrb.gmra.mxu3 %v5677_v43 }
 0x356   :  { %v1971_v53 = vpop.f32.mrf.mxu2  ;;  %v1995_v10 = vpop.f32.mrf.mxu3 }
 0x357   :  { %v1972_v63 = vadd.f32 %v1971_v53, %v5766_v18  ;;  %v1996_v49 = vadd.f32 %v1995_v10, %v1967_v0  ;;  %v4306_v53 = vld [vmem:[#allocation4] sm:$0xff] }
 0x358   :  { %v4318_v10 = vld [vmem:[#allocation4 + $0x60] sm:$0xff]  ;;  %2488 = vmatpush.bf16.msra.mxu0 %v4306_v53 }
 0x359   :  { %2497 = vmatpush.bf16.msra.mxu1 %v4318_v10 }
 0x35e   :  { %v5793_v57 = vpop.f32.mrf.mxu2  ;;  %v5795_v47 = vpop.f32.mrf.mxu3 }
 0x363   :  { %2149 = vmatmul.bf16.gmra.mxu2 %v5712_v16  ;;  %2173 = vmatmul.bf16.gmra.mxu3 %v5702_v60 }
 0x366   :  { %v1976_v40 = vpop.f32.mrf.mxu2  ;;  %v2000_v52 = vpop.f32.mrf.mxu3 }
 0x367   :  { %v1977_v1 = vadd.f32 %v1976_v40, %v1948_v39  ;;  %v2001_v22 = vadd.f32 %v2000_v52, %v1972_v63  ;;  %v5837_v40 = vperm.slane %v5738_v45, 1  ;;  %v4328_v52 = vld [vmem:[#allocation4 + $0xb0] sm:$0xff] }
 0x368   :  { %2508 = vmatpush.bf16.msra.mxu2 %v4328_v52 }
 0x36e   :  { %v5799_v20 = vpop.f32.mrf.mxu2  ;;  %v5801_v43 = vpop.f32.mrf.mxu3 }
 0x373   :  { %2154 = vmatmul.bf16.gmra.mxu2 %v5746_v14  ;;  %2178 = vmatmul.bf16.gmra.mxu3 %v5726_v32 }
 0x376   :  { %v1981_v18 = vpop.f32.mrf.mxu2  ;;  %v2005_v12 = vpop.f32.mrf.mxu3 }
 0x377   :  { %v1982_v25 = vadd.f32 %v1981_v18, %v1953_v34  ;;  %v2006_v56 = vadd.f32 %v2005_v12, %v1977_v1  ;;  %v4336_v1 = vld [vmem:[#allocation4 + $0xf0] sm:$0xff]  ;;  %v2111_v18 = vpop.f32.mrf.mxu1 }
 0x378   :  { %2521 = vmatpush.bf16.msra.mxu3 %v4336_v1 }
 0x37e   :  { %v1983_v6 = vpop.f32.mrf.mxu2  ;;  %v5805_v16 = vpop.f32.mrf.mxu3 }
 0x37f   :  { %v1984_v60 = vadd.f32 %v1983_v6, %v1955_v9  ;;  %v2082_v9 = vpop.f32.mrf.mxu0  ;;  %v4316_v6 = vld [vmem:[#allocation4 + $0x50] sm:$0xff] }
 0x383   :  { %2183 = vmatmul.bf16.gmra.mxu3 %v5755_v44 }
 0x386   :  { %v2010_v51 = vpop.f32.mrf.mxu3  ;;  %v2024_v48 = vpop.f32.mrf.mxu2 }
 0x387   :  { %v2011_v13 = vadd.f32 %v2010_v51, %v1982_v25  ;;  %v5808_v30 = vadd.f32 %v2024_v48, %v1996_v49  ;;  %v4327_v25 = vld [vmem:[#allocation4 + $0xa8] sm:$0xff]  ;;  %v2084_v48 = vpop.f32.mrf.mxu0 }
 0x388   :  { %2509 = vmatpush.bf16.msra.mxu2 %v4327_v25 }
 0x389   :  { %v2189_v41 = vmax.f32 %v5808_v30, 0.0 }
 0x38c   :  { %2510 = vmatpush.bf16.msra.mxu2 %v4326_v50  ;;  %v4332_v50 = vld [vmem:[#allocation4 + $0xd0] sm:$0xff] }
 0x38e   :  { %v2012_v4 = vpop.f32.mrf.mxu3  ;;  %v5810_v15 = vpop.f32.mrf.mxu2 }
 0x38f   :  { %v2013_v14 = vadd.f32 %v2012_v4, %v1984_v60  ;;  %v2087_v42 = vpop.f32.mrf.mxu0 }
 0x396   :  { %v2029_v32 = vpop.f32.mrf.mxu2  ;;  %v2053_v24 = vpop.f32.mrf.mxu3 }
 0x397   :  { %v5812_v19 = vadd.f32 %v2029_v32, %v2001_v22  ;;  %v4317_v22 = vld [vmem:[#allocation4 + $0x58] sm:$0xff]  ;;  %v2054_v12 = vadd.f32 %v2053_v24, %v5837_v40  ;;  %v2113_v32 = vpop.f32.mrf.mxu1  ;;  %v1911_v24 = vadd.f32 %v5759_v26, %v5743_v59 }
 0x398   :  { %2498 = vmatpush.bf16.msra.mxu1 %v4317_v22  ;;  %v4325_v26 = vld [vmem:[#allocation4 + $0x98] sm:$0xff] }
 0x399   :  { %v2083_v51 = vadd.f32 %v2082_v9, %v2054_v12  ;;  %v1940_v58 = vadd.f32 %v5761_v2, %v1911_v24  ;;  %2511 = vmatpush.bf16.msra.mxu2 %v4325_v26  ;;  %v4333_v9 = vld [vmem:[#allocation4 + $0xd8] sm:$0xff]  ;;  %v2089_v12 = vpop.f32.mrf.mxu0 }
 0x39c   :  { %2499 = vmatpush.bf16.msra.mxu1 %v4316_v6 }
 0x39e   :  { %v5814_v46 = vpop.f32.mrf.mxu2  ;;  %v5816_v33 = vpop.f32.mrf.mxu3 }
 0x39f   :  { %v2056_v4 = vadd.f32 %v5816_v33, %v5837_v40  ;;  %v1969_v33 = vadd.f32 %v5788_v31, %v1940_v58  ;;  %v2116_v53 = vpop.f32.mrf.mxu1  ;;  %v4324_v31 = vld [vmem:[#allocation4 + $0x90] sm:$0xff] }
 0x3a0   :  { %2512 = vmatpush.bf16.msra.mxu2 %v4324_v31 }
 0x3a6   :  { %v2034_v7 = vpop.f32.mrf.mxu2  ;;  %v5818_v61 = vpop.f32.mrf.mxu3 }
 0x3a7   :  { %v5820_v44 = vadd.f32 %v2034_v7, %v2006_v56  ;;  %v4335_v56 = vld [vmem:[#allocation4 + $0xe8] sm:$0xff]  ;;  %v2059_v11 = vadd.f32 %v5818_v61, %v5837_v40 }
 0x3a8   :  { %2522 = vmatpush.bf16.msra.mxu3 %v4335_v56 }
 0x3a9   :  { %v2088_v30 = vadd.f32 %v2087_v42, %v2059_v11 }
 0x3ab   :  { %v2117_v56 = vadd.f32 %v2116_v53, %v2088_v30 }
 0x3ac   :  { %2523 = vmatpush.bf16.msra.mxu3 %v4334_v62  ;;  %v4331_v62 = vld [vmem:[#allocation4 + $0xc8] sm:$0xff] }
 0x3ae   :  { %v5822_v55 = vpop.f32.mrf.mxu2  ;;  %v5824_v27 = vpop.f32.mrf.mxu3 }
 0x3af   :  { %v2061_v61 = vadd.f32 %v5824_v27, %v5837_v40 }
 0x3b0   :  { %2524 = vmatpush.bf16.msra.mxu3 %v4333_v9 }
 0x3b4   :  { %2525 = vmatpush.bf16.msra.mxu3 %v4332_v50 }
 0x3b6   :  { %v2039_v5 = vpop.f32.mrf.mxu2  ;;  %v5826_v39 = vpop.f32.mrf.mxu3 }
 0x3b7   :  { %v5828_v3 = vadd.f32 %v2039_v5, %v2011_v13  ;;  %v4315_v13 = vld [vmem:[#allocation4 + $0x48] sm:$0xff]  ;;  %v2085_v5 = vadd.f32 %v2084_v48, %v2056_v4  ;;  %v4322_v48 = vld [vmem:[#allocation4 + $0x80] sm:$0xff] }
 0x3b8   :  { %2500 = vmatpush.bf16.msra.mxu1 %v4315_v13  ;;  %v2118_v13 = vpop.f32.mrf.mxu1  ;;  %2526 = vmatpush.bf16.msra.mxu3 %v4331_v62 }
 0x3b9   :  { %v2114_v2 = vadd.f32 %v2113_v32, %v2085_v5  ;;  %v2090_v32 = vadd.f32 %v2089_v12, %v2061_v61  ;;  %v2064_v5 = vadd.f32 %v5826_v39, %v5837_v40 }
 0x3bc   :  { %2501 = vmatpush.bf16.msra.mxu1 %v4314_v38  ;;  %v2193_v38 = vmax.f32 %v5812_v19, 0.0 }
 0x3be   :  { %v2041_v21 = vpop.f32.mrf.mxu2  ;;  %v5830_v34 = vpop.f32.mrf.mxu3 }
 0x3bf   :  { %v5832_v0 = vadd.f32 %v2041_v21, %v2013_v14  ;;  %v2112_v14 = vadd.f32 %v2111_v18, %v2083_v51  ;;  %v1998_v21 = vadd.f32 %v5795_v47, %v1969_v33  ;;  %v4323_v47 = vld [vmem:[#allocation4 + $0x88] sm:$0xff] }
 0x3c0   :  { %2513 = vmatpush.bf16.msra.mxu2 %v4323_v47 }
 0x3c1   :  { %v2027_v10 = vadd.f32 %v5810_v15, %v1998_v21  ;;  %v1916_v15 = vadd.f32 %v5770_v54, %v5743_v59  ;;  %v2092_v54 = vpop.f32.mrf.mxu0 }
 0x3c2   :  { %v2093_v19 = vadd.f32 %v2092_v54, %v2064_v5 }
 0x3c3   :  { %v2191_v22 = vmax.f32 %v2027_v10, 0.0 }
 0x3c4   :  { %2514 = vmatpush.bf16.msra.mxu2 %v4322_v48 }
 0x3c6   :  { %v5834_v63 = vpop.f32.mrf.mxu3  ;;  %v2140_v49 = vpop.f32.mrf.mxu2 }
 0x3c7   :  { %v2141_v7 = vadd.f32 %v2140_v49, %v2112_v14  ;;  %v1945_v14 = vadd.f32 %v5772_v29, %v1916_v15 }
 0x3c9   :  { %v1974_v27 = vadd.f32 %v5793_v57, %v1945_v14  ;;  %v2121_v57 = vpop.f32.mrf.mxu1  ;;  %v2094_v39 = vpop.f32.mrf.mxu0 }
 0x3ca   :  { %v2122_v11 = vadd.f32 %v2121_v57, %v2093_v19  ;;  %v4344_v57 = vld [vmem:[%s5952_s7 + $0x30] sm:$0xff]  ;;  %v4342_v19 = vld [vmem:[%s5952_s7 + $0x20] sm:$0xff] }
 0x3cb   :  { %v2003_v58 = vadd.f32 %v5801_v43, %v1974_v27  ;;  %v2066_v43 = vadd.f32 %v5830_v34, %v5837_v40  ;;  %v2201_v27 = vmax.f32 %v5828_v3, 0.0  ;;  %v4345_v3 = vld [vmem:[%s5952_s7 + $0x38] sm:$0xff] }
 0x3cc   :  { %2602 = vmatpush.bf16.msrb.mxu0 %v4345_v3 }
 0x3ce   :  { %v5840_v60 = vpop.f32.mrf.mxu3  ;;  %v2142_v45 = vpop.f32.mrf.mxu2 }
 0x3cf   :  { %v2143_v49 = vadd.f32 %v2142_v45, %v2114_v2 }
 0x3d0   :  { %2603 = vmatpush.bf16.msrb.mxu0 %v4344_v57  ;;  %v3980_v57 = vld [vmem:[#allocation6 + $0x70] sm:$0xf] }
 0x3d1   :  { %v2097_v61 = vpop.f32.mrf.mxu0 }
 0x3d6   :  { %v2169_v36 = vpop.f32.mrf.mxu3  ;;  %v2145_v8 = vpop.f32.mrf.mxu2 }
 0x3d7   :  { %v2170_v35 = vadd.f32 %v2169_v36, %v2141_v7  ;;  %v2146_v45 = vadd.f32 %v2145_v8, %v2117_v56  ;;  %v2032_v8 = vadd.f32 %v5814_v46, %v2003_v58  ;;  %v4330_v46 = vld [vmem:[#allocation4 + $0xc0] sm:$0xff] }
 0x3d8   :  { %2527 = vmatpush.bf16.msra.mxu3 %v4330_v46 }
 0x3d9   :  { %v2190_v23 = vmax.f32 %v2170_v35, 0.0  ;;  %v2119_v35 = vadd.f32 %v2118_v13, %v2090_v32  ;;  %v2195_v26 = vmax.f32 %v2032_v8, 0.0  ;;  %v2071_v13 = vadd.f32 %v5840_v60, %v5837_v40  ;;  %v2099_v32 = vpop.f32.mrf.mxu0 }
 0x3da   :  { %v2203_v60 = vmax.f32 %v5832_v0, 0.0 }
 0x3db   :  { %v2205_v17 = vmax.f32 %v2189_v41, %v2190_v23 }
 0x3de   :  { %v2171_v52 = vpop.f32.mrf.mxu3  ;;  %v2147_v25 = vpop.f32.mrf.mxu2 }
 0x3df   :  { %v2172_v1 = vadd.f32 %v2171_v52, %v2143_v49  ;;  %v2148_v33 = vadd.f32 %v2147_v25, %v2119_v35  ;;  %v2095_v52 = vadd.f32 %v2094_v39, %v2066_v43 }
 0x3e1   :  { %v2192_v18 = vmax.f32 %v2172_v1, 0.0 }
 0x3e3   :  { %v2206_v6 = vmax.f32 %v2191_v22, %v2192_v18  ;;  %v2123_v22 = vpop.f32.mrf.mxu1  ;;  %v2197_v18 = vmax.f32 %v5820_v44, 0.0 }
 0x3e4   :  { %v2124_v12 = vadd.f32 %v2123_v22, %v2095_v52  ;;  %v4391_v22 = vld [vmem:[#allocation6 + $0x168] sm:$0xf0] }
 0x3e5   :  { %v2213_v51 = vmax.f32 %v2205_v17, %v2206_v6  ;;  %v1921_v17 = vadd.f32 %v5777_v37, %v5743_v59  ;;  %v2069_v37 = vadd.f32 %v5834_v63, %v5837_v40 }
 0x3e6   :  { %v2174_v4 = vpop.f32.mrf.mxu3  ;;  %v2150_v42 = vpop.f32.mrf.mxu2 }
 0x3e7   :  { %v2281_v24 = vpack.c.bf16 %v2213_v51, %v2213_v51  ;;  %v2175_v7 = vadd.f32 %v2174_v4, %v2146_v45  ;;  %v2151_v9 = vadd.f32 %v2150_v42, %v2122_v11  ;;  %v1950_v31 = vadd.f32 %v5781_v28, %v1921_v17  ;;  %v4339_v11 = vld [vmem:[%s5952_s7 + $0x8] sm:$0xff] }
 0x3e8   :  { %v2098_v15 = vadd.f32 %v2097_v61, %v2069_v37  ;;  %v4120_v17 = vld [vmem:[#allocation6 + $0x188] sm:$0xf]  ;;  %v4392_v37 = vld [vmem:[#allocation6 + $0x170] sm:$0xf0]  ;;  %v4064_v61 = vld [vmem:[#allocation6 + $0x118] sm:$0xf] }
 0x3e9   :  { %v2194_v36 = vmax.f32 %v2175_v7, 0.0  ;;  %2489 = vmatmul.bf16.vlgmr.msra.gmra.mxu0 %v2281_v24  ;;  %v1979_v34 = vadd.f32 %v5799_v20, %v1950_v31  ;;  %v2100_v7 = vadd.f32 %v2099_v32, %v2071_v13  ;;  %v4399_v31 = vld [vmem:[#allocation6 + $0x1a8] sm:$0xf0]  ;;  %v4038_v32 = vld [vmem:[#allocation6 + $0xfc] sm:$0xf0] }
 0x3eb   :  { %v2207_v29 = vmax.f32 %v2193_v38, %v2194_v36  ;;  %v2008_v59 = vadd.f32 %v5805_v16, %v1979_v34  ;;  %v2126_v51 = vpop.f32.mrf.mxu1  ;;  %v4388_v34 = vld [vmem:[#allocation6 + $0x154] sm:$0xf] }
 0x3ec   :  { %v2127_v16 = vadd.f32 %v2126_v51, %v2098_v15  ;;  %v4072_v15 = vld [vmem:[#allocation6 + $0x120] sm:$0xf] }
 0x3ed   :  { %v2037_v28 = vadd.f32 %v5822_v55, %v2008_v59  ;;  %v4100_v59 = vld [vmem:[#allocation6 + $0x158] sm:$0xf] }
 0x3ee   :  { %v2176_v41 = vpop.f32.mrf.mxu3  ;;  %v2152_v10 = vpop.f32.mrf.mxu2 }
 0x3ef   :  { %v2177_v23 = vadd.f32 %v2176_v41, %v2148_v33  ;;  %v2153_v56 = vadd.f32 %v2152_v10, %v2124_v12  ;;  %v2199_v48 = vmax.f32 %v2037_v28, 0.0  ;;  %v4343_v41 = vld [vmem:[%s5952_s7 + $0x28] sm:$0xff]  ;;  %v4384_v28 = vld [vmem:[#allocation6 + $0x130] sm:$0xf0] }
 0x3f0   :  { %2604 = vmatpush.bf16.msrb.mxu0 %v4343_v41  ;;  %v4122_v10 = vld [vmem:[#allocation6 + $0x1a4] sm:$0xf0]  ;;  %v4065_v51 = vor.u32 %v4384_v28, %v4064_v61  ;;  %v4363_v41 = vld [vmem:[#allocation6 + $0x88] sm:$0xf0]  ;;  %v3924_v61 = vld [vmem:[#allocation6] sm:$0xf] }
 0x3f1   :  { %v2196_v21 = vmax.f32 %v2177_v23, 0.0  ;;  %v4349_v28 = vld [vmem:[#allocation6 + $0x18] sm:$0xf0] }
 0x3f3   :  { %v2208_v2 = vmax.f32 %v2195_v26, %v2196_v21  ;;  %v2128_v36 = vpop.f32.mrf.mxu1  ;;  %v4341_v26 = vld [vmem:[%s5952_s7 + $0x18] sm:$0xff]  ;;  %v4340_v21 = vld [vmem:[%s5952_s7 + $0x10] sm:$0xff] }
 0x3f4   :  { %v2129_v58 = vadd.f32 %v2128_v36, %v2100_v7  ;;  %2605 = vmatpush.bf16.msrb.mxu0 %v4342_v19  ;;  %v4378_v7 = vld [vmem:[#allocation6 + $0x100] sm:$0xf0] }
 0x3f5   :  { %v2214_v53 = vmax.f32 %v2207_v29, %v2208_v2  ;;  %v4338_v2 = vld [vmem:[%s5952_s7] sm:$0xff] }
 0x3f6   :  { %v2179_v49 = vpop.f32.mrf.mxu3  ;;  %v2155_v20 = vpop.f32.mrf.mxu2  ;;  %v4370_v36 = vld [vmem:[#allocation6 + $0xc0] sm:$0xf0] }
 0x3f7   :  { %v2282_v30 = vpack.c.bf16 %v2214_v53, %v2214_v53  ;;  %v2180_v1 = vadd.f32 %v2179_v49, %v2151_v9  ;;  %v2156_v14 = vadd.f32 %v2155_v20, %v2127_v16  ;;  %v4398_v9 = vld [vmem:[#allocation6 + $0x1a0] sm:$0xf0]  ;;  %v4395_v53 = vld [vmem:[#allocation6 + $0x18c] sm:$0xf]  ;;  %v4128_v49 = vld [vmem:[#allocation6 + $0x190] sm:$0xf] }
 0x3f8   :  { %2606 = vmatpush.bf16.msrb.mxu0 %v4341_v26  ;;  %v4121_v46 = vor.u32 %v4398_v9, %v4120_v17  ;;  %v4125_v52 = vor.u32 %v4395_v53, %v4122_v10  ;;  %v4036_v20 = vld [vmem:[#allocation6 + $0xe0] sm:$0xf]  ;;  %v3982_v17 = vld [vmem:[#allocation6 + $0x8c] sm:$0xf0]  ;;  %v3988_v9 = vld [vmem:[#allocation6 + $0x78] sm:$0xf]  ;;  %v3981_v10 = vor.u32 %v4363_v41, %v3980_v57 }
 0x3f9   :  { %v2198_v47 = vmax.f32 %v2180_v1, 0.0  ;;  %2502 = vmatmul.bf16.vlgmr.msra.gmra.mxu1 %v2282_v30  ;;  %v4129_v30 = vor.u32 %v4399_v31, %v4128_v49  ;;  %v4092_v1 = vld [vmem:[#allocation6 + $0x150] sm:$0xf]  ;;  %v4364_v53 = vld [vmem:[#allocation6 + $0x90] sm:$0xf0] }
 0x3fa   :  { %2985 = vmatpush.bf16.msrb.mxu1 %v4121_v46  ;;  %2998 = vmatpush.bf16.msrb.mxu2 %v4125_v52  ;;  %v3952_v49 = vld [vmem:[#allocation6 + $0x38] sm:$0xf]  ;;  %v4356_v31 = vld [vmem:[#allocation6 + $0x50] sm:$0xf0]  ;;  %v4354_v41 = vld [vmem:[#allocation6 + $0x44] sm:$0xf] }
 0x3fb   :  { %v2209_v25 = vmax.f32 %v2197_v18, %v2198_v47  ;;  %v4093_v18 = vor.u32 %v4391_v22, %v4092_v1  ;;  %v4094_v47 = vld [vmem:[#allocation6 + $0x16c] sm:$0xf0]  ;;  %3011 = vmatpush.bf16.msrb.mxu3 %v4129_v30  ;;  %v3989_v1 = vor.u32 %v4364_v53, %v3988_v9  ;;  %v4353_v22 = vld [vmem:[#allocation6 + $0x3c] sm:$0xf]  ;;  %v4387_v53 = vld [vmem:[#allocation6 + $0x148] sm:$0xf0] }
 0x3fc   :  { %2607 = vmatpush.bf16.msrb.mxu0 %v4340_v21  ;;  %v4097_v12 = vor.u32 %v4388_v34, %v4094_v47  ;;  %v4368_v34 = vld [vmem:[#allocation6 + $0xb4] sm:$0xf]  ;;  %v4088_v9 = vld [vmem:[#allocation6 + $0x130] sm:$0xf] }
 0x3fe   :  { %v2181_v6 = vpop.f32.mrf.mxu3  ;;  %v2157_v54 = vpop.f32.mrf.mxu2  ;;  %2986 = vmatpush.bf16.msrb.mxu1 %v4093_v18  ;;  %2999 = vmatpush.bf16.msrb.mxu2 %v4097_v12  ;;  %v4018_v18 = vld [vmem:[#allocation6 + $0xcc] sm:$0xf0]  ;;  %v4357_v12 = vld [vmem:[#allocation6 + $0x58] sm:$0xf0] }
 0x3ff   :  { %v2182_v45 = vadd.f32 %v2181_v6, %v2153_v56  ;;  %v2158_v35 = vadd.f32 %v2157_v54, %v2129_v58  ;;  %v4381_v56 = vld [vmem:[#allocation6 + $0x11c] sm:$0xf]  ;;  %v4066_v6 = vld [vmem:[#allocation6 + $0x134] sm:$0xf0] }
 0x400   :  { %2608 = vmatpush.bf16.msrb.mxu0 %v4339_v11  ;;  %v4069_v13 = vor.u32 %v4381_v56, %v4066_v6  ;;  %v4102_v54 = vld [vmem:[#allocation6 + $0x174] sm:$0xf0]  ;;  %v4360_v11 = vld [vmem:[#allocation6 + $0x74] sm:$0xf]  ;;  %v4346_v56 = vld [vmem:[#allocation6 + $0x4] sm:$0xf]  ;;  %v4021_v6 = vor.u32 %v4368_v34, %v4018_v18 }
 0x401   :  { %v2200_v44 = vmax.f32 %v2182_v45, 0.0  ;;  %v4385_v45 = vld [vmem:[#allocation6 + $0x138] sm:$0xf0]  ;;  %v3985_v30 = vor.u32 %v4360_v11, %v3982_v17  ;;  %v4383_v11 = vld [vmem:[#allocation6 + $0x12c] sm:$0xf] }
 0x402   :  { %v4073_v16 = vor.u32 %v4385_v45, %v4072_v15  ;;  %2987 = vmatpush.bf16.msrb.mxu1 %v4065_v51  ;;  %3000 = vmatpush.bf16.msrb.mxu2 %v4069_v13 }
 0x403   :  { %v2210_v4 = vmax.f32 %v2199_v48, %v2200_v44  ;;  %v4377_v48 = vld [vmem:[#allocation6 + $0xf8] sm:$0xf0] }
 0x404   :  { %2609 = vmatpush.bf16.msrb.mxu0 %v4338_v2  ;;  %v4375_v2 = vld [vmem:[#allocation6 + $0xec] sm:$0xf] }
 0x405   :  { %v2215_v63 = vmax.f32 %v2209_v25, %v2210_v4  ;;  %v4101_v25 = vor.u32 %v4392_v37, %v4100_v59  ;;  %v4374_v4 = vld [vmem:[#allocation6 + $0xe4] sm:$0xf]  ;;  %v3954_v59 = vld [vmem:[#allocation6 + $0x54] sm:$0xf0]  ;;  %v3960_v37 = vld [vmem:[#allocation6 + $0x40] sm:$0xf] }
 0x406   :  { %v2184_v24 = vpop.f32.mrf.mxu3  ;;  %v4041_v58 = vor.u32 %v4374_v4, %v4038_v32  ;;  %v3957_v45 = vor.u32 %v4353_v22, %v3954_v59  ;;  %v3961_v51 = vor.u32 %v4357_v12, %v3960_v37  ;;  %v4350_v4 = vld [vmem:[#allocation6 + $0x20] sm:$0xf0]  ;;  %v4138_v32 = vld [vmem:[#allocation6 + $0x1b4] sm:$0xf0]  ;;  %v4054_v22 = vld [vmem:[#allocation6 + $0x10c] sm:$0xf0] }
 0x407   :  { %v2283_v50 = vpack.c.bf16 %v2215_v63, %v2215_v63  ;;  %v2185_v55 = vadd.f32 %v2184_v24, %v2156_v14  ;;  %3012 = vmatpush.bf16.msrb.mxu3 %v4101_v25  ;;  %v4396_v14 = vld [vmem:[#allocation6 + $0x194] sm:$0xf]  ;;  %v4130_v63 = vld [vmem:[#allocation6 + $0x1ac] sm:$0xf0]  ;;  %v4044_v24 = vld [vmem:[#allocation6 + $0xe8] sm:$0xf]  ;;  %v3953_v25 = vor.u32 %v4356_v31, %v3952_v49 }
 0x408   :  { %3001 = vmatpush.bf16.msrb.mxu2 %v4041_v58  ;;  %v3934_v49 = vld [vmem:[#allocation6 + $0x24] sm:$0xf0]  ;;  %v4052_v31 = vld [vmem:[#allocation6 + $0xf0] sm:$0xf]  ;;  %v4380_v59 = vld [vmem:[#allocation6 + $0x110] sm:$0xf0] }
 0x409   :  { %v2202_v38 = vmax.f32 %v2185_v55, 0.0  ;;  %2515 = vmatmul.bf16.vlgmr.msra.gmra.mxu2 %v2283_v50  ;;  %v4133_v50 = vor.u32 %v4396_v14, %v4130_v63  ;;  %v4389_v55 = vld [vmem:[#allocation6 + $0x15c] sm:$0xf]  ;;  %v4136_v14 = vld [vmem:[#allocation6 + $0x198] sm:$0xf] }
 0x40a   :  { %v4397_v63 = vld [vmem:[#allocation6 + $0x19c] sm:$0xf]  ;;  %v4024_v12 = vld [vmem:[#allocation6 + $0xb8] sm:$0xf] }
 0x40b   :  { %v2211_v5 = vmax.f32 %v2201_v27, %v2202_v38  ;;  %v4037_v27 = vor.u32 %v4377_v48, %v4036_v20  ;;  %3024 = vmatpush.bf16.msra.mxu0 %v4133_v50  ;;  %v4008_v38 = vld [vmem:[#allocation6 + $0xa8] sm:$0xf]  ;;  %3013 = vmatpush.bf16.msrb.mxu3 %v4073_v16  ;;  %v3926_v20 = vld [vmem:[#allocation6 + $0x1c] sm:$0xf0]  ;;  %v4361_v48 = vld [vmem:[#allocation6 + $0x7c] sm:$0xf]  ;;  %v4141_v58 = vor.u32 %v4397_v63, %v4138_v32 }
 0x40c   :  { %v4009_v3 = vor.u32 %v4370_v36, %v4008_v38  ;;  %v3932_v16 = vld [vmem:[#allocation6 + $0x8] sm:$0xf]  ;;  %v4144_v50 = vld [vmem:[#allocation6 + $0x1a0] sm:$0xf]  ;;  %v3929_v38 = vor.u32 %v4346_v56, %v3926_v20  ;;  %v4365_v20 = vld [vmem:[#allocation6 + $0x98] sm:$0xf0] }
 0x40d   :  { %2988 = vmatpush.bf16.msrb.mxu1 %v4037_v27  ;;  %v3933_v36 = vor.u32 %v4350_v4, %v3932_v16  ;;  %v4032_v56 = vld [vmem:[#allocation6 + $0xc0] sm:$0xf]  ;;  %v4366_v16 = vld [vmem:[#allocation6 + $0xa0] sm:$0xf0] }
 0x40e   :  { %v2186_v29 = vpop.f32.mrf.mxu3  ;;  %v4358_v32 = vld [vmem:[#allocation6 + $0x60] sm:$0xf0] }
 0x40f   :  { %v2187_v40 = vadd.f32 %v2186_v29, %v2158_v35  ;;  %v4367_v35 = vld [vmem:[#allocation6 + $0xac] sm:$0xf]  ;;  %v4010_v29 = vld [vmem:[#allocation6 + $0xc4] sm:$0xf0] }
 0x410   :  { %v4013_v26 = vor.u32 %v4367_v35, %v4010_v29  ;;  %v4393_v29 = vld [vmem:[#allocation6 + $0x178] sm:$0xf0] }
 0x411   :  { %v2204_v62 = vmax.f32 %v2187_v40, 0.0  ;;  %v4016_v40 = vld [vmem:[#allocation6 + $0xb0] sm:$0xf]  ;;  %2989 = vmatpush.bf16.msrb.mxu1 %v4009_v3 }
 0x412   :  { %3002 = vmatpush.bf16.msrb.mxu2 %v4013_v26 }
 0x413   :  { %v2212_v42 = vmax.f32 %v2203_v60, %v2204_v62  ;;  %v4105_v60 = vor.u32 %v4389_v55, %v4102_v54  ;;  %v4371_v62 = vld [vmem:[#allocation6 + $0xc8] sm:$0xf0]  ;;  %v4401_v55 = vld [vmem:[#allocation6 + $0x1b8] sm:$0xf0] }
 0x414   :  { %v4017_v21 = vor.u32 %v4371_v62, %v4016_v40  ;;  %v4145_v35 = vor.u32 %v4401_v55, %v4144_v50  ;;  %v4390_v40 = vld [vmem:[#allocation6 + $0x164] sm:$0xf]  ;;  %v4116_v62 = vld [vmem:[#allocation6 + $0x168] sm:$0xf]  ;;  %v3976_v50 = vld [vmem:[#allocation6 + $0x50] sm:$0xf] }
 0x415   :  { %v2216_v8 = vmax.f32 %v2211_v5, %v2212_v42  ;;  %v4045_v5 = vor.u32 %v4378_v7, %v4044_v24  ;;  %v4382_v42 = vld [vmem:[#allocation6 + $0x124] sm:$0xf]  ;;  %3025 = vmatpush.bf16.msra.mxu0 %v4105_v60  ;;  %2990 = vmatpush.bf16.msrb.mxu1 %v3981_v10  ;;  %v3925_v7 = vor.u32 %v4349_v28, %v3924_v61  ;;  %v4110_v60 = vld [vmem:[#allocation6 + $0x17c] sm:$0xf0]  ;;  %v4347_v10 = vld [vmem:[#allocation6 + $0xc] sm:$0xf] }
 0x416   :  { %3003 = vmatpush.bf16.msrb.mxu2 %v3985_v30  ;;  %v4113_v3 = vor.u32 %v4390_v40, %v4110_v60  ;;  %v4379_v30 = vld [vmem:[#allocation6 + $0x108] sm:$0xf0]  ;;  %v4026_v28 = vld [vmem:[#allocation6 + $0xd4] sm:$0xf0]  ;;  %v4352_v40 = vld [vmem:[#allocation6 + $0x30] sm:$0xf0] }
 0x417   :  { %v2284_v33 = vpack.c.bf16 %v2216_v8, %v2216_v8  ;;  %v4074_v8 = vld [vmem:[#allocation6 + $0x13c] sm:$0xf0]  ;;  %3014 = vmatpush.bf16.msrb.mxu3 %v4045_v5  ;;  %v4053_v34 = vor.u32 %v4379_v30, %v4052_v31  ;;  %v4359_v55 = vld [vmem:[#allocation6 + $0x68] sm:$0xf0] }
 0x418   :  { %v4077_v19 = vor.u32 %v4382_v42, %v4074_v8  ;;  %v4108_v5 = vld [vmem:[#allocation6 + $0x160] sm:$0xf]  ;;  %v4394_v42 = vld [vmem:[#allocation6 + $0x180] sm:$0xf0] }
 0x419   :  { %2528 = vmatmul.bf16.vlgmr.msra.gmra.mxu3 %v2284_v33  ;;  %v4411_v33 = vld [vmem:[%s5951_s6] ss:$0 sm:$0xff]  ;;  %2991 = vmatpush.bf16.msrb.mxu1 %v3953_v25  ;;  %v4117_v57 = vor.u32 %v4394_v42, %v4116_v62  ;;  %v4369_v25 = vld [vmem:[#allocation6 + $0xbc] sm:$0xf] }
 0x41a   :  { %3026 = vmatpush.bf16.msra.mxu0 %v4077_v19  ;;  %3004 = vmatpush.bf16.msrb.mxu2 %v3957_v45  ;;  %v3962_v19 = vld [vmem:[#allocation6 + $0x5c] sm:$0xf0] }
 0x41b   :  { %3015 = vmatpush.bf16.msrb.mxu3 %v4017_v21  ;;  %v3965_v26 = vor.u32 %v4354_v41, %v3962_v19  ;;  %v4386_v21 = vld [vmem:[#allocation6 + $0x140] sm:$0xf0] }
 0x41d   :  { %2992 = vmatpush.bf16.msrb.mxu1 %v3925_v7  ;;  %v3970_v7 = vld [vmem:[#allocation6 + $0x64] sm:$0xf0] }
 0x41e   :  { %3005 = vmatpush.bf16.msrb.mxu2 %v3929_v38 }
 0x41f   :  { %3016 = vmatpush.bf16.msrb.mxu3 %v3989_v1  ;;  %v4376_v1 = vld [vmem:[#allocation6 + $0xf4] sm:$0xf] }
 0x420   :  { %v4057_v18 = vor.u32 %v4376_v1, %v4054_v22 }
 0x422   :  { %3050 = vmatpush.bf16.msra.mxu2 %v4141_v58  ;;  %v4351_v58 = vld [vmem:[#allocation6 + $0x28] sm:$0xf0] }
 0x423   :  { %3017 = vmatpush.bf16.msrb.mxu3 %v3961_v51  ;;  %v3996_v51 = vld [vmem:[#allocation6 + $0x80] sm:$0xf] }
 0x424   :  { %v3997_v4 = vor.u32 %v4365_v20, %v3996_v51 }
 0x426   :  { %3051 = vmatpush.bf16.msra.mxu2 %v4113_v3 }
 0x427   :  { %3018 = vmatpush.bf16.msrb.mxu3 %v3933_v36  ;;  %v3940_v36 = vld [vmem:[#allocation6 + $0x10] sm:$0xf] }
 0x428   :  { %v3941_v60 = vor.u32 %v4351_v58, %v3940_v36 }
 0x42b   :  { %3063 = vmatpush.bf16.msra.mxu3 %v4145_v35  ;;  %v3942_v35 = vld [vmem:[#allocation6 + $0x2c] sm:$0xf0] }
 0x42f   :  { %3064 = vmatpush.bf16.msra.mxu3 %v4117_v57 }
 0x466   :  { %v5888_v0 = vpop.f32.mrf.mxu0 }
 0x467   :  { %v2491_v46 = vadd.f32 %v4411_v33, %v5888_v0  ;;  %v4109_v33 = vor.u32 %v4393_v29, %v4108_v5  ;;  %v4348_v5 = vld [vmem:[#allocation6 + $0x14] sm:$0xf]  ;;  %v3948_v29 = vld [vmem:[#allocation6 + $0x18] sm:$0xf] }
 0x468   :  { %v3945_v62 = vor.u32 %v4348_v5, %v3942_v35  ;;  %v3949_v42 = vor.u32 %v4352_v40, %v3948_v29 }
 0x46e   :  { %v2492_v23 = vpop.f32.mrf.mxu0 }
 0x476   :  { %v5899_v43 = vpop.f32.mrf.mxu1 }
 0x477   :  { %v2504_v47 = vadd.f32 %v5899_v43, %v2491_v46  ;;  %v3990_v43 = vld [vmem:[#allocation6 + $0x94] sm:$0xf0]  ;;  %v4089_v46 = vor.u32 %v4387_v53, %v4088_v9 }
 0x478   :  { %v3993_v27 = vor.u32 %v4361_v48, %v3990_v43  ;;  %v4362_v48 = vld [vmem:[#allocation6 + $0x84] sm:$0xf]  ;;  %v3998_v43 = vld [vmem:[#allocation6 + $0x9c] sm:$0xf0] }
 0x479   :  { %3065 = vmatpush.bf16.msra.mxu3 %v4089_v46 }
 0x47e   :  { %v2505_v39 = vpop.f32.mrf.mxu1 }
 0x47f   :  { %v4046_v39 = vld [vmem:[#allocation6 + $0x104] sm:$0xf0] }
 0x480   :  { %v4049_v52 = vor.u32 %v4375_v2, %v4046_v39  ;;  %v4082_v2 = vld [vmem:[#allocation6 + $0x144] sm:$0xf0] }
 0x481   :  { %v4085_v17 = vor.u32 %v4383_v11, %v4082_v2 }
 0x482   :  { %3027 = vmatpush.bf16.msra.mxu0 %v4049_v52  ;;  %v3937_v52 = vor.u32 %v4347_v10, %v3934_v49 }
 0x483   :  { %3052 = vmatpush.bf16.msra.mxu2 %v4085_v17 }
 0x486   :  { %3028 = vmatpush.bf16.msra.mxu0 %v4021_v6  ;;  %v4373_v6 = vld [vmem:[#allocation6 + $0xd8] sm:$0xf0] }
 0x487   :  { %3053 = vmatpush.bf16.msra.mxu2 %v4057_v18  ;;  %v4033_v45 = vor.u32 %v4373_v6, %v4032_v56 }
 0x48a   :  { %3029 = vmatpush.bf16.msra.mxu0 %v3993_v27 }
 0x48c   :  { %v5907_v44 = vpop.f32.mrf.mxu2 }
 0x48d   :  { %v2517_v0 = vadd.f32 %v5907_v44, %v2504_v47  ;;  %v4400_v44 = vld [vmem:[#allocation6 + $0x1b0] sm:$0xf0]  ;;  %v4060_v47 = vld [vmem:[#allocation6 + $0xf8] sm:$0xf] }
 0x48e   :  { %v4137_v54 = vor.u32 %v4400_v44, %v4136_v14  ;;  %3030 = vmatpush.bf16.msra.mxu0 %v3965_v26  ;;  %v4061_v37 = vor.u32 %v4380_v59, %v4060_v47  ;;  %v4001_v14 = vor.u32 %v4362_v48, %v3998_v43  ;;  %v3968_v44 = vld [vmem:[#allocation6 + $0x48] sm:$0xf] }
 0x48f   :  { %v3969_v27 = vor.u32 %v4358_v32, %v3968_v44 }
 0x490   :  { %3037 = vmatpush.bf16.msra.mxu1 %v4137_v54  ;;  %3066 = vmatpush.bf16.msra.mxu3 %v4061_v37  ;;  %v3977_v54 = vor.u32 %v4359_v55, %v3976_v50 }
 0x492   :  { %3031 = vmatpush.bf16.msra.mxu0 %v3937_v52 }
 0x494   :  { %v2518_v23 = vpop.f32.mrf.mxu2  ;;  %3038 = vmatpush.bf16.msra.mxu1 %v4109_v33  ;;  %3067 = vmatpush.bf16.msra.mxu3 %v4033_v45 }
 0x495   :  { %v4080_v23 = vld [vmem:[#allocation6 + $0x128] sm:$0xf] }
 0x496   :  { %v4081_v39 = vor.u32 %v4386_v21, %v4080_v23  ;;  %v2681_v23 = vld [vmem:[%s5955_s10] sm:$0xff] }
 0x497   :  { %v2683_v26 = vperm.slane %v2681_v23, 0  ;;  %v2686_v21 = vperm.slane %v2681_v23, 3  ;;  %v2684_v53 = vperm.slane %v2681_v23, 1  ;;  %v2685_v10 = vperm.slane %v2681_v23, 2 }
 0x498   :  { %3039 = vmatpush.bf16.msra.mxu1 %v4081_v39 }
 0x49c   :  { %v2529_v15 = vpop.f32.mrf.mxu3  ;;  %3040 = vmatpush.bf16.msra.mxu1 %v4053_v34 }
 0x49d   :  { %v2530_v13 = vadd.f32 %v2529_v15, %v2517_v0  ;;  %v4372_v0 = vld [vmem:[#allocation6 + $0xd0] sm:$0xf0]  ;;  %v4029_v15 = vor.u32 %v4369_v25, %v4026_v28 }
 0x49e   :  { %v4025_v61 = vor.u32 %v4372_v0, %v4024_v12  ;;  %v2687_v0 = vperm.slane %v2681_v23, 4 }
 0x49f   :  { %v2549_v24 = vpack.c.bf16 %v2530_v13, %v2530_v13  ;;  %3111 = vst [vmem:[%s5957_s12] sm:$0xff] %v2530_v13  ;;  %v4004_v13 = vld [vmem:[#allocation6 + $0x88] sm:$0xf]  ;;  %3054 = vmatpush.bf16.msra.mxu2 %v4029_v15 }
 0x4a0   :  { %3041 = vmatpush.bf16.msra.mxu1 %v4025_v61  ;;  %v4005_v63 = vor.u32 %v4366_v16, %v4004_v13  ;;  %v2688_v13 = vperm.slane %v2681_v23, 5 }
 0x4a1   :  { %2610 = vmatmul.bf16.vlgmr.msrb.gmra.mxu0 %v2549_v24  ;;  %v4355_v24 = vld [vmem:[#allocation6 + $0x4c] sm:$0xf] }
 0x4a2   :  { %v3973_v38 = vor.u32 %v4355_v24, %v3970_v7  ;;  %3068 = vmatpush.bf16.msra.mxu3 %v4005_v63 }
 0x4a3   :  { %3055 = vmatpush.bf16.msra.mxu2 %v4001_v14 }
 0x4a4   :  { %v2531_v8 = vpop.f32.mrf.mxu3  ;;  %3042 = vmatpush.bf16.msra.mxu1 %v3997_v4  ;;  %v2689_v4 = vperm.slane %v2681_v23, 6 }
 0x4a5   :  { %v4412_v8 = vld [vmem:[%s5953_s8] ss:$0 sm:$0xff] }
 0x4a6   :  { %3069 = vmatpush.bf16.msra.mxu3 %v3977_v54 }
 0x4a7   :  { %3056 = vmatpush.bf16.msra.mxu2 %v3973_v38 }
 0x4a8   :  { %3043 = vmatpush.bf16.msra.mxu1 %v3969_v27 }
 0x4aa   :  { %3070 = vmatpush.bf16.msra.mxu3 %v3949_v42 }
 0x4ab   :  { %3057 = vmatpush.bf16.msra.mxu2 %v3945_v62 }
 0x4ac   :  { %3044 = vmatpush.bf16.msra.mxu1 %v3941_v60 }
 0x51e   :  { %v2611_v33 = vpop.f32.mrf.mxu0 }
 0x51f   :  { %v2612_v3 = vadd.f32 %v4412_v8, %v2611_v33 }
 0x521   :  { %v2615_v57 = vmax.f32 %v2612_v3, 0.0 }
 0x523   :  { %v2680_v41 = vpack.c.bf16 %v2615_v57, %v2615_v57 }
 0x525   :  { %2993 = vmatmul.bf16.vlgmr.msrb.gmra.mxu1 %v2680_v41  ;;  %3006 = vmatmul.bf16.vlgmr.msrb.gmra.mxu2 %v2680_v41 }
 0x526   :  { %3019 = vmatmul.bf16.vlgmr.msrb.gmra.mxu3 %v2680_v41  ;;  %3032 = vmatmul.bf16.vlgmr.msra.gmra.mxu0 %v2680_v41  ;;  %v2613_v19 = vpop.f32.mrf.mxu0 }
 0x535   :  { %3045 = vmatmul.bf16.vlgmr.msra.gmra.mxu1 %v2680_v41  ;;  %3058 = vmatmul.bf16.vlgmr.msra.gmra.mxu2 %v2680_v41 }
 0x536   :  { %3071 = vmatmul.bf16.vlgmr.msra.gmra.mxu3 %v2680_v41 }
 0x5a2   :  { %v2994_v11 = vpop.f32.mrf.mxu1 }
 0x5a3   :  { %v2995_v2 = vadd.f32 %v2994_v11, %v2683_v26  ;;  %v3033_v39 = vpop.f32.mrf.mxu0 }
 0x5a4   :  { %v3034_v17 = vadd.f32 %v3033_v39, %v2686_v21 }
 0x5a5   :  { %v3076_v9 = vmul.f32 0.5, %v2995_v2 }
 0x5a6   :  { %v3079_v46 = vmul.f32 0.5, %v3034_v17 }
 0x5a7   :  { %4413 = vtanh.f32 %v3076_v9 }
 0x5a8   :  { %4415 = vtanh.f32 %v3079_v46  ;;  %v3007_v49 = vpop.f32.mrf.mxu2 }
 0x5a9   :  { %v3008_v31 = vadd.f32 %v3007_v49, %v2684_v53  ;;  %v3020_v52 = vpop.f32.mrf.mxu3 }
 0x5aa   :  { %v3021_v30 = vadd.f32 %v3020_v52, %v2685_v10  ;;  %v2996_v1 = vpop.f32.mrf.mxu1 }
 0x5ab   :  { %v3077_v22 = vmul.f32 0.5, %v3008_v31  ;;  %v3035_v34 = vpop.f32.mrf.mxu0 }
 0x5ac   :  { %v3078_v18 = vmul.f32 0.5, %v3021_v30 }
 0x5ad   :  { %v4414_v47 = vpop.eup %4413  ;;  %4417 = vtanh.f32 %v3077_v22 }
 0x5ae   :  { %v4416_v59 = vpop.eup %4415  ;;  %v3090_v37 = vadd.f32 1.0, %v4414_v47  ;;  %4419 = vtanh.f32 %v3078_v18 }
 0x5af   :  { %v3093_v12 = vadd.f32 1.0, %v4416_v59 }
 0x5b0   :  { %v3097_v25 = vmul.f32 0.5, %v3090_v37  ;;  %v3009_v61 = vpop.f32.mrf.mxu2 }
 0x5b1   :  { %v3100_v28 = vmul.f32 0.5, %v3093_v12  ;;  %v3022_v56 = vpop.f32.mrf.mxu3 }
 0x5b2   :  { %3104 = vst [vmem:[%s5956_s11] sm:$0xff] %v3097_v25  ;;  %v3046_v6 = vpop.f32.mrf.mxu1 }
 0x5b3   :  { %v4418_v15 = vpop.eup %4417  ;;  %3107 = vst [vmem:[%s5956_s11 + $0x18] sm:$0xff] %v3100_v28  ;;  %v3047_v45 = vadd.f32 %v3046_v6, %v2687_v0 }
 0x5b4   :  { %v4420_v51 = vpop.eup %4419  ;;  %v3091_v20 = vadd.f32 1.0, %v4418_v15 }
 0x5b5   :  { %v3092_v48 = vadd.f32 1.0, %v4420_v51  ;;  %v3080_v43 = vmul.f32 0.5, %v3047_v45 }
 0x5b6   :  { %v3098_v16 = vmul.f32 0.5, %v3091_v20 }
 0x5b7   :  { %v3099_v14 = vmul.f32 0.5, %v3092_v48  ;;  %4421 = vtanh.f32 %v3080_v43 }
 0x5b8   :  { %3105 = vst [vmem:[%s5956_s11 + $0x8] sm:$0xff] %v3098_v16  ;;  %v3059_v44 = vpop.f32.mrf.mxu2 }
 0x5b9   :  { %3106 = vst [vmem:[%s5956_s11 + $0x10] sm:$0xff] %v3099_v14  ;;  %v3060_v63 = vadd.f32 %v3059_v44, %v2688_v13  ;;  %v3072_v32 = vpop.f32.mrf.mxu3 }
 0x5ba   :  { %v3073_v24 = vadd.f32 %v3072_v32, %v2689_v4  ;;  %v3048_v7 = vpop.f32.mrf.mxu1 }
 0x5bb   :  { %v3081_v50 = vmul.f32 0.5, %v3060_v63 }
 0x5bc   :  { %v3082_v55 = vmul.f32 0.5, %v3073_v24 }
 0x5bd   :  { %v4422_v27 = vpop.eup %4421  ;;  %4423 = vtanh.f32 %v3081_v50 }
 0x5be   :  { %v3094_v38 = vadd.f32 1.0, %v4422_v27  ;;  %4425 = vtanh.f32 %v3082_v55 }
 0x5c0   :  { %v3101_v36 = vmul.f32 0.5, %v3094_v38  ;;  %v3061_v54 = vpop.f32.mrf.mxu2 }
 0x5c1   :  { %v3074_v58 = vpop.f32.mrf.mxu3 }
 0x5c2   :  { %3108 = vst [vmem:[%s5956_s11 + $0x20] sm:$0xff] %v3101_v36 }
 0x5c3   :  { %v4424_v5 = vpop.eup %4423 }
 0x5c4   :  { %v4426_v35 = vpop.eup %4425  ;;  %v3095_v29 = vadd.f32 1.0, %v4424_v5 }
 0x5c5   :  { %v3096_v40 = vadd.f32 1.0, %v4426_v35 }
 0x5c6   :  { %v3102_v60 = vmul.f32 0.5, %v3095_v29 }
 0x5c7   :  { %v3103_v62 = vmul.f32 0.5, %v3096_v40 }
 0x5c8   :  { %3109 = vst [vmem:[%s5956_s11 + $0x28] sm:$0xff] %v3102_v60 }
 0x5c9   :  { %3110 = vst [vmem:[%s5956_s11 + $0x30] sm:$0xff] %v3103_v62 }
 0x5ca   :  { %3120 = vsyncpa [#allocation3], 1 }
 0x5cb   :  { %3121 = vsyncpa [#allocation5], 1 }

</bundles_post_ra>
